<compile_context>
chip_gen: v5e
topology: v5e:2x2
jax: 0.10.0
libtpu: 0.0.40
codegen_flags: <defaults>
</compile_context>

<pallas_src>
import functools

import jax
import jax.numpy as jnp
from jax import lax
from jax.experimental import pallas as pl
from jax.experimental.pallas import tpu as pltpu


# ---------------------------------------------------------------------------
# in-kernel helpers (traced inline inside the fused kernel)
# ---------------------------------------------------------------------------
def _gelu(x):
    # exact (erf) GELU == torch.nn.functional.gelu default
    return 0.5 * x * (1.0 + lax.erf(x * 0.7071067811865476))


def _group_norm(y, g_ref, b_ref, eps):
    # GroupNorm(1, C) on a per-sample (M, C) slab: stats over all M*C elements.
    mu = jnp.mean(y, keepdims=True)
    var = jnp.mean(jnp.square(y - mu), keepdims=True)   # biased, like PyTorch
    yn = (y - mu) * lax.rsqrt(var + eps)
    return yn * g_ref[...] + b_ref[...]                  # (1,C) broadcasts


def _conv3x3(fm, w_ref, cin, cout, hh, ww, pad_ref):
    """3x3 conv, padding=1, bias=False.

    fm:      (hh*ww, cin) f32 value (VMEM resident).
    w_ref:   (9, cin, cout) weight ref (tap k = dy*3+dx).
    pad_ref: (hh+2, ww+2, Cmax) f32 scratch; halo rows/cols are already zero
             (zeroed once per grid step and never written afterwards).
    """
    mm = hh * ww
    # write the current feature map into the interior of the zero-halo scratch
    pad_ref[pl.ds(1, hh), pl.ds(1, ww), pl.ds(0, cin)] = fm.reshape(hh, ww, cin)

    acc = None
    for k in range(9):                       # static unroll: 9 shifted matmuls
        dy, dx = k // 3, k % 3
        win = pad_ref[pl.ds(dy, hh), pl.ds(dx, ww), pl.ds(0, cin)]  # (hh,ww,cin)
        part = jnp.dot(win.reshape(mm, cin), w_ref[k],
                       preferred_element_type=jnp.float32)
        acc = part if acc is None else acc + part
    return acc                               # (mm, cout) f32


# ---------------------------------------------------------------------------
# fused DownConv kernel (one grid step == one sample)
# ---------------------------------------------------------------------------
def _down_conv_kernel(x4_ref, t_ref,
                      w11_ref, g11_ref, b11_ref, w12_ref, g12_ref, b12_ref,
                      w21_ref, g21_ref, b21_ref, w22_ref, g22_ref, b22_ref,
                      ew_ref, eb_ref,
                      o_ref, pad_ref, *, hh, ww, cin, cout, eps):
    n = pl.program_id(0)
    mm = hh * ww

    # zero the conv halo scratch (interior gets overwritten per conv, the halo
    # stays zero for the whole grid step)
    pad_ref[...] = jnp.zeros_like(pad_ref)

    # ---- MaxPool2d(kernel_size=2) --------------------------------------
    # x4 block is (1, 2*hh, ww, 2*cin):  [h', r] packed on dim 1 and
    # [s, c] packed on the last dim, i.e. element = x[n, 2h'+r, 2w'+s, c].
    xh = x4_ref[0].reshape(hh, 2, ww, 2 * cin)
    pooled = jnp.maximum(
        jnp.maximum(xh[:, 0, :, :cin], xh[:, 0, :, cin:]),
        jnp.maximum(xh[:, 1, :, :cin], xh[:, 1, :, cin:]))          # (hh,ww,cin)
    fm0 = pooled.reshape(mm, cin).astype(jnp.float32)

    # ---- DoubleConv(in, in, residual=True) ------------------------------
    h = _conv3x3(fm0, w11_ref, cin, cin, hh, ww, pad_ref)
    h = _gelu(_group_norm(h, g11_ref, b11_ref, eps))
    h = _conv3x3(h, w12_ref, cin, cin, hh, ww, pad_ref)
    h = _group_norm(h, g12_ref, b12_ref, eps)
    fm1 = _gelu(fm0 + h)                                            # gelu(x + x_)

    # ---- DoubleConv(in, out) --------------------------------------------
    h = _conv3x3(fm1, w21_ref, cin, cout, hh, ww, pad_ref)
    h = _gelu(_group_norm(h, g21_ref, b21_ref, eps))
    h = _conv3x3(h, w22_ref, cout, cout, hh, ww, pad_ref)
    fm2 = _group_norm(h, g22_ref, b22_ref, eps)                     # (mm, cout)

    # ---- emb = SiLU(Linear(t_n)); broadcast over all pixels --------------
    t_row = t_ref[pl.ds(n, 1), :]                                   # (1, E)
    e = jnp.dot(t_row, ew_ref[...],
                preferred_element_type=jnp.float32) + eb_ref[...]   # (1, cout)
    e = e * jax.nn.sigmoid(e)                                       # SiLU
    y = fm2 + e

    o_ref[...] = y.reshape(1, hh, ww, cout).astype(o_ref.dtype)


# ---------------------------------------------------------------------------
# wrapper: layout plumbing + single pallas_call
# ---------------------------------------------------------------------------
def down_conv(x_nchw, t, params, *, eps=1e-5):
    N, Cin, H, W = x_nchw.shape
    hh, ww = H // 2, W // 2
    Cout = params["conv_2"]["w2"].shape[-1]
    cmax = max(Cin, Cout)

    # NCHW -> NHWC -> (N, H, W//2, 2*Cin): pure layout plumbing (bitcast
    # reshape of the contiguous NHWC view); the 2x2 window ends up on
    # (row-pair axis, lane halves) so the pool is unit-stride in-kernel.
    x4 = jnp.transpose(x_nchw, (0, 2, 3, 1)).reshape(N, H, ww, 2 * Cin)

    def wmat(w):                       # (3,3,ci,co) -> (9, ci, co)
        return w.reshape(9, w.shape[2], w.shape[3])

    def vrow(v):                       # (C,) -> (1, C)
        return v.reshape(1, -1)

    p1, p2 = params["conv_1"], params["conv_2"]
    args = (x4, t,
            wmat(p1["w1"]), vrow(p1["g1"]), vrow(p1["b1"]),
            wmat(p1["w2"]), vrow(p1["g2"]), vrow(p1["b2"]),
            wmat(p2["w1"]), vrow(p2["g1"]), vrow(p2["b1"]),
            wmat(p2["w2"]), vrow(p2["g2"]), vrow(p2["b2"]),
            params["emb_w"], vrow(params["emb_b"]))

    def full_spec(a):                  # whole (small) array resident in VMEM
        nd = a.ndim
        return pl.BlockSpec(a.shape, lambda n, _nd=nd: (0,) * _nd)

    in_specs = [pl.BlockSpec((1, H, ww, 2 * Cin), lambda n: (n, 0, 0, 0))]
    in_specs += [full_spec(a) for a in args[1:]]

    kernel = functools.partial(_down_conv_kernel, hh=hh, ww=ww,
                               cin=Cin, cout=Cout, eps=eps)

    out_nhwc = pl.pallas_call(
        kernel,
        out_shape=jax.ShapeDtypeStruct((N, hh, ww, Cout), x_nchw.dtype),
        grid_spec=pltpu.PrefetchScalarGridSpec(
            num_scalar_prefetch=0,
            grid=(N,),
            in_specs=in_specs,
            out_specs=pl.BlockSpec((1, hh, ww, Cout), lambda n: (n, 0, 0, 0)),
            scratch_shapes=[pltpu.VMEM((hh + 2, ww + 2, cmax), jnp.float32)],
        ),
        compiler_params=pltpu.CompilerParams(
            dimension_semantics=("parallel",)),
    )(*args)

    return jnp.transpose(out_nhwc, (0, 3, 1, 2))       # back to NCHW


# ---------------------------------------------------------------------------
# parameter init (random, matching the module's shapes)
# ---------------------------------------------------------------------------
def init_params(key, in_channels, out_channels, emb_dim):
    ks = jax.random.split(key, 6)

    def conv_w(k, cin, cout):
        return jax.random.normal(k, (3, 3, cin, cout), jnp.float32) / jnp.sqrt(9.0 * cin)

    return {
        "conv_1": {  # DoubleConv(in, in, residual=True): min_channels = in
            "w1": conv_w(ks[0], in_channels, in_channels),
            "g1": jnp.ones((in_channels,), jnp.float32),
            "b1": jnp.zeros((in_channels,), jnp.float32),
            "w2": conv_w(ks[1], in_channels, in_channels),
            "g2": jnp.ones((in_channels,), jnp.float32),
            "b2": jnp.zeros((in_channels,), jnp.float32),
        },
        "conv_2": {  # DoubleConv(in, out): min_channels = out
            "w1": conv_w(ks[2], in_channels, out_channels),
            "g1": jnp.ones((out_channels,), jnp.float32),
            "b1": jnp.zeros((out_channels,), jnp.float32),
            "w2": conv_w(ks[3], out_channels, out_channels),
            "g2": jnp.ones((out_channels,), jnp.float32),
            "b2": jnp.zeros((out_channels,), jnp.float32),
        },
        "emb_w": jax.random.normal(ks[4], (emb_dim, out_channels), jnp.float32)
                 / jnp.sqrt(float(emb_dim)),
        "emb_b": jax.random.normal(ks[5], (out_channels,), jnp.float32) * 0.01,
    }


if __name__ == "__main__":
    key = jax.random.PRNGKey(0)
    kx, kt, kp = jax.random.split(key, 3)

    N, Cin, Cout, H, W, E = 2, 4, 8, 16, 16, 256
    x = jax.random.normal(kx, (N, Cin, H, W), jnp.float32)   # NCHW, like PyTorch
    t = jax.random.normal(kt, (N, E), jnp.float32)
    params = init_params(kp, Cin, Cout, E)

    out = jax.jit(down_conv)(x, t, params)
    jax.block_until_ready(out)
    assert out.shape == (N, Cout, H // 2, W // 2)
    print("KERNEL_OK")
</pallas_src>

<mosaic_0001>
module attributes {stable_mosaic.version = 11 : i64} {
  func.func @_down_conv_kernel(%arg0: i32, %arg1: memref<1x16x8x8xf32, #tpu.memory_space<vmem>>, %arg2: memref<2x256xf32, #tpu.memory_space<vmem>>, %arg3: memref<9x4x4xf32, #tpu.memory_space<vmem>>, %arg4: memref<1x4xf32, #tpu.memory_space<vmem>>, %arg5: memref<1x4xf32, #tpu.memory_space<vmem>>, %arg6: memref<9x4x4xf32, #tpu.memory_space<vmem>>, %arg7: memref<1x4xf32, #tpu.memory_space<vmem>>, %arg8: memref<1x4xf32, #tpu.memory_space<vmem>>, %arg9: memref<9x4x8xf32, #tpu.memory_space<vmem>>, %arg10: memref<1x8xf32, #tpu.memory_space<vmem>>, %arg11: memref<1x8xf32, #tpu.memory_space<vmem>>, %arg12: memref<9x8x8xf32, #tpu.memory_space<vmem>>, %arg13: memref<1x8xf32, #tpu.memory_space<vmem>>, %arg14: memref<1x8xf32, #tpu.memory_space<vmem>>, %arg15: memref<256x8xf32, #tpu.memory_space<vmem>>, %arg16: memref<1x8xf32, #tpu.memory_space<vmem>>, %arg17: memref<1x8x8x8xf32, #tpu.memory_space<vmem>>, %arg18: memref<10x10x8xf32, #tpu.memory_space<vmem>>) attributes {dimension_semantics = [#tpu.dimension_semantics<parallel>], iteration_bounds = array<i64: 2>, scalar_prefetch = 0 : i64, scratch_operands = 1 : i64, tpu.core_type = #tpu.core_type<tc>, window_params = [{transform_indices = @transform_0, window_bounds = array<i64: 1, 16, 8, 8>}, {pipeline_mode = #tpu.pipeline_mode<synchronous>, transform_indices = @transform_1, window_bounds = array<i64: 2, 256>}, {pipeline_mode = #tpu.pipeline_mode<synchronous>, transform_indices = @transform_2, window_bounds = array<i64: 9, 4, 4>}, {pipeline_mode = #tpu.pipeline_mode<synchronous>, transform_indices = @transform_3, window_bounds = array<i64: 1, 4>}, {pipeline_mode = #tpu.pipeline_mode<synchronous>, transform_indices = @transform_4, window_bounds = array<i64: 1, 4>}, {pipeline_mode = #tpu.pipeline_mode<synchronous>, transform_indices = @transform_5, window_bounds = array<i64: 9, 4, 4>}, {pipeline_mode = #tpu.pipeline_mode<synchronous>, transform_indices = @transform_6, window_bounds = array<i64: 1, 4>}, {pipeline_mode = #tpu.pipeline_mode<synchronous>, transform_indices = @transform_7, window_bounds = array<i64: 1, 4>}, {pipeline_mode = #tpu.pipeline_mode<synchronous>, transform_indices = @transform_8, window_bounds = array<i64: 9, 4, 8>}, {pipeline_mode = #tpu.pipeline_mode<synchronous>, transform_indices = @transform_9, window_bounds = array<i64: 1, 8>}, {pipeline_mode = #tpu.pipeline_mode<synchronous>, transform_indices = @transform_10, window_bounds = array<i64: 1, 8>}, {pipeline_mode = #tpu.pipeline_mode<synchronous>, transform_indices = @transform_11, window_bounds = array<i64: 9, 8, 8>}, {pipeline_mode = #tpu.pipeline_mode<synchronous>, transform_indices = @transform_12, window_bounds = array<i64: 1, 8>}, {pipeline_mode = #tpu.pipeline_mode<synchronous>, transform_indices = @transform_13, window_bounds = array<i64: 1, 8>}, {pipeline_mode = #tpu.pipeline_mode<synchronous>, transform_indices = @transform_14, window_bounds = array<i64: 256, 8>}, {pipeline_mode = #tpu.pipeline_mode<synchronous>, transform_indices = @transform_15, window_bounds = array<i64: 1, 8>}, {transform_indices = @transform_16, window_bounds = array<i64: 1, 8, 8, 8>}]} {
    %cst = arith.constant 0.000000e+00 : f32
    %0 = vector.broadcast %cst : f32 to vector<10x10x8xf32>
    %c0 = arith.constant 0 : index
    %c0_0 = arith.constant 0 : index
    %c0_1 = arith.constant 0 : index
    %1 = vector.load %arg18[%c0, %c0_0, %c0_1] : memref<10x10x8xf32, #tpu.memory_space<vmem>>, vector<10x10x8xf32>
    tpu.vector_store %arg18[%c0, %c0_0, %c0_1], %0 {strides = array<i32>} : memref<10x10x8xf32, #tpu.memory_space<vmem>>, vector<10x10x8xf32>,
    %c0_2 = arith.constant 0 : index
    %c0_3 = arith.constant 0 : index
    %c0_4 = arith.constant 0 : index
    %c0_5 = arith.constant 0 : index
    %2 = vector.load %arg1[%c0_2, %c0_3, %c0_4, %c0_5] : memref<1x16x8x8xf32, #tpu.memory_space<vmem>>, vector<1x16x8x8xf32>
    %3 = vector.shape_cast %2 : vector<1x16x8x8xf32> to vector<16x8x8xf32>
    %4 = vector.shape_cast %3 : vector<16x8x8xf32> to vector<8x2x8x8xf32>
    %5 = vector.extract_strided_slice %4 {offsets = [0, 0, 0, 0], sizes = [8, 1, 8, 4], strides = [1, 1, 1, 1]} : vector<8x2x8x8xf32> to vector<8x1x8x4xf32>
    %6 = vector.shape_cast %5 : vector<8x1x8x4xf32> to vector<8x8x4xf32>
    %7 = vector.extract_strided_slice %4 {offsets = [0, 0, 0, 4], sizes = [8, 1, 8, 4], strides = [1, 1, 1, 1]} : vector<8x2x8x8xf32> to vector<8x1x8x4xf32>
    %8 = vector.shape_cast %7 : vector<8x1x8x4xf32> to vector<8x8x4xf32>
    %9 = arith.maximumf %6, %8 : vector<8x8x4xf32>
    %10 = vector.extract_strided_slice %4 {offsets = [0, 1, 0, 0], sizes = [8, 1, 8, 4], strides = [1, 1, 1, 1]} : vector<8x2x8x8xf32> to vector<8x1x8x4xf32>
    %11 = vector.shape_cast %10 : vector<8x1x8x4xf32> to vector<8x8x4xf32>
    %12 = vector.extract_strided_slice %4 {offsets = [0, 1, 0, 4], sizes = [8, 1, 8, 4], strides = [1, 1, 1, 1]} : vector<8x2x8x8xf32> to vector<8x1x8x4xf32>
    %13 = vector.shape_cast %12 : vector<8x1x8x4xf32> to vector<8x8x4xf32>
    %14 = arith.maximumf %11, %13 : vector<8x8x4xf32>
    %15 = arith.maximumf %9, %14 : vector<8x8x4xf32>
    %16 = vector.shape_cast %15 : vector<8x8x4xf32> to vector<64x4xf32>
    %17 = vector.shape_cast %16 : vector<64x4xf32> to vector<8x8x4xf32>
    %c1 = arith.constant 1 : index
    %c1_6 = arith.constant 1 : index
    %c0_7 = arith.constant 0 : index
    %18 = vector.load %arg18[%c1, %c1_6, %c0_7] : memref<10x10x8xf32, #tpu.memory_space<vmem>>, vector<8x8x4xf32>
    tpu.vector_store %arg18[%c1, %c1_6, %c0_7], %17 {strides = array<i32>} : memref<10x10x8xf32, #tpu.memory_space<vmem>>, vector<8x8x4xf32>,
    %c0_8 = arith.constant 0 : index
    %c0_9 = arith.constant 0 : index
    %c0_10 = arith.constant 0 : index
    %19 = vector.load %arg18[%c0_8, %c0_9, %c0_10] : memref<10x10x8xf32, #tpu.memory_space<vmem>>, vector<8x8x4xf32>
    %20 = vector.shape_cast %19 : vector<8x8x4xf32> to vector<64x4xf32>
    %c0_11 = arith.constant 0 : index
    %c0_12 = arith.constant 0 : index
    %c0_13 = arith.constant 0 : index
    %21 = vector.load %arg3[%c0_11, %c0_12, %c0_13] : memref<9x4x4xf32, #tpu.memory_space<vmem>>, vector<1x4x4xf32>
    %22 = vector.shape_cast %21 : vector<1x4x4xf32> to vector<4x4xf32>
    %cst_14 = arith.constant dense<0.000000e+00> : vector<64x4xf32>
    %23 = tpu.matmul %20, %22, %cst_14 {dimension_numbers = #tpu.dot_dimension_numbers<[1], [0], [0], [1], [0, 0, 1, 1], [], []>} : vector<64x4xf32>, vector<4x4xf32>, vector<64x4xf32> -> vector<64x4xf32>
    %c0_15 = arith.constant 0 : index
    %c1_16 = arith.constant 1 : index
    %c0_17 = arith.constant 0 : index
    %24 = vector.load %arg18[%c0_15, %c1_16, %c0_17] : memref<10x10x8xf32, #tpu.memory_space<vmem>>, vector<8x8x4xf32>
    %25 = vector.shape_cast %24 : vector<8x8x4xf32> to vector<64x4xf32>
    %c1_18 = arith.constant 1 : index
    %c0_19 = arith.constant 0 : index
    %c0_20 = arith.constant 0 : index
    %26 = vector.load %arg3[%c1_18, %c0_19, %c0_20] : memref<9x4x4xf32, #tpu.memory_space<vmem>>, vector<1x4x4xf32>
    %27 = vector.shape_cast %26 : vector<1x4x4xf32> to vector<4x4xf32>
    %cst_21 = arith.constant dense<0.000000e+00> : vector<64x4xf32>
    %28 = tpu.matmul %25, %27, %cst_21 {dimension_numbers = #tpu.dot_dimension_numbers<[1], [0], [0], [1], [0, 0, 1, 1], [], []>} : vector<64x4xf32>, vector<4x4xf32>, vector<64x4xf32> -> vector<64x4xf32>
    %29 = arith.addf %23, %28 : vector<64x4xf32>
    %c0_22 = arith.constant 0 : index
    %c2 = arith.constant 2 : index
    %c0_23 = arith.constant 0 : index
    %30 = vector.load %arg18[%c0_22, %c2, %c0_23] : memref<10x10x8xf32, #tpu.memory_space<vmem>>, vector<8x8x4xf32>
    %31 = vector.shape_cast %30 : vector<8x8x4xf32> to vector<64x4xf32>
    %c2_24 = arith.constant 2 : index
    %c0_25 = arith.constant 0 : index
    %c0_26 = arith.constant 0 : index
    %32 = vector.load %arg3[%c2_24, %c0_25, %c0_26] : memref<9x4x4xf32, #tpu.memory_space<vmem>>, vector<1x4x4xf32>
    %33 = vector.shape_cast %32 : vector<1x4x4xf32> to vector<4x4xf32>
    %cst_27 = arith.constant dense<0.000000e+00> : vector<64x4xf32>
    %34 = tpu.matmul %31, %33, %cst_27 {dimension_numbers = #tpu.dot_dimension_numbers<[1], [0], [0], [1], [0, 0, 1, 1], [], []>} : vector<64x4xf32>, vector<4x4xf32>, vector<64x4xf32> -> vector<64x4xf32>
    %35 = arith.addf %29, %34 : vector<64x4xf32>
    %c1_28 = arith.constant 1 : index
    %c0_29 = arith.constant 0 : index
    %c0_30 = arith.constant 0 : index
    %36 = vector.load %arg18[%c1_28, %c0_29, %c0_30] : memref<10x10x8xf32, #tpu.memory_space<vmem>>, vector<8x8x4xf32>
    %37 = vector.shape_cast %36 : vector<8x8x4xf32> to vector<64x4xf32>
    %c3 = arith.constant 3 : index
    %c0_31 = arith.constant 0 : index
    %c0_32 = arith.constant 0 : index
    %38 = vector.load %arg3[%c3, %c0_31, %c0_32] : memref<9x4x4xf32, #tpu.memory_space<vmem>>, vector<1x4x4xf32>
    %39 = vector.shape_cast %38 : vector<1x4x4xf32> to vector<4x4xf32>
    %cst_33 = arith.constant dense<0.000000e+00> : vector<64x4xf32>
    %40 = tpu.matmul %37, %39, %cst_33 {dimension_numbers = #tpu.dot_dimension_numbers<[1], [0], [0], [1], [0, 0, 1, 1], [], []>} : vector<64x4xf32>, vector<4x4xf32>, vector<64x4xf32> -> vector<64x4xf32>
    %41 = arith.addf %35, %40 : vector<64x4xf32>
    %c1_34 = arith.constant 1 : index
    %c1_35 = arith.constant 1 : index
    %c0_36 = arith.constant 0 : index
    %42 = vector.load %arg18[%c1_34, %c1_35, %c0_36] : memref<10x10x8xf32, #tpu.memory_space<vmem>>, vector<8x8x4xf32>
    %43 = vector.shape_cast %42 : vector<8x8x4xf32> to vector<64x4xf32>
    %c4 = arith.constant 4 : index
    %c0_37 = arith.constant 0 : index
    %c0_38 = arith.constant 0 : index
    %44 = vector.load %arg3[%c4, %c0_37, %c0_38] : memref<9x4x4xf32, #tpu.memory_space<vmem>>, vector<1x4x4xf32>
    %45 = vector.shape_cast %44 : vector<1x4x4xf32> to vector<4x4xf32>
    %cst_39 = arith.constant dense<0.000000e+00> : vector<64x4xf32>
    %46 = tpu.matmul %43, %45, %cst_39 {dimension_numbers = #tpu.dot_dimension_numbers<[1], [0], [0], [1], [0, 0, 1, 1], [], []>} : vector<64x4xf32>, vector<4x4xf32>, vector<64x4xf32> -> vector<64x4xf32>
    %47 = arith.addf %41, %46 : vector<64x4xf32>
    %c1_40 = arith.constant 1 : index
    %c2_41 = arith.constant 2 : index
    %c0_42 = arith.constant 0 : index
    %48 = vector.load %arg18[%c1_40, %c2_41, %c0_42] : memref<10x10x8xf32, #tpu.memory_space<vmem>>, vector<8x8x4xf32>
    %49 = vector.shape_cast %48 : vector<8x8x4xf32> to vector<64x4xf32>
    %c5 = arith.constant 5 : index
    %c0_43 = arith.constant 0 : index
    %c0_44 = arith.constant 0 : index
    %50 = vector.load %arg3[%c5, %c0_43, %c0_44] : memref<9x4x4xf32, #tpu.memory_space<vmem>>, vector<1x4x4xf32>
    %51 = vector.shape_cast %50 : vector<1x4x4xf32> to vector<4x4xf32>
    %cst_45 = arith.constant dense<0.000000e+00> : vector<64x4xf32>
    %52 = tpu.matmul %49, %51, %cst_45 {dimension_numbers = #tpu.dot_dimension_numbers<[1], [0], [0], [1], [0, 0, 1, 1], [], []>} : vector<64x4xf32>, vector<4x4xf32>, vector<64x4xf32> -> vector<64x4xf32>
    %53 = arith.addf %47, %52 : vector<64x4xf32>
    %c2_46 = arith.constant 2 : index
    %c0_47 = arith.constant 0 : index
    %c0_48 = arith.constant 0 : index
    %54 = vector.load %arg18[%c2_46, %c0_47, %c0_48] : memref<10x10x8xf32, #tpu.memory_space<vmem>>, vector<8x8x4xf32>
    %55 = vector.shape_cast %54 : vector<8x8x4xf32> to vector<64x4xf32>
    %c6 = arith.constant 6 : index
    %c0_49 = arith.constant 0 : index
    %c0_50 = arith.constant 0 : index
    %56 = vector.load %arg3[%c6, %c0_49, %c0_50] : memref<9x4x4xf32, #tpu.memory_space<vmem>>, vector<1x4x4xf32>
    %57 = vector.shape_cast %56 : vector<1x4x4xf32> to vector<4x4xf32>
    %cst_51 = arith.constant dense<0.000000e+00> : vector<64x4xf32>
    %58 = tpu.matmul %55, %57, %cst_51 {dimension_numbers = #tpu.dot_dimension_numbers<[1], [0], [0], [1], [0, 0, 1, 1], [], []>} : vector<64x4xf32>, vector<4x4xf32>, vector<64x4xf32> -> vector<64x4xf32>
    %59 = arith.addf %53, %58 : vector<64x4xf32>
    %c2_52 = arith.constant 2 : index
    %c1_53 = arith.constant 1 : index
    %c0_54 = arith.constant 0 : index
    %60 = vector.load %arg18[%c2_52, %c1_53, %c0_54] : memref<10x10x8xf32, #tpu.memory_space<vmem>>, vector<8x8x4xf32>
    %61 = vector.shape_cast %60 : vector<8x8x4xf32> to vector<64x4xf32>
    %c7 = arith.constant 7 : index
    %c0_55 = arith.constant 0 : index
    %c0_56 = arith.constant 0 : index
    %62 = vector.load %arg3[%c7, %c0_55, %c0_56] : memref<9x4x4xf32, #tpu.memory_space<vmem>>, vector<1x4x4xf32>
    %63 = vector.shape_cast %62 : vector<1x4x4xf32> to vector<4x4xf32>
    %cst_57 = arith.constant dense<0.000000e+00> : vector<64x4xf32>
    %64 = tpu.matmul %61, %63, %cst_57 {dimension_numbers = #tpu.dot_dimension_numbers<[1], [0], [0], [1], [0, 0, 1, 1], [], []>} : vector<64x4xf32>, vector<4x4xf32>, vector<64x4xf32> -> vector<64x4xf32>
    %65 = arith.addf %59, %64 : vector<64x4xf32>
    %c2_58 = arith.constant 2 : index
    %c2_59 = arith.constant 2 : index
    %c0_60 = arith.constant 0 : index
    %66 = vector.load %arg18[%c2_58, %c2_59, %c0_60] : memref<10x10x8xf32, #tpu.memory_space<vmem>>, vector<8x8x4xf32>
    %67 = vector.shape_cast %66 : vector<8x8x4xf32> to vector<64x4xf32>
    %c8 = arith.constant 8 : index
    %c0_61 = arith.constant 0 : index
    %c0_62 = arith.constant 0 : index
    %68 = vector.load %arg3[%c8, %c0_61, %c0_62] : memref<9x4x4xf32, #tpu.memory_space<vmem>>, vector<1x4x4xf32>
    %69 = vector.shape_cast %68 : vector<1x4x4xf32> to vector<4x4xf32>
    %cst_63 = arith.constant dense<0.000000e+00> : vector<64x4xf32>
    %70 = tpu.matmul %67, %69, %cst_63 {dimension_numbers = #tpu.dot_dimension_numbers<[1], [0], [0], [1], [0, 0, 1, 1], [], []>} : vector<64x4xf32>, vector<4x4xf32>, vector<64x4xf32> -> vector<64x4xf32>
    %71 = arith.addf %65, %70 : vector<64x4xf32>
    %72 = vector.shape_cast %71 : vector<64x4xf32> to vector<1x64x4xf32>
    %cst_64 = arith.constant dense<0.000000e+00> : vector<1xf32>
    %73 = vector.multi_reduction <add>, %72, %cst_64 [1, 2] : vector<1x64x4xf32> to vector<1xf32>
    %74 = vector.shape_cast %73 : vector<1xf32> to vector<1x1x1xf32>
    %75 = vector.extract %74[0, 0, 0] : f32 from vector<1x1x1xf32>
    %76 = vector.broadcast %75 : f32 to vector<1x1xf32>
    %cst_65 = arith.constant 2.560000e+02 : f32
    %77 = vector.broadcast %cst_65 : f32 to vector<1x1xf32>
    %78 = arith.divf %76, %77 : vector<1x1xf32>
    %79 = vector.broadcast %78 : vector<1x1xf32> to vector<64x4xf32>
    %80 = arith.subf %71, %79 : vector<64x4xf32>
    %81 = arith.mulf %80, %80 : vector<64x4xf32>
    %82 = vector.shape_cast %81 : vector<64x4xf32> to vector<1x64x4xf32>
    %cst_66 = arith.constant dense<0.000000e+00> : vector<1xf32>
    %83 = vector.multi_reduction <add>, %82, %cst_66 [1, 2] : vector<1x64x4xf32> to vector<1xf32>
    %84 = vector.shape_cast %83 : vector<1xf32> to vector<1x1x1xf32>
    %85 = vector.extract %84[0, 0, 0] : f32 from vector<1x1x1xf32>
    %86 = vector.broadcast %85 : f32 to vector<1x1xf32>
    %cst_67 = arith.constant 2.560000e+02 : f32
    %87 = vector.broadcast %cst_67 : f32 to vector<1x1xf32>
    %88 = arith.divf %86, %87 : vector<1x1xf32>
    %89 = vector.broadcast %78 : vector<1x1xf32> to vector<64x4xf32>
    %90 = arith.subf %71, %89 : vector<64x4xf32>
    %cst_68 = arith.constant 9.99999974E-6 : f32
    %91 = vector.broadcast %cst_68 : f32 to vector<1x1xf32>
    %92 = arith.addf %88, %91 : vector<1x1xf32>
    %93 = math.rsqrt %92 : vector<1x1xf32>
    %94 = vector.broadcast %93 : vector<1x1xf32> to vector<64x4xf32>
    %95 = arith.mulf %90, %94 : vector<64x4xf32>
    %c0_69 = arith.constant 0 : index
    %c0_70 = arith.constant 0 : index
    %96 = vector.load %arg4[%c0_69, %c0_70] : memref<1x4xf32, #tpu.memory_space<vmem>>, vector<1x4xf32>
    %97 = vector.broadcast %96 : vector<1x4xf32> to vector<64x4xf32>
    %98 = arith.mulf %95, %97 : vector<64x4xf32>
    %c0_71 = arith.constant 0 : index
    %c0_72 = arith.constant 0 : index
    %99 = vector.load %arg5[%c0_71, %c0_72] : memref<1x4xf32, #tpu.memory_space<vmem>>, vector<1x4xf32>
    %100 = vector.broadcast %99 : vector<1x4xf32> to vector<64x4xf32>
    %101 = arith.addf %98, %100 : vector<64x4xf32>
    %cst_73 = arith.constant 5.000000e-01 : f32
    %102 = vector.broadcast %cst_73 : f32 to vector<64x4xf32>
    %103 = arith.mulf %102, %101 : vector<64x4xf32>
    %cst_74 = arith.constant 0.707106769 : f32
    %104 = vector.broadcast %cst_74 : f32 to vector<64x4xf32>
    %105 = arith.mulf %101, %104 : vector<64x4xf32>
    %106 = math.erf %105 : vector<64x4xf32>
    %cst_75 = arith.constant 1.000000e+00 : f32
    %107 = vector.broadcast %cst_75 : f32 to vector<64x4xf32>
    %108 = arith.addf %107, %106 : vector<64x4xf32>
    %109 = arith.mulf %103, %108 : vector<64x4xf32>
    %110 = vector.shape_cast %109 : vector<64x4xf32> to vector<8x8x4xf32>
    %c1_76 = arith.constant 1 : index
    %c1_77 = arith.constant 1 : index
    %c0_78 = arith.constant 0 : index
    %111 = vector.load %arg18[%c1_76, %c1_77, %c0_78] : memref<10x10x8xf32, #tpu.memory_space<vmem>>, vector<8x8x4xf32>
    tpu.vector_store %arg18[%c1_76, %c1_77, %c0_78], %110 {strides = array<i32>} : memref<10x10x8xf32, #tpu.memory_space<vmem>>, vector<8x8x4xf32>,
    %c0_79 = arith.constant 0 : index
    %c0_80 = arith.constant 0 : index
    %c0_81 = arith.constant 0 : index
    %112 = vector.load %arg18[%c0_79, %c0_80, %c0_81] : memref<10x10x8xf32, #tpu.memory_space<vmem>>, vector<8x8x4xf32>
    %113 = vector.shape_cast %112 : vector<8x8x4xf32> to vector<64x4xf32>
    %c0_82 = arith.constant 0 : index
    %c0_83 = arith.constant 0 : index
    %c0_84 = arith.constant 0 : index
    %114 = vector.load %arg6[%c0_82, %c0_83, %c0_84] : memref<9x4x4xf32, #tpu.memory_space<vmem>>, vector<1x4x4xf32>
    %115 = vector.shape_cast %114 : vector<1x4x4xf32> to vector<4x4xf32>
    %cst_85 = arith.constant dense<0.000000e+00> : vector<64x4xf32>
    %116 = tpu.matmul %113, %115, %cst_85 {dimension_numbers = #tpu.dot_dimension_numbers<[1], [0], [0], [1], [0, 0, 1, 1], [], []>} : vector<64x4xf32>, vector<4x4xf32>, vector<64x4xf32> -> vector<64x4xf32>
    %c0_86 = arith.constant 0 : index
    %c1_87 = arith.constant 1 : index
    %c0_88 = arith.constant 0 : index
    %117 = vector.load %arg18[%c0_86, %c1_87, %c0_88] : memref<10x10x8xf32, #tpu.memory_space<vmem>>, vector<8x8x4xf32>
    %118 = vector.shape_cast %117 : vector<8x8x4xf32> to vector<64x4xf32>
    %c1_89 = arith.constant 1 : index
    %c0_90 = arith.constant 0 : index
    %c0_91 = arith.constant 0 : index
    %119 = vector.load %arg6[%c1_89, %c0_90, %c0_91] : memref<9x4x4xf32, #tpu.memory_space<vmem>>, vector<1x4x4xf32>
    %120 = vector.shape_cast %119 : vector<1x4x4xf32> to vector<4x4xf32>
    %cst_92 = arith.constant dense<0.000000e+00> : vector<64x4xf32>
    %121 = tpu.matmul %118, %120, %cst_92 {dimension_numbers = #tpu.dot_dimension_numbers<[1], [0], [0], [1], [0, 0, 1, 1], [], []>} : vector<64x4xf32>, vector<4x4xf32>, vector<64x4xf32> -> vector<64x4xf32>
    %122 = arith.addf %116, %121 : vector<64x4xf32>
    %c0_93 = arith.constant 0 : index
    %c2_94 = arith.constant 2 : index
    %c0_95 = arith.constant 0 : index
    %123 = vector.load %arg18[%c0_93, %c2_94, %c0_95] : memref<10x10x8xf32, #tpu.memory_space<vmem>>, vector<8x8x4xf32>
    %124 = vector.shape_cast %123 : vector<8x8x4xf32> to vector<64x4xf32>
    %c2_96 = arith.constant 2 : index
    %c0_97 = arith.constant 0 : index
    %c0_98 = arith.constant 0 : index
    %125 = vector.load %arg6[%c2_96, %c0_97, %c0_98] : memref<9x4x4xf32, #tpu.memory_space<vmem>>, vector<1x4x4xf32>
    %126 = vector.shape_cast %125 : vector<1x4x4xf32> to vector<4x4xf32>
    %cst_99 = arith.constant dense<0.000000e+00> : vector<64x4xf32>
    %127 = tpu.matmul %124, %126, %cst_99 {dimension_numbers = #tpu.dot_dimension_numbers<[1], [0], [0], [1], [0, 0, 1, 1], [], []>} : vector<64x4xf32>, vector<4x4xf32>, vector<64x4xf32> -> vector<64x4xf32>
    %128 = arith.addf %122, %127 : vector<64x4xf32>
    %c1_100 = arith.constant 1 : index
    %c0_101 = arith.constant 0 : index
    %c0_102 = arith.constant 0 : index
    %129 = vector.load %arg18[%c1_100, %c0_101, %c0_102] : memref<10x10x8xf32, #tpu.memory_space<vmem>>, vector<8x8x4xf32>
    %130 = vector.shape_cast %129 : vector<8x8x4xf32> to vector<64x4xf32>
    %c3_103 = arith.constant 3 : index
    %c0_104 = arith.constant 0 : index
    %c0_105 = arith.constant 0 : index
    %131 = vector.load %arg6[%c3_103, %c0_104, %c0_105] : memref<9x4x4xf32, #tpu.memory_space<vmem>>, vector<1x4x4xf32>
    %132 = vector.shape_cast %131 : vector<1x4x4xf32> to vector<4x4xf32>
    %cst_106 = arith.constant dense<0.000000e+00> : vector<64x4xf32>
    %133 = tpu.matmul %130, %132, %cst_106 {dimension_numbers = #tpu.dot_dimension_numbers<[1], [0], [0], [1], [0, 0, 1, 1], [], []>} : vector<64x4xf32>, vector<4x4xf32>, vector<64x4xf32> -> vector<64x4xf32>
    %134 = arith.addf %128, %133 : vector<64x4xf32>
    %c1_107 = arith.constant 1 : index
    %c1_108 = arith.constant 1 : index
    %c0_109 = arith.constant 0 : index
    %135 = vector.load %arg18[%c1_107, %c1_108, %c0_109] : memref<10x10x8xf32, #tpu.memory_space<vmem>>, vector<8x8x4xf32>
    %136 = vector.shape_cast %135 : vector<8x8x4xf32> to vector<64x4xf32>
    %c4_110 = arith.constant 4 : index
    %c0_111 = arith.constant 0 : index
    %c0_112 = arith.constant 0 : index
    %137 = vector.load %arg6[%c4_110, %c0_111, %c0_112] : memref<9x4x4xf32, #tpu.memory_space<vmem>>, vector<1x4x4xf32>
    %138 = vector.shape_cast %137 : vector<1x4x4xf32> to vector<4x4xf32>
    %cst_113 = arith.constant dense<0.000000e+00> : vector<64x4xf32>
    %139 = tpu.matmul %136, %138, %cst_113 {dimension_numbers = #tpu.dot_dimension_numbers<[1], [0], [0], [1], [0, 0, 1, 1], [], []>} : vector<64x4xf32>, vector<4x4xf32>, vector<64x4xf32> -> vector<64x4xf32>
    %140 = arith.addf %134, %139 : vector<64x4xf32>
    %c1_114 = arith.constant 1 : index
    %c2_115 = arith.constant 2 : index
    %c0_116 = arith.constant 0 : index
    %141 = vector.load %arg18[%c1_114, %c2_115, %c0_116] : memref<10x10x8xf32, #tpu.memory_space<vmem>>, vector<8x8x4xf32>
    %142 = vector.shape_cast %141 : vector<8x8x4xf32> to vector<64x4xf32>
    %c5_117 = arith.constant 5 : index
    %c0_118 = arith.constant 0 : index
    %c0_119 = arith.constant 0 : index
    %143 = vector.load %arg6[%c5_117, %c0_118, %c0_119] : memref<9x4x4xf32, #tpu.memory_space<vmem>>, vector<1x4x4xf32>
    %144 = vector.shape_cast %143 : vector<1x4x4xf32> to vector<4x4xf32>
    %cst_120 = arith.constant dense<0.000000e+00> : vector<64x4xf32>
    %145 = tpu.matmul %142, %144, %cst_120 {dimension_numbers = #tpu.dot_dimension_numbers<[1], [0], [0], [1], [0, 0, 1, 1], [], []>} : vector<64x4xf32>, vector<4x4xf32>, vector<64x4xf32> -> vector<64x4xf32>
    %146 = arith.addf %140, %145 : vector<64x4xf32>
    %c2_121 = arith.constant 2 : index
    %c0_122 = arith.constant 0 : index
    %c0_123 = arith.constant 0 : index
    %147 = vector.load %arg18[%c2_121, %c0_122, %c0_123] : memref<10x10x8xf32, #tpu.memory_space<vmem>>, vector<8x8x4xf32>
    %148 = vector.shape_cast %147 : vector<8x8x4xf32> to vector<64x4xf32>
    %c6_124 = arith.constant 6 : index
    %c0_125 = arith.constant 0 : index
    %c0_126 = arith.constant 0 : index
    %149 = vector.load %arg6[%c6_124, %c0_125, %c0_126] : memref<9x4x4xf32, #tpu.memory_space<vmem>>, vector<1x4x4xf32>
    %150 = vector.shape_cast %149 : vector<1x4x4xf32> to vector<4x4xf32>
    %cst_127 = arith.constant dense<0.000000e+00> : vector<64x4xf32>
    %151 = tpu.matmul %148, %150, %cst_127 {dimension_numbers = #tpu.dot_dimension_numbers<[1], [0], [0], [1], [0, 0, 1, 1], [], []>} : vector<64x4xf32>, vector<4x4xf32>, vector<64x4xf32> -> vector<64x4xf32>
    %152 = arith.addf %146, %151 : vector<64x4xf32>
    %c2_128 = arith.constant 2 : index
    %c1_129 = arith.constant 1 : index
    %c0_130 = arith.constant 0 : index
    %153 = vector.load %arg18[%c2_128, %c1_129, %c0_130] : memref<10x10x8xf32, #tpu.memory_space<vmem>>, vector<8x8x4xf32>
    %154 = vector.shape_cast %153 : vector<8x8x4xf32> to vector<64x4xf32>
    %c7_131 = arith.constant 7 : index
    %c0_132 = arith.constant 0 : index
    %c0_133 = arith.constant 0 : index
    %155 = vector.load %arg6[%c7_131, %c0_132, %c0_133] : memref<9x4x4xf32, #tpu.memory_space<vmem>>, vector<1x4x4xf32>
    %156 = vector.shape_cast %155 : vector<1x4x4xf32> to vector<4x4xf32>
    %cst_134 = arith.constant dense<0.000000e+00> : vector<64x4xf32>
    %157 = tpu.matmul %154, %156, %cst_134 {dimension_numbers = #tpu.dot_dimension_numbers<[1], [0], [0], [1], [0, 0, 1, 1], [], []>} : vector<64x4xf32>, vector<4x4xf32>, vector<64x4xf32> -> vector<64x4xf32>
    %158 = arith.addf %152, %157 : vector<64x4xf32>
    %c2_135 = arith.constant 2 : index
    %c2_136 = arith.constant 2 : index
    %c0_137 = arith.constant 0 : index
    %159 = vector.load %arg18[%c2_135, %c2_136, %c0_137] : memref<10x10x8xf32, #tpu.memory_space<vmem>>, vector<8x8x4xf32>
    %160 = vector.shape_cast %159 : vector<8x8x4xf32> to vector<64x4xf32>
    %c8_138 = arith.constant 8 : index
    %c0_139 = arith.constant 0 : index
    %c0_140 = arith.constant 0 : index
    %161 = vector.load %arg6[%c8_138, %c0_139, %c0_140] : memref<9x4x4xf32, #tpu.memory_space<vmem>>, vector<1x4x4xf32>
    %162 = vector.shape_cast %161 : vector<1x4x4xf32> to vector<4x4xf32>
    %cst_141 = arith.constant dense<0.000000e+00> : vector<64x4xf32>
    %163 = tpu.matmul %160, %162, %cst_141 {dimension_numbers = #tpu.dot_dimension_numbers<[1], [0], [0], [1], [0, 0, 1, 1], [], []>} : vector<64x4xf32>, vector<4x4xf32>, vector<64x4xf32> -> vector<64x4xf32>
    %164 = arith.addf %158, %163 : vector<64x4xf32>
    %165 = vector.shape_cast %164 : vector<64x4xf32> to vector<1x64x4xf32>
    %cst_142 = arith.constant dense<0.000000e+00> : vector<1xf32>
    %166 = vector.multi_reduction <add>, %165, %cst_142 [1, 2] : vector<1x64x4xf32> to vector<1xf32>
    %167 = vector.shape_cast %166 : vector<1xf32> to vector<1x1x1xf32>
    %168 = vector.extract %167[0, 0, 0] : f32 from vector<1x1x1xf32>
    %169 = vector.broadcast %168 : f32 to vector<1x1xf32>
    %cst_143 = arith.constant 2.560000e+02 : f32
    %170 = vector.broadcast %cst_143 : f32 to vector<1x1xf32>
    %171 = arith.divf %169, %170 : vector<1x1xf32>
    %172 = vector.broadcast %171 : vector<1x1xf32> to vector<64x4xf32>
    %173 = arith.subf %164, %172 : vector<64x4xf32>
    %174 = arith.mulf %173, %173 : vector<64x4xf32>
    %175 = vector.shape_cast %174 : vector<64x4xf32> to vector<1x64x4xf32>
    %cst_144 = arith.constant dense<0.000000e+00> : vector<1xf32>
    %176 = vector.multi_reduction <add>, %175, %cst_144 [1, 2] : vector<1x64x4xf32> to vector<1xf32>
    %177 = vector.shape_cast %176 : vector<1xf32> to vector<1x1x1xf32>
    %178 = vector.extract %177[0, 0, 0] : f32 from vector<1x1x1xf32>
    %179 = vector.broadcast %178 : f32 to vector<1x1xf32>
    %cst_145 = arith.constant 2.560000e+02 : f32
    %180 = vector.broadcast %cst_145 : f32 to vector<1x1xf32>
    %181 = arith.divf %179, %180 : vector<1x1xf32>
    %182 = vector.broadcast %171 : vector<1x1xf32> to vector<64x4xf32>
    %183 = arith.subf %164, %182 : vector<64x4xf32>
    %cst_146 = arith.constant 9.99999974E-6 : f32
    %184 = vector.broadcast %cst_146 : f32 to vector<1x1xf32>
    %185 = arith.addf %181, %184 : vector<1x1xf32>
    %186 = math.rsqrt %185 : vector<1x1xf32>
    %187 = vector.broadcast %186 : vector<1x1xf32> to vector<64x4xf32>
    %188 = arith.mulf %183, %187 : vector<64x4xf32>
    %c0_147 = arith.constant 0 : index
    %c0_148 = arith.constant 0 : index
    %189 = vector.load %arg7[%c0_147, %c0_148] : memref<1x4xf32, #tpu.memory_space<vmem>>, vector<1x4xf32>
    %190 = vector.broadcast %189 : vector<1x4xf32> to vector<64x4xf32>
    %191 = arith.mulf %188, %190 : vector<64x4xf32>
    %c0_149 = arith.constant 0 : index
    %c0_150 = arith.constant 0 : index
    %192 = vector.load %arg8[%c0_149, %c0_150] : memref<1x4xf32, #tpu.memory_space<vmem>>, vector<1x4xf32>
    %193 = vector.broadcast %192 : vector<1x4xf32> to vector<64x4xf32>
    %194 = arith.addf %191, %193 : vector<64x4xf32>
    %195 = arith.addf %16, %194 : vector<64x4xf32>
    %cst_151 = arith.constant 5.000000e-01 : f32
    %196 = vector.broadcast %cst_151 : f32 to vector<64x4xf32>
    %197 = arith.mulf %196, %195 : vector<64x4xf32>
    %cst_152 = arith.constant 0.707106769 : f32
    %198 = vector.broadcast %cst_152 : f32 to vector<64x4xf32>
    %199 = arith.mulf %195, %198 : vector<64x4xf32>
    %200 = math.erf %199 : vector<64x4xf32>
    %cst_153 = arith.constant 1.000000e+00 : f32
    %201 = vector.broadcast %cst_153 : f32 to vector<64x4xf32>
    %202 = arith.addf %201, %200 : vector<64x4xf32>
    %203 = arith.mulf %197, %202 : vector<64x4xf32>
    %204 = vector.shape_cast %203 : vector<64x4xf32> to vector<8x8x4xf32>
    %c1_154 = arith.constant 1 : index
    %c1_155 = arith.constant 1 : index
    %c0_156 = arith.constant 0 : index
    %205 = vector.load %arg18[%c1_154, %c1_155, %c0_156] : memref<10x10x8xf32, #tpu.memory_space<vmem>>, vector<8x8x4xf32>
    tpu.vector_store %arg18[%c1_154, %c1_155, %c0_156], %204 {strides = array<i32>} : memref<10x10x8xf32, #tpu.memory_space<vmem>>, vector<8x8x4xf32>,
    %c0_157 = arith.constant 0 : index
    %c0_158 = arith.constant 0 : index
    %c0_159 = arith.constant 0 : index
    %206 = vector.load %arg18[%c0_157, %c0_158, %c0_159] : memref<10x10x8xf32, #tpu.memory_space<vmem>>, vector<8x8x4xf32>
    %207 = vector.shape_cast %206 : vector<8x8x4xf32> to vector<64x4xf32>
    %c0_160 = arith.constant 0 : index
    %c0_161 = arith.constant 0 : index
    %c0_162 = arith.constant 0 : index
    %208 = vector.load %arg9[%c0_160, %c0_161, %c0_162] : memref<9x4x8xf32, #tpu.memory_space<vmem>>, vector<1x4x8xf32>
    %209 = vector.shape_cast %208 : vector<1x4x8xf32> to vector<4x8xf32>
    %cst_163 = arith.constant dense<0.000000e+00> : vector<64x8xf32>
    %210 = tpu.matmul %207, %209, %cst_163 {dimension_numbers = #tpu.dot_dimension_numbers<[1], [0], [0], [1], [0, 0, 1, 1], [], []>} : vector<64x4xf32>, vector<4x8xf32>, vector<64x8xf32> -> vector<64x8xf32>
    %c0_164 = arith.constant 0 : index
    %c1_165 = arith.constant 1 : index
    %c0_166 = arith.constant 0 : index
    %211 = vector.load %arg18[%c0_164, %c1_165, %c0_166] : memref<10x10x8xf32, #tpu.memory_space<vmem>>, vector<8x8x4xf32>
    %212 = vector.shape_cast %211 : vector<8x8x4xf32> to vector<64x4xf32>
    %c1_167 = arith.constant 1 : index
    %c0_168 = arith.constant 0 : index
    %c0_169 = arith.constant 0 : index
    %213 = vector.load %arg9[%c1_167, %c0_168, %c0_169] : memref<9x4x8xf32, #tpu.memory_space<vmem>>, vector<1x4x8xf32>
    %214 = vector.shape_cast %213 : vector<1x4x8xf32> to vector<4x8xf32>
    %cst_170 = arith.constant dense<0.000000e+00> : vector<64x8xf32>
    %215 = tpu.matmul %212, %214, %cst_170 {dimension_numbers = #tpu.dot_dimension_numbers<[1], [0], [0], [1], [0, 0, 1, 1], [], []>} : vector<64x4xf32>, vector<4x8xf32>, vector<64x8xf32> -> vector<64x8xf32>
    %216 = arith.addf %210, %215 : vector<64x8xf32>
    %c0_171 = arith.constant 0 : index
    %c2_172 = arith.constant 2 : index
    %c0_173 = arith.constant 0 : index
    %217 = vector.load %arg18[%c0_171, %c2_172, %c0_173] : memref<10x10x8xf32, #tpu.memory_space<vmem>>, vector<8x8x4xf32>
    %218 = vector.shape_cast %217 : vector<8x8x4xf32> to vector<64x4xf32>
    %c2_174 = arith.constant 2 : index
    %c0_175 = arith.constant 0 : index
    %c0_176 = arith.constant 0 : index
    %219 = vector.load %arg9[%c2_174, %c0_175, %c0_176] : memref<9x4x8xf32, #tpu.memory_space<vmem>>, vector<1x4x8xf32>
    %220 = vector.shape_cast %219 : vector<1x4x8xf32> to vector<4x8xf32>
    %cst_177 = arith.constant dense<0.000000e+00> : vector<64x8xf32>
    %221 = tpu.matmul %218, %220, %cst_177 {dimension_numbers = #tpu.dot_dimension_numbers<[1], [0], [0], [1], [0, 0, 1, 1], [], []>} : vector<64x4xf32>, vector<4x8xf32>, vector<64x8xf32> -> vector<64x8xf32>
    %222 = arith.addf %216, %221 : vector<64x8xf32>
    %c1_178 = arith.constant 1 : index
    %c0_179 = arith.constant 0 : index
    %c0_180 = arith.constant 0 : index
    %223 = vector.load %arg18[%c1_178, %c0_179, %c0_180] : memref<10x10x8xf32, #tpu.memory_space<vmem>>, vector<8x8x4xf32>
    %224 = vector.shape_cast %223 : vector<8x8x4xf32> to vector<64x4xf32>
    %c3_181 = arith.constant 3 : index
    %c0_182 = arith.constant 0 : index
    %c0_183 = arith.constant 0 : index
    %225 = vector.load %arg9[%c3_181, %c0_182, %c0_183] : memref<9x4x8xf32, #tpu.memory_space<vmem>>, vector<1x4x8xf32>
    %226 = vector.shape_cast %225 : vector<1x4x8xf32> to vector<4x8xf32>
    %cst_184 = arith.constant dense<0.000000e+00> : vector<64x8xf32>
    %227 = tpu.matmul %224, %226, %cst_184 {dimension_numbers = #tpu.dot_dimension_numbers<[1], [0], [0], [1], [0, 0, 1, 1], [], []>} : vector<64x4xf32>, vector<4x8xf32>, vector<64x8xf32> -> vector<64x8xf32>
    %228 = arith.addf %222, %227 : vector<64x8xf32>
    %c1_185 = arith.constant 1 : index
    %c1_186 = arith.constant 1 : index
    %c0_187 = arith.constant 0 : index
    %229 = vector.load %arg18[%c1_185, %c1_186, %c0_187] : memref<10x10x8xf32, #tpu.memory_space<vmem>>, vector<8x8x4xf32>
    %230 = vector.shape_cast %229 : vector<8x8x4xf32> to vector<64x4xf32>
    %c4_188 = arith.constant 4 : index
    %c0_189 = arith.constant 0 : index
    %c0_190 = arith.constant 0 : index
    %231 = vector.load %arg9[%c4_188, %c0_189, %c0_190] : memref<9x4x8xf32, #tpu.memory_space<vmem>>, vector<1x4x8xf32>
    %232 = vector.shape_cast %231 : vector<1x4x8xf32> to vector<4x8xf32>
    %cst_191 = arith.constant dense<0.000000e+00> : vector<64x8xf32>
    %233 = tpu.matmul %230, %232, %cst_191 {dimension_numbers = #tpu.dot_dimension_numbers<[1], [0], [0], [1], [0, 0, 1, 1], [], []>} : vector<64x4xf32>, vector<4x8xf32>, vector<64x8xf32> -> vector<64x8xf32>
    %234 = arith.addf %228, %233 : vector<64x8xf32>
    %c1_192 = arith.constant 1 : index
    %c2_193 = arith.constant 2 : index
    %c0_194 = arith.constant 0 : index
    %235 = vector.load %arg18[%c1_192, %c2_193, %c0_194] : memref<10x10x8xf32, #tpu.memory_space<vmem>>, vector<8x8x4xf32>
    %236 = vector.shape_cast %235 : vector<8x8x4xf32> to vector<64x4xf32>
    %c5_195 = arith.constant 5 : index
    %c0_196 = arith.constant 0 : index
    %c0_197 = arith.constant 0 : index
    %237 = vector.load %arg9[%c5_195, %c0_196, %c0_197] : memref<9x4x8xf32, #tpu.memory_space<vmem>>, vector<1x4x8xf32>
    %238 = vector.shape_cast %237 : vector<1x4x8xf32> to vector<4x8xf32>
    %cst_198 = arith.constant dense<0.000000e+00> : vector<64x8xf32>
    %239 = tpu.matmul %236, %238, %cst_198 {dimension_numbers = #tpu.dot_dimension_numbers<[1], [0], [0], [1], [0, 0, 1, 1], [], []>} : vector<64x4xf32>, vector<4x8xf32>, vector<64x8xf32> -> vector<64x8xf32>
    %240 = arith.addf %234, %239 : vector<64x8xf32>
    %c2_199 = arith.constant 2 : index
    %c0_200 = arith.constant 0 : index
    %c0_201 = arith.constant 0 : index
    %241 = vector.load %arg18[%c2_199, %c0_200, %c0_201] : memref<10x10x8xf32, #tpu.memory_space<vmem>>, vector<8x8x4xf32>
    %242 = vector.shape_cast %241 : vector<8x8x4xf32> to vector<64x4xf32>
    %c6_202 = arith.constant 6 : index
    %c0_203 = arith.constant 0 : index
    %c0_204 = arith.constant 0 : index
    %243 = vector.load %arg9[%c6_202, %c0_203, %c0_204] : memref<9x4x8xf32, #tpu.memory_space<vmem>>, vector<1x4x8xf32>
    %244 = vector.shape_cast %243 : vector<1x4x8xf32> to vector<4x8xf32>
    %cst_205 = arith.constant dense<0.000000e+00> : vector<64x8xf32>
    %245 = tpu.matmul %242, %244, %cst_205 {dimension_numbers = #tpu.dot_dimension_numbers<[1], [0], [0], [1], [0, 0, 1, 1], [], []>} : vector<64x4xf32>, vector<4x8xf32>, vector<64x8xf32> -> vector<64x8xf32>
    %246 = arith.addf %240, %245 : vector<64x8xf32>
    %c2_206 = arith.constant 2 : index
    %c1_207 = arith.constant 1 : index
    %c0_208 = arith.constant 0 : index
    %247 = vector.load %arg18[%c2_206, %c1_207, %c0_208] : memref<10x10x8xf32, #tpu.memory_space<vmem>>, vector<8x8x4xf32>
    %248 = vector.shape_cast %247 : vector<8x8x4xf32> to vector<64x4xf32>
    %c7_209 = arith.constant 7 : index
    %c0_210 = arith.constant 0 : index
    %c0_211 = arith.constant 0 : index
    %249 = vector.load %arg9[%c7_209, %c0_210, %c0_211] : memref<9x4x8xf32, #tpu.memory_space<vmem>>, vector<1x4x8xf32>
    %250 = vector.shape_cast %249 : vector<1x4x8xf32> to vector<4x8xf32>
    %cst_212 = arith.constant dense<0.000000e+00> : vector<64x8xf32>
    %251 = tpu.matmul %248, %250, %cst_212 {dimension_numbers = #tpu.dot_dimension_numbers<[1], [0], [0], [1], [0, 0, 1, 1], [], []>} : vector<64x4xf32>, vector<4x8xf32>, vector<64x8xf32> -> vector<64x8xf32>
    %252 = arith.addf %246, %251 : vector<64x8xf32>
    %c2_213 = arith.constant 2 : index
    %c2_214 = arith.constant 2 : index
    %c0_215 = arith.constant 0 : index
    %253 = vector.load %arg18[%c2_213, %c2_214, %c0_215] : memref<10x10x8xf32, #tpu.memory_space<vmem>>, vector<8x8x4xf32>
    %254 = vector.shape_cast %253 : vector<8x8x4xf32> to vector<64x4xf32>
    %c8_216 = arith.constant 8 : index
    %c0_217 = arith.constant 0 : index
    %c0_218 = arith.constant 0 : index
    %255 = vector.load %arg9[%c8_216, %c0_217, %c0_218] : memref<9x4x8xf32, #tpu.memory_space<vmem>>, vector<1x4x8xf32>
    %256 = vector.shape_cast %255 : vector<1x4x8xf32> to vector<4x8xf32>
    %cst_219 = arith.constant dense<0.000000e+00> : vector<64x8xf32>
    %257 = tpu.matmul %254, %256, %cst_219 {dimension_numbers = #tpu.dot_dimension_numbers<[1], [0], [0], [1], [0, 0, 1, 1], [], []>} : vector<64x4xf32>, vector<4x8xf32>, vector<64x8xf32> -> vector<64x8xf32>
    %258 = arith.addf %252, %257 : vector<64x8xf32>
    %259 = vector.shape_cast %258 : vector<64x8xf32> to vector<1x64x8xf32>
    %cst_220 = arith.constant dense<0.000000e+00> : vector<1xf32>
    %260 = vector.multi_reduction <add>, %259, %cst_220 [1, 2] : vector<1x64x8xf32> to vector<1xf32>
    %261 = vector.shape_cast %260 : vector<1xf32> to vector<1x1x1xf32>
    %262 = vector.extract %261[0, 0, 0] : f32 from vector<1x1x1xf32>
    %263 = vector.broadcast %262 : f32 to vector<1x1xf32>
    %cst_221 = arith.constant 5.120000e+02 : f32
    %264 = vector.broadcast %cst_221 : f32 to vector<1x1xf32>
    %265 = arith.divf %263, %264 : vector<1x1xf32>
    %266 = vector.broadcast %265 : vector<1x1xf32> to vector<64x8xf32>
    %267 = arith.subf %258, %266 : vector<64x8xf32>
    %268 = arith.mulf %267, %267 : vector<64x8xf32>
    %269 = vector.shape_cast %268 : vector<64x8xf32> to vector<1x64x8xf32>
    %cst_222 = arith.constant dense<0.000000e+00> : vector<1xf32>
    %270 = vector.multi_reduction <add>, %269, %cst_222 [1, 2] : vector<1x64x8xf32> to vector<1xf32>
    %271 = vector.shape_cast %270 : vector<1xf32> to vector<1x1x1xf32>
    %272 = vector.extract %271[0, 0, 0] : f32 from vector<1x1x1xf32>
    %273 = vector.broadcast %272 : f32 to vector<1x1xf32>
    %cst_223 = arith.constant 5.120000e+02 : f32
    %274 = vector.broadcast %cst_223 : f32 to vector<1x1xf32>
    %275 = arith.divf %273, %274 : vector<1x1xf32>
    %276 = vector.broadcast %265 : vector<1x1xf32> to vector<64x8xf32>
    %277 = arith.subf %258, %276 : vector<64x8xf32>
    %cst_224 = arith.constant 9.99999974E-6 : f32
    %278 = vector.broadcast %cst_224 : f32 to vector<1x1xf32>
    %279 = arith.addf %275, %278 : vector<1x1xf32>
    %280 = math.rsqrt %279 : vector<1x1xf32>
    %281 = vector.broadcast %280 : vector<1x1xf32> to vector<64x8xf32>
    %282 = arith.mulf %277, %281 : vector<64x8xf32>
    %c0_225 = arith.constant 0 : index
    %c0_226 = arith.constant 0 : index
    %283 = vector.load %arg10[%c0_225, %c0_226] : memref<1x8xf32, #tpu.memory_space<vmem>>, vector<1x8xf32>
    %284 = vector.broadcast %283 : vector<1x8xf32> to vector<64x8xf32>
    %285 = arith.mulf %282, %284 : vector<64x8xf32>
    %c0_227 = arith.constant 0 : index
    %c0_228 = arith.constant 0 : index
    %286 = vector.load %arg11[%c0_227, %c0_228] : memref<1x8xf32, #tpu.memory_space<vmem>>, vector<1x8xf32>
    %287 = vector.broadcast %286 : vector<1x8xf32> to vector<64x8xf32>
    %288 = arith.addf %285, %287 : vector<64x8xf32>
    %cst_229 = arith.constant 5.000000e-01 : f32
    %289 = vector.broadcast %cst_229 : f32 to vector<64x8xf32>
    %290 = arith.mulf %289, %288 : vector<64x8xf32>
    %cst_230 = arith.constant 0.707106769 : f32
    %291 = vector.broadcast %cst_230 : f32 to vector<64x8xf32>
    %292 = arith.mulf %288, %291 : vector<64x8xf32>
    %293 = math.erf %292 : vector<64x8xf32>
    %cst_231 = arith.constant 1.000000e+00 : f32
    %294 = vector.broadcast %cst_231 : f32 to vector<64x8xf32>
    %295 = arith.addf %294, %293 : vector<64x8xf32>
    %296 = arith.mulf %290, %295 : vector<64x8xf32>
    %297 = vector.shape_cast %296 : vector<64x8xf32> to vector<8x8x8xf32>
    %c1_232 = arith.constant 1 : index
    %c1_233 = arith.constant 1 : index
    %c0_234 = arith.constant 0 : index
    %298 = vector.load %arg18[%c1_232, %c1_233, %c0_234] : memref<10x10x8xf32, #tpu.memory_space<vmem>>, vector<8x8x8xf32>
    tpu.vector_store %arg18[%c1_232, %c1_233, %c0_234], %297 {strides = array<i32>} : memref<10x10x8xf32, #tpu.memory_space<vmem>>, vector<8x8x8xf32>,
    %c0_235 = arith.constant 0 : index
    %c0_236 = arith.constant 0 : index
    %c0_237 = arith.constant 0 : index
    %299 = vector.load %arg18[%c0_235, %c0_236, %c0_237] : memref<10x10x8xf32, #tpu.memory_space<vmem>>, vector<8x8x8xf32>
    %300 = vector.shape_cast %299 : vector<8x8x8xf32> to vector<64x8xf32>
    %c0_238 = arith.constant 0 : index
    %c0_239 = arith.constant 0 : index
    %c0_240 = arith.constant 0 : index
    %301 = vector.load %arg12[%c0_238, %c0_239, %c0_240] : memref<9x8x8xf32, #tpu.memory_space<vmem>>, vector<1x8x8xf32>
    %302 = vector.shape_cast %301 : vector<1x8x8xf32> to vector<8x8xf32>
    %cst_241 = arith.constant dense<0.000000e+00> : vector<64x8xf32>
    %303 = tpu.matmul %300, %302, %cst_241 {dimension_numbers = #tpu.dot_dimension_numbers<[1], [0], [0], [1], [0, 0, 1, 1], [], []>} : vector<64x8xf32>, vector<8x8xf32>, vector<64x8xf32> -> vector<64x8xf32>
    %c0_242 = arith.constant 0 : index
    %c1_243 = arith.constant 1 : index
    %c0_244 = arith.constant 0 : index
    %304 = vector.load %arg18[%c0_242, %c1_243, %c0_244] : memref<10x10x8xf32, #tpu.memory_space<vmem>>, vector<8x8x8xf32>
    %305 = vector.shape_cast %304 : vector<8x8x8xf32> to vector<64x8xf32>
    %c1_245 = arith.constant 1 : index
    %c0_246 = arith.constant 0 : index
    %c0_247 = arith.constant 0 : index
    %306 = vector.load %arg12[%c1_245, %c0_246, %c0_247] : memref<9x8x8xf32, #tpu.memory_space<vmem>>, vector<1x8x8xf32>
    %307 = vector.shape_cast %306 : vector<1x8x8xf32> to vector<8x8xf32>
    %cst_248 = arith.constant dense<0.000000e+00> : vector<64x8xf32>
    %308 = tpu.matmul %305, %307, %cst_248 {dimension_numbers = #tpu.dot_dimension_numbers<[1], [0], [0], [1], [0, 0, 1, 1], [], []>} : vector<64x8xf32>, vector<8x8xf32>, vector<64x8xf32> -> vector<64x8xf32>
    %309 = arith.addf %303, %308 : vector<64x8xf32>
    %c0_249 = arith.constant 0 : index
    %c2_250 = arith.constant 2 : index
    %c0_251 = arith.constant 0 : index
    %310 = vector.load %arg18[%c0_249, %c2_250, %c0_251] : memref<10x10x8xf32, #tpu.memory_space<vmem>>, vector<8x8x8xf32>
    %311 = vector.shape_cast %310 : vector<8x8x8xf32> to vector<64x8xf32>
    %c2_252 = arith.constant 2 : index
    %c0_253 = arith.constant 0 : index
    %c0_254 = arith.constant 0 : index
    %312 = vector.load %arg12[%c2_252, %c0_253, %c0_254] : memref<9x8x8xf32, #tpu.memory_space<vmem>>, vector<1x8x8xf32>
    %313 = vector.shape_cast %312 : vector<1x8x8xf32> to vector<8x8xf32>
    %cst_255 = arith.constant dense<0.000000e+00> : vector<64x8xf32>
    %314 = tpu.matmul %311, %313, %cst_255 {dimension_numbers = #tpu.dot_dimension_numbers<[1], [0], [0], [1], [0, 0, 1, 1], [], []>} : vector<64x8xf32>, vector<8x8xf32>, vector<64x8xf32> -> vector<64x8xf32>
    %315 = arith.addf %309, %314 : vector<64x8xf32>
    %c1_256 = arith.constant 1 : index
    %c0_257 = arith.constant 0 : index
    %c0_258 = arith.constant 0 : index
    %316 = vector.load %arg18[%c1_256, %c0_257, %c0_258] : memref<10x10x8xf32, #tpu.memory_space<vmem>>, vector<8x8x8xf32>
    %317 = vector.shape_cast %316 : vector<8x8x8xf32> to vector<64x8xf32>
    %c3_259 = arith.constant 3 : index
    %c0_260 = arith.constant 0 : index
    %c0_261 = arith.constant 0 : index
    %318 = vector.load %arg12[%c3_259, %c0_260, %c0_261] : memref<9x8x8xf32, #tpu.memory_space<vmem>>, vector<1x8x8xf32>
    %319 = vector.shape_cast %318 : vector<1x8x8xf32> to vector<8x8xf32>
    %cst_262 = arith.constant dense<0.000000e+00> : vector<64x8xf32>
    %320 = tpu.matmul %317, %319, %cst_262 {dimension_numbers = #tpu.dot_dimension_numbers<[1], [0], [0], [1], [0, 0, 1, 1], [], []>} : vector<64x8xf32>, vector<8x8xf32>, vector<64x8xf32> -> vector<64x8xf32>
    %321 = arith.addf %315, %320 : vector<64x8xf32>
    %c1_263 = arith.constant 1 : index
    %c1_264 = arith.constant 1 : index
    %c0_265 = arith.constant 0 : index
    %322 = vector.load %arg18[%c1_263, %c1_264, %c0_265] : memref<10x10x8xf32, #tpu.memory_space<vmem>>, vector<8x8x8xf32>
    %323 = vector.shape_cast %322 : vector<8x8x8xf32> to vector<64x8xf32>
    %c4_266 = arith.constant 4 : index
    %c0_267 = arith.constant 0 : index
    %c0_268 = arith.constant 0 : index
    %324 = vector.load %arg12[%c4_266, %c0_267, %c0_268] : memref<9x8x8xf32, #tpu.memory_space<vmem>>, vector<1x8x8xf32>
    %325 = vector.shape_cast %324 : vector<1x8x8xf32> to vector<8x8xf32>
    %cst_269 = arith.constant dense<0.000000e+00> : vector<64x8xf32>
    %326 = tpu.matmul %323, %325, %cst_269 {dimension_numbers = #tpu.dot_dimension_numbers<[1], [0], [0], [1], [0, 0, 1, 1], [], []>} : vector<64x8xf32>, vector<8x8xf32>, vector<64x8xf32> -> vector<64x8xf32>
    %327 = arith.addf %321, %326 : vector<64x8xf32>
    %c1_270 = arith.constant 1 : index
    %c2_271 = arith.constant 2 : index
    %c0_272 = arith.constant 0 : index
    %328 = vector.load %arg18[%c1_270, %c2_271, %c0_272] : memref<10x10x8xf32, #tpu.memory_space<vmem>>, vector<8x8x8xf32>
    %329 = vector.shape_cast %328 : vector<8x8x8xf32> to vector<64x8xf32>
    %c5_273 = arith.constant 5 : index
    %c0_274 = arith.constant 0 : index
    %c0_275 = arith.constant 0 : index
    %330 = vector.load %arg12[%c5_273, %c0_274, %c0_275] : memref<9x8x8xf32, #tpu.memory_space<vmem>>, vector<1x8x8xf32>
    %331 = vector.shape_cast %330 : vector<1x8x8xf32> to vector<8x8xf32>
    %cst_276 = arith.constant dense<0.000000e+00> : vector<64x8xf32>
    %332 = tpu.matmul %329, %331, %cst_276 {dimension_numbers = #tpu.dot_dimension_numbers<[1], [0], [0], [1], [0, 0, 1, 1], [], []>} : vector<64x8xf32>, vector<8x8xf32>, vector<64x8xf32> -> vector<64x8xf32>
    %333 = arith.addf %327, %332 : vector<64x8xf32>
    %c2_277 = arith.constant 2 : index
    %c0_278 = arith.constant 0 : index
    %c0_279 = arith.constant 0 : index
    %334 = vector.load %arg18[%c2_277, %c0_278, %c0_279] : memref<10x10x8xf32, #tpu.memory_space<vmem>>, vector<8x8x8xf32>
    %335 = vector.shape_cast %334 : vector<8x8x8xf32> to vector<64x8xf32>
    %c6_280 = arith.constant 6 : index
    %c0_281 = arith.constant 0 : index
    %c0_282 = arith.constant 0 : index
    %336 = vector.load %arg12[%c6_280, %c0_281, %c0_282] : memref<9x8x8xf32, #tpu.memory_space<vmem>>, vector<1x8x8xf32>
    %337 = vector.shape_cast %336 : vector<1x8x8xf32> to vector<8x8xf32>
    %cst_283 = arith.constant dense<0.000000e+00> : vector<64x8xf32>
    %338 = tpu.matmul %335, %337, %cst_283 {dimension_numbers = #tpu.dot_dimension_numbers<[1], [0], [0], [1], [0, 0, 1, 1], [], []>} : vector<64x8xf32>, vector<8x8xf32>, vector<64x8xf32> -> vector<64x8xf32>
    %339 = arith.addf %333, %338 : vector<64x8xf32>
    %c2_284 = arith.constant 2 : index
    %c1_285 = arith.constant 1 : index
    %c0_286 = arith.constant 0 : index
    %340 = vector.load %arg18[%c2_284, %c1_285, %c0_286] : memref<10x10x8xf32, #tpu.memory_space<vmem>>, vector<8x8x8xf32>
    %341 = vector.shape_cast %340 : vector<8x8x8xf32> to vector<64x8xf32>
    %c7_287 = arith.constant 7 : index
    %c0_288 = arith.constant 0 : index
    %c0_289 = arith.constant 0 : index
    %342 = vector.load %arg12[%c7_287, %c0_288, %c0_289] : memref<9x8x8xf32, #tpu.memory_space<vmem>>, vector<1x8x8xf32>
    %343 = vector.shape_cast %342 : vector<1x8x8xf32> to vector<8x8xf32>
    %cst_290 = arith.constant dense<0.000000e+00> : vector<64x8xf32>
    %344 = tpu.matmul %341, %343, %cst_290 {dimension_numbers = #tpu.dot_dimension_numbers<[1], [0], [0], [1], [0, 0, 1, 1], [], []>} : vector<64x8xf32>, vector<8x8xf32>, vector<64x8xf32> -> vector<64x8xf32>
    %345 = arith.addf %339, %344 : vector<64x8xf32>
    %c2_291 = arith.constant 2 : index
    %c2_292 = arith.constant 2 : index
    %c0_293 = arith.constant 0 : index
    %346 = vector.load %arg18[%c2_291, %c2_292, %c0_293] : memref<10x10x8xf32, #tpu.memory_space<vmem>>, vector<8x8x8xf32>
    %347 = vector.shape_cast %346 : vector<8x8x8xf32> to vector<64x8xf32>
    %c8_294 = arith.constant 8 : index
    %c0_295 = arith.constant 0 : index
    %c0_296 = arith.constant 0 : index
    %348 = vector.load %arg12[%c8_294, %c0_295, %c0_296] : memref<9x8x8xf32, #tpu.memory_space<vmem>>, vector<1x8x8xf32>
    %349 = vector.shape_cast %348 : vector<1x8x8xf32> to vector<8x8xf32>
    %cst_297 = arith.constant dense<0.000000e+00> : vector<64x8xf32>
    %350 = tpu.matmul %347, %349, %cst_297 {dimension_numbers = #tpu.dot_dimension_numbers<[1], [0], [0], [1], [0, 0, 1, 1], [], []>} : vector<64x8xf32>, vector<8x8xf32>, vector<64x8xf32> -> vector<64x8xf32>
    %351 = arith.addf %345, %350 : vector<64x8xf32>
    %352 = vector.shape_cast %351 : vector<64x8xf32> to vector<1x64x8xf32>
    %cst_298 = arith.constant dense<0.000000e+00> : vector<1xf32>
    %353 = vector.multi_reduction <add>, %352, %cst_298 [1, 2] : vector<1x64x8xf32> to vector<1xf32>
    %354 = vector.shape_cast %353 : vector<1xf32> to vector<1x1x1xf32>
    %355 = vector.extract %354[0, 0, 0] : f32 from vector<1x1x1xf32>
    %356 = vector.broadcast %355 : f32 to vector<1x1xf32>
    %cst_299 = arith.constant 5.120000e+02 : f32
    %357 = vector.broadcast %cst_299 : f32 to vector<1x1xf32>
    %358 = arith.divf %356, %357 : vector<1x1xf32>
    %359 = vector.broadcast %358 : vector<1x1xf32> to vector<64x8xf32>
    %360 = arith.subf %351, %359 : vector<64x8xf32>
    %361 = arith.mulf %360, %360 : vector<64x8xf32>
    %362 = vector.shape_cast %361 : vector<64x8xf32> to vector<1x64x8xf32>
    %cst_300 = arith.constant dense<0.000000e+00> : vector<1xf32>
    %363 = vector.multi_reduction <add>, %362, %cst_300 [1, 2] : vector<1x64x8xf32> to vector<1xf32>
    %364 = vector.shape_cast %363 : vector<1xf32> to vector<1x1x1xf32>
    %365 = vector.extract %364[0, 0, 0] : f32 from vector<1x1x1xf32>
    %366 = vector.broadcast %365 : f32 to vector<1x1xf32>
    %cst_301 = arith.constant 5.120000e+02 : f32
    %367 = vector.broadcast %cst_301 : f32 to vector<1x1xf32>
    %368 = arith.divf %366, %367 : vector<1x1xf32>
    %369 = vector.broadcast %358 : vector<1x1xf32> to vector<64x8xf32>
    %370 = arith.subf %351, %369 : vector<64x8xf32>
    %cst_302 = arith.constant 9.99999974E-6 : f32
    %371 = vector.broadcast %cst_302 : f32 to vector<1x1xf32>
    %372 = arith.addf %368, %371 : vector<1x1xf32>
    %373 = math.rsqrt %372 : vector<1x1xf32>
    %374 = vector.broadcast %373 : vector<1x1xf32> to vector<64x8xf32>
    %375 = arith.mulf %370, %374 : vector<64x8xf32>
    %c0_303 = arith.constant 0 : index
    %c0_304 = arith.constant 0 : index
    %376 = vector.load %arg13[%c0_303, %c0_304] : memref<1x8xf32, #tpu.memory_space<vmem>>, vector<1x8xf32>
    %377 = vector.broadcast %376 : vector<1x8xf32> to vector<64x8xf32>
    %378 = arith.mulf %375, %377 : vector<64x8xf32>
    %c0_305 = arith.constant 0 : index
    %c0_306 = arith.constant 0 : index
    %379 = vector.load %arg14[%c0_305, %c0_306] : memref<1x8xf32, #tpu.memory_space<vmem>>, vector<1x8xf32>
    %380 = vector.broadcast %379 : vector<1x8xf32> to vector<64x8xf32>
    %381 = arith.addf %378, %380 : vector<64x8xf32>
    %382 = arith.index_cast %arg0 : i32 to index
    %c0_307 = arith.constant 0 : index
    %383 = vector.load %arg2[%382, %c0_307] : memref<2x256xf32, #tpu.memory_space<vmem>>, vector<1x256xf32>
    %c0_308 = arith.constant 0 : index
    %c0_309 = arith.constant 0 : index
    %384 = vector.load %arg15[%c0_308, %c0_309] : memref<256x8xf32, #tpu.memory_space<vmem>>, vector<256x8xf32>
    %cst_310 = arith.constant dense<0.000000e+00> : vector<1x8xf32>
    %385 = tpu.matmul %383, %384, %cst_310 {dimension_numbers = #tpu.dot_dimension_numbers<[1], [0], [0], [1], [0, 0, 1, 1], [], []>} : vector<1x256xf32>, vector<256x8xf32>, vector<1x8xf32> -> vector<1x8xf32>
    %c0_311 = arith.constant 0 : index
    %c0_312 = arith.constant 0 : index
    %386 = vector.load %arg16[%c0_311, %c0_312] : memref<1x8xf32, #tpu.memory_space<vmem>>, vector<1x8xf32>
    %387 = arith.addf %385, %386 : vector<1x8xf32>
    %388 = arith.negf %387 : vector<1x8xf32>
    %389 = math.exp %388 : vector<1x8xf32>
    %cst_313 = arith.constant 1.000000e+00 : f32
    %390 = vector.broadcast %cst_313 : f32 to vector<1x8xf32>
    %391 = arith.addf %390, %389 : vector<1x8xf32>
    %392 = arith.divf %390, %391 : vector<1x8xf32>
    %393 = arith.mulf %387, %392 : vector<1x8xf32>
    %394 = vector.broadcast %393 : vector<1x8xf32> to vector<64x8xf32>
    %395 = arith.addf %381, %394 : vector<64x8xf32>
    %396 = vector.shape_cast %395 : vector<64x8xf32> to vector<1x8x8x8xf32>
    %c0_314 = arith.constant 0 : index
    %c0_315 = arith.constant 0 : index
    %c0_316 = arith.constant 0 : index
    %c0_317 = arith.constant 0 : index
    %397 = vector.load %arg17[%c0_314, %c0_315, %c0_316, %c0_317] : memref<1x8x8x8xf32, #tpu.memory_space<vmem>>, vector<1x8x8x8xf32>
    tpu.vector_store %arg17[%c0_314, %c0_315, %c0_316, %c0_317], %396 {strides = array<i32>} : memref<1x8x8x8xf32, #tpu.memory_space<vmem>>, vector<1x8x8x8xf32>,
    return
  }
  func.func @transform_0(%arg0: i32) -> (i32, i32, i32, i32) {
    %c0_i32 = arith.constant 0 : i32
    %c0_i32_0 = arith.constant 0 : i32
    %c0_i32_1 = arith.constant 0 : i32
    %c0_i32_2 = arith.constant 0 : i32
    return %arg0, %c0_i32, %c0_i32_0, %c0_i32_1 : i32, i32, i32, i32
  }
  func.func @transform_1(%arg0: i32) -> (i32, i32) {
    %c0_i32 = arith.constant 0 : i32
    %c0_i32_0 = arith.constant 0 : i32
    %c0_i32_1 = arith.constant 0 : i32
    return %c0_i32, %c0_i32_0 : i32, i32
  }
  func.func @transform_2(%arg0: i32) -> (i32, i32, i32) {
    %c0_i32 = arith.constant 0 : i32
    %c0_i32_0 = arith.constant 0 : i32
    %c0_i32_1 = arith.constant 0 : i32
    %c0_i32_2 = arith.constant 0 : i32
    return %c0_i32, %c0_i32_0, %c0_i32_1 : i32, i32, i32
  }
  func.func @transform_3(%arg0: i32) -> (i32, i32) {
    %c0_i32 = arith.constant 0 : i32
    %c0_i32_0 = arith.constant 0 : i32
    %c0_i32_1 = arith.constant 0 : i32
    return %c0_i32, %c0_i32_0 : i32, i32
  }
  func.func @transform_4(%arg0: i32) -> (i32, i32) {
    %c0_i32 = arith.constant 0 : i32
    %c0_i32_0 = arith.constant 0 : i32
    %c0_i32_1 = arith.constant 0 : i32
    return %c0_i32, %c0_i32_0 : i32, i32
  }
  func.func @transform_5(%arg0: i32) -> (i32, i32, i32) {
    %c0_i32 = arith.constant 0 : i32
    %c0_i32_0 = arith.constant 0 : i32
    %c0_i32_1 = arith.constant 0 : i32
    %c0_i32_2 = arith.constant 0 : i32
    return %c0_i32, %c0_i32_0, %c0_i32_1 : i32, i32, i32
  }
  func.func @transform_6(%arg0: i32) -> (i32, i32) {
    %c0_i32 = arith.constant 0 : i32
    %c0_i32_0 = arith.constant 0 : i32
    %c0_i32_1 = arith.constant 0 : i32
    return %c0_i32, %c0_i32_0 : i32, i32
  }
  func.func @transform_7(%arg0: i32) -> (i32, i32) {
    %c0_i32 = arith.constant 0 : i32
    %c0_i32_0 = arith.constant 0 : i32
    %c0_i32_1 = arith.constant 0 : i32
    return %c0_i32, %c0_i32_0 : i32, i32
  }
  func.func @transform_8(%arg0: i32) -> (i32, i32, i32) {
    %c0_i32 = arith.constant 0 : i32
    %c0_i32_0 = arith.constant 0 : i32
    %c0_i32_1 = arith.constant 0 : i32
    %c0_i32_2 = arith.constant 0 : i32
    return %c0_i32, %c0_i32_0, %c0_i32_1 : i32, i32, i32
  }
  func.func @transform_9(%arg0: i32) -> (i32, i32) {
    %c0_i32 = arith.constant 0 : i32
    %c0_i32_0 = arith.constant 0 : i32
    %c0_i32_1 = arith.constant 0 : i32
    return %c0_i32, %c0_i32_0 : i32, i32
  }
  func.func @transform_10(%arg0: i32) -> (i32, i32) {
    %c0_i32 = arith.constant 0 : i32
    %c0_i32_0 = arith.constant 0 : i32
    %c0_i32_1 = arith.constant 0 : i32
    return %c0_i32, %c0_i32_0 : i32, i32
  }
  func.func @transform_11(%arg0: i32) -> (i32, i32, i32) {
    %c0_i32 = arith.constant 0 : i32
    %c0_i32_0 = arith.constant 0 : i32
    %c0_i32_1 = arith.constant 0 : i32
    %c0_i32_2 = arith.constant 0 : i32
    return %c0_i32, %c0_i32_0, %c0_i32_1 : i32, i32, i32
  }
  func.func @transform_12(%arg0: i32) -> (i32, i32) {
    %c0_i32 = arith.constant 0 : i32
    %c0_i32_0 = arith.constant 0 : i32
    %c0_i32_1 = arith.constant 0 : i32
    return %c0_i32, %c0_i32_0 : i32, i32
  }
  func.func @transform_13(%arg0: i32) -> (i32, i32) {
    %c0_i32 = arith.constant 0 : i32
    %c0_i32_0 = arith.constant 0 : i32
    %c0_i32_1 = arith.constant 0 : i32
    return %c0_i32, %c0_i32_0 : i32, i32
  }
  func.func @transform_14(%arg0: i32) -> (i32, i32) {
    %c0_i32 = arith.constant 0 : i32
    %c0_i32_0 = arith.constant 0 : i32
    %c0_i32_1 = arith.constant 0 : i32
    return %c0_i32, %c0_i32_0 : i32, i32
  }
  func.func @transform_15(%arg0: i32) -> (i32, i32) {
    %c0_i32 = arith.constant 0 : i32
    %c0_i32_0 = arith.constant 0 : i32
    %c0_i32_1 = arith.constant 0 : i32
    return %c0_i32, %c0_i32_0 : i32, i32
  }
  func.func @transform_16(%arg0: i32) -> (i32, i32, i32, i32) {
    %c0_i32 = arith.constant 0 : i32
    %c0_i32_0 = arith.constant 0 : i32
    %c0_i32_1 = arith.constant 0 : i32
    %c0_i32_2 = arith.constant 0 : i32
    return %arg0, %c0_i32, %c0_i32_0, %c0_i32_1 : i32, i32, i32, i32
  }
}

</mosaic_0001>

<bundles_post_ra>
// kernel: down_conv.1
= control target key start
LH: loop header
LB: loop body
LE: loop exit
PB: predicated region body
PF: predicated region fallthrough
CT: control target
= control target key end

     0   :  { %s5974_s21 = smov 0   ;;  %s8305_s0 = inlined_call_operand.vmem [shape: f32[2,16,8,8], index: 0, kind: input, shape index: {}]   ;;  %s8306_s1 = inlined_call_operand.vmem [shape: f32[2,256], index: 1, kind: input, shape index: {}]   ;;  %s8307_s2 = inlined_call_operand.vmem [shape: f32[9,4,4], index: 2, kind: input, shape index: {}]   ;;  %s8308_s3 = inlined_call_operand.vmem [shape: f32[1,4], index: 3, kind: input, shape index: {}]   ;;  %s8309_s4 = inlined_call_operand.vmem [shape: f32[1,4], index: 4, kind: input, shape index: {}]   ;;  %s8310_s5 = inlined_call_operand.vmem [shape: f32[9,4,4], index: 5, kind: input, shape index: {}]   ;;  %s8311_s6 = inlined_call_operand.vmem [shape: f32[1,4], index: 6, kind: input, shape index: {}]   ;;  %s8312_s7 = inlined_call_operand.vmem [shape: f32[1,4], index: 7, kind: input, shape index: {}]   ;;  %s8313_s8 = inlined_call_operand.vmem [shape: f32[9,4,8], index: 8, kind: input, shape index: {}]   ;;  %s8314_s9 = inlined_call_operand.vmem [shape: f32[1,8], index: 9, kind: input, shape index: {}]   ;;  %s8315_s10 = inlined_call_operand.vmem [shape: f32[1,8], index: 10, kind: input, shape index: {}]   ;;  %s8316_s11 = inlined_call_operand.vmem [shape: f32[9,8,8], index: 11, kind: input, shape index: {}]   ;;  %s8317_s12 = inlined_call_operand.vmem [shape: f32[1,8], index: 12, kind: input, shape index: {}]   ;;  %s8318_s13 = inlined_call_operand.vmem [shape: f32[1,8], index: 13, kind: input, shape index: {}]   ;;  %s8319_s14 = inlined_call_operand.vmem [shape: f32[256,8], index: 14, kind: input, shape index: {}]   ;;  %s8320_s15 = inlined_call_operand.vmem [shape: f32[1,8], index: 15, kind: input, shape index: {}]   ;;  %s8321_s16 = inlined_call_operand.vmem [shape: f32[2,8,8,8], index: 16, kind: output, shape index: {}]  }
   0x1   :  { %8332 = sst [smem:[#allocation20_spill]] %s8305_s0 }
   0x2   :  { %8333 = sst [smem:[#allocation21_spill]] %s8307_s2 }
   0x3 LB: > { %s5980_s22 = sadd.s32 4294967295, %s5883_s21   ;;  %p5393_p0 = scmp.ge.s32.totalorder %s5883_s21, 1  ;;  %s5883_s21 = sphi %s5974_s21, %s26_s21  }
   0x4   : > { %p462_p1 = scmp.lt.s32.totalorder %s5883_s21, 3 }
   0x6   : > { %p463_p2 = pnand %p5393_p0, %p462_p1 }
   0x8   : > { %466 = sbr.rel (%p463_p2) target bundleno = 3283 (0xcd3), region = 84 }
   0xd   : > { %p512_p3 = scmp.lt.s32.totalorder %s5980_s22, 1  ;;  %s8334_s27 = sld [smem:[#allocation20_spill]]  ;;  %vm522_vm0 = vcmask 64512   ;;  %vm701_vm1 = vcmask 1043456   ;;  %vm524_vm2 = vcmask 58368   ;;  %v5886_v17 = vmov 0.0  }
   0xe   : > { %s5885_s29 = smov 124   ;;  %s8335_s2 = sld [smem:[#allocation21_spill]]  ;;  %528 = vst.msk [vmem:[#allocation2 + $0x20] sm:$0xff] %vm522_vm0, %v5886_v17  ;;  %vm649_vm3 = vcmask 31744  }
   0xf   : > { %s5986_s23 = scalar_select %p512_p3, %s5980_s22, 1  ;;  %529 = vst.msk [vmem:[#allocation2 + $0x28] sm:$0x3] %vm524_vm2, %v5886_v17 }
  0x10   : > { %523 = vst.msk [vmem:[#allocation2] sm:$0xff] %vm522_vm0, %v5886_v17  ;;  %s5207_s30 = sshra.s32 %s5980_s22, 1 }
  0x11   : > { %s5774_s24 = sshll.u32 %s5986_s23, 7  ;;  %525 = vst.msk [vmem:[#allocation2 + $0x8] sm:$0x3] %vm524_vm2, %v5886_v17  ;;  %s5776_s26 = sshll.u32 %s5207_s30, 2 }
  0x12   : > { %526 = vst.msk [vmem:[#allocation2 + $0x10] sm:$0xff] %vm522_vm0, %v5886_v17 }
  0x13   : > { %s5992_s28 = scalar_lea.vmem %s8334_s27, %s5774_s24  ;;  %527 = vst.msk [vmem:[#allocation2 + $0x18] sm:$0x3] %vm524_vm2, %v5886_v17 }
  0x14   : > { %v5995_v0 = vld [vmem:[%s5992_s28 + $0x10] sm:$0xff]  ;;  %v5998_v1 = vld [vmem:[%s5992_s28] sm:$0xff]  ;;  %v6010_v3 = vld [vmem:[%s5992_s28 + $0x18] sm:$0xff]  ;;  %530 = vst.msk [vmem:[#allocation2 + $0x30] sm:$0xff] %vm522_vm0, %v5886_v17 }
  0x15   : > { %570 = vrot.lane.b32.xlu1 %v5995_v0, %s5885_s29  ;;  %568 = vrot.lane.b32.xlu0 %v5998_v1, %s5885_s29  ;;  %v6005_v2 = vld [vmem:[%s5992_s28 + $0x20] sm:$0xff]  ;;  %v6013_v4 = vld [vmem:[%s5992_s28 + $0x8] sm:$0xff]  ;;  %531 = vst.msk [vmem:[#allocation2 + $0x38] sm:$0x3] %vm524_vm2, %v5886_v17 }
  0x16   : > { %572 = vrot.lane.b32.xlu2 %v6005_v2, %s5885_s29  ;;  %v6016_v5 = vld [vmem:[%s5992_s28 + $0x28] sm:$0xff]  ;;  %v6025_v6 = vld [vmem:[%s5992_s28 + $0x38] sm:$0xff]  ;;  %v6028_v7 = vld [vmem:[%s5992_s28 + $0x30] sm:$0xff]  ;;  %532 = vst.msk [vmem:[#allocation2 + $0x40] sm:$0xff] %vm522_vm0, %v5886_v17 }
  0x17   : > { %v6031_v8 = vld [vmem:[%s5992_s28 + $0x40] sm:$0xff]  ;;  %v6040_v9 = vld [vmem:[%s5992_s28 + $0x48] sm:$0xff]  ;;  %v6043_v10 = vld [vmem:[%s5992_s28 + $0x50] sm:$0xff]  ;;  %533 = vst.msk [vmem:[#allocation2 + $0x48] sm:$0x3] %vm524_vm2, %v5886_v17 }
  0x18   : > { %v6046_v11 = vld [vmem:[%s5992_s28 + $0x58] sm:$0xff]  ;;  %v6055_v12 = vld [vmem:[%s5992_s28 + $0x68] sm:$0xff]  ;;  %v6058_v13 = vld [vmem:[%s5992_s28 + $0x60] sm:$0xff]  ;;  %534 = vst.msk [vmem:[#allocation2 + $0x50] sm:$0xff] %vm522_vm0, %v5886_v17 }
  0x19   : > { %v6061_v14 = vld [vmem:[%s5992_s28 + $0x70] sm:$0xff]  ;;  %v6070_v15 = vld [vmem:[%s5992_s28 + $0x78] sm:$0xff]  ;;  %v5417_v16 = vld [vmem:[%s8335_s2 + $0x8] sm:$0xf]  ;;  %535 = vst.msk [vmem:[#allocation2 + $0x58] sm:$0x3] %vm524_vm2, %v5886_v17 }
  0x1a   : > { %5418 = vmatpush.msk.msra.mxu2 %vm701_vm1, %v5417_v16  ;;  %v814_v19 = vld [vmem:[#allocation2 + $0x2] sm:$0xff]  ;;  %536 = vst.msk [vmem:[#allocation2 + $0x60] sm:$0xff] %vm522_vm0, %v5886_v17  ;;  %v5437_v24 = vld [vmem:[%s8335_s2 + $0x10] sm:$0xf]  ;;  %v5427_v25 = vld [vmem:[%s8335_s2 + $0xc] sm:$0xf] }
  0x1b   : > { %5419 = vmatmul.msk.f32.vlgmr.msra.gmra.mxu2 %vm649_vm3, %v814_v19  ;;  %v5398_v20 = vld [vmem:[%s8335_s2 + $0x4] sm:$0xf]  ;;  %v666_v21 = vld [vmem:[%s8335_s2] sm:$0xf]  ;;  %537 = vst.msk [vmem:[#allocation2 + $0x68] sm:$0x3] %vm524_vm2, %v5886_v17  ;;  %5428 = vmatpush.msk.msra.mxu3 %vm701_vm1, %v5427_v25 }
  0x1c   : > { %5399 = vmatpush.msk.msra.mxu0 %vm701_vm1, %v5398_v20  ;;  %5408 = vmatpush.msk.msra.mxu1 %vm701_vm1, %v666_v21  ;;  %v667_v22 = vld [vmem:[#allocation2 + $0x1] sm:$0xff]  ;;  %538 = vst.msk [vmem:[#allocation2 + $0x70] sm:$0xff] %vm522_vm0, %v5886_v17  ;;  %v5457_v61 = vld [vmem:[%s8335_s2 + $0x18] sm:$0xf] }
  0x1d   : > { %610 = vrot.lane.b32.xlu1 %v6010_v3, %s5885_s29  ;;  %608 = vrot.lane.b32.xlu0 %v6013_v4, %s5885_s29  ;;  %v658_v23 = vld [vmem:[#allocation2] sm:$0xff]  ;;  %539 = vst.msk [vmem:[#allocation2 + $0x78] sm:$0x3] %vm524_vm2, %v5886_v17 }
  0x1e   : > { %612 = vrot.lane.b32.xlu2 %v6016_v5, %s5885_s29  ;;  %5400 = vmatmul.msk.f32.vlgmr.msra.gmra.mxu0 %vm649_vm3, %v667_v22  ;;  %540 = vst.msk [vmem:[#allocation2 + $0x80] sm:$0xff] %vm522_vm0, %v5886_v17 }
  0x1f   : > { %5409 = vmatmul.msk.f32.vlgmr.msra.gmra.mxu1 %vm649_vm3, %v658_v23  ;;  %5438 = vmatpush.msk.msrb.mxu0 %vm701_vm1, %v5437_v24  ;;  %541 = vst.msk [vmem:[#allocation2 + $0x88] sm:$0x3] %vm524_vm2, %v5886_v17 }
  0x20   : > { %542 = vst.msk [vmem:[#allocation2 + $0x90] sm:$0xff] %vm522_vm0, %v5886_v17  ;;  %5458 = vmatpush.msk.msrb.mxu2 %vm701_vm1, %v5457_v61 }
  0x21   : > { %543 = vst.msk [vmem:[#allocation2 + $0x98] sm:$0x3] %vm524_vm2, %v5886_v17 }
  0x25   : > { %614 = vrot.lane.b32.xlu1 %v6025_v6, %s5885_s29  ;;  %574 = vrot.lane.b32.xlu0 %v6028_v7, %s5885_s29 }
  0x26   : > { %576 = vrot.lane.b32.xlu2 %v6031_v8, %s5885_s29 }
  0x2d   : > { %616 = vrot.lane.b32.xlu0 %v6040_v9, %s5885_s29  ;;  %578 = vrot.lane.b32.xlu1 %v6043_v10, %s5885_s29 }
  0x2e   : > { %618 = vrot.lane.b32.xlu2 %v6046_v11, %s5885_s29 }
  0x35   : > { %620 = vrot.lane.b32.xlu1 %v6055_v12, %s5885_s29  ;;  %580 = vrot.lane.b32.xlu0 %v6058_v13, %s5885_s29 }
  0x36   : > { %582 = vrot.lane.b32.xlu2 %v6061_v14, %s5885_s29 }
  0x3d   : > { %622 = vrot.lane.b32.xlu0 %v6070_v15, %s5885_s29 }
  0x70   : > { %v573_v18 = vpop.permute.xlu2 %572 }
  0x71   : > { %v594_v26 = vmax.f32 %v6005_v2, %v573_v18 }
  0x78   : > { %v613_v27 = vpop.permute.xlu2 %612 }
  0x79   : > { %v634_v28 = vmax.f32 %v6016_v5, %v613_v27  ;;  %v1166_v27 = vld [vmem:[#allocation2 + $0x90] sm:$0xff] }
  0x7b   : > { %v6119_v29 = vmax.f32 %v594_v26, %v634_v28 }
  0x7d   : > { %8336 = vst [vmem:[#allocation3_spill] sm:$0xff] %v6119_v29 }
  0x7e   : > { %652 = vst.msk [vmem:[#allocation2 + $0x31] sm:$0xff] %vm649_vm3, %v6119_v29 }
  0x80   : > { %v577_v38 = vpop.permute.xlu2 %576 }
  0x81   : > { %v596_v50 = vmax.f32 %v6031_v8, %v577_v38  ;;  %v5467_v8 = vld [vmem:[%s8335_s2 + $0x1c] sm:$0xf] }
  0x82   : > { %5468 = vmatpush.msk.msrb.mxu3 %vm701_vm1, %v5467_v8 }
  0x85   : > { %v661_v5 = vld [vmem:[#allocation2 + $0x30] sm:$0xff] }
  0x87   : > { %v571_v30 = vpop.permute.xlu1 %570  ;;  %v569_v31 = vpop.permute.xlu0 %568 }
  0x88   : > { %v593_v32 = vmax.f32 %v5995_v0, %v571_v30  ;;  %v592_v35 = vmax.f32 %v5998_v1, %v569_v31  ;;  %v619_v46 = vpop.permute.xlu2 %618 }
  0x89   : > { %v637_v51 = vmax.f32 %v6046_v11, %v619_v46 }
  0x8f   : > { %v611_v33 = vpop.permute.xlu1 %610  ;;  %v609_v34 = vpop.permute.xlu0 %608 }
  0x90   : > { %v633_v36 = vmax.f32 %v6010_v3, %v611_v33  ;;  %v632_v37 = vmax.f32 %v6013_v4, %v609_v34  ;;  %v583_v3 = vpop.permute.xlu2 %582  ;;  %v670_v4 = vld [vmem:[#allocation2 + $0x31] sm:$0xff] }
  0x92   : > { %v6127_v39 = vmax.f32 %v593_v32, %v633_v36  ;;  %v6129_v40 = vmax.f32 %v592_v35, %v632_v37  ;;  %v1252_v32 = vld [vmem:[#allocation2 + $0x91] sm:$0xff] }
  0x94   : > { %8337 = vst [vmem:[#allocation4_spill] sm:$0xff] %v6127_v39 }
  0x95   : > { %8338 = vst [vmem:[#allocation5_spill] sm:$0xff] %v6129_v40 }
  0x96   : > { %651 = vst.msk [vmem:[#allocation2 + $0x21] sm:$0xff] %vm649_vm3, %v6127_v39 }
  0x97   : > { %650 = vst.msk [vmem:[#allocation2 + $0x11] sm:$0xff] %vm649_vm3, %v6129_v40  ;;  %v615_v41 = vpop.permute.xlu1 %614  ;;  %v575_v42 = vpop.permute.xlu0 %574 }
  0x98   : > { %v635_v43 = vmax.f32 %v6025_v6, %v615_v41  ;;  %v595_v44 = vmax.f32 %v6028_v7, %v575_v42  ;;  %v6189_v6 = vld [vmem:[#allocation2 + $0x32] sm:$0xff]  ;;  %v599_v7 = vmax.f32 %v6061_v14, %v583_v3 }
  0x9a   : > { %v6137_v45 = vmax.f32 %v595_v44, %v635_v43 }
  0x9b   : > { %v6275_v31 = vpop.f32.mrf.mxu0 }
  0x9c   : > { %8339 = vst [vmem:[#allocation6_spill] sm:$0xff] %v6137_v45  ;;  %v790_v36 = vpop.f32.mrf.mxu1 }
  0x9d   : > { %653 = vst.msk [vmem:[#allocation2 + $0x41] sm:$0xff] %vm649_vm3, %v6137_v45  ;;  %v6159_v58 = vld [vmem:[#allocation2 + $0x21] sm:$0xff] }
  0x9e   : > { %v6139_v47 = vld [vmem:[#allocation2 + $0x11] sm:$0xff]  ;;  %v6161_v59 = vld [vmem:[#allocation2 + $0x20] sm:$0xff]  ;;  %v6292_v37 = vpop.f32.mrf.mxu2 }
  0x9f   : > { %v659_v48 = vld [vmem:[#allocation2 + $0x10] sm:$0xff]  ;;  %5401 = vmatmul.msk.f32.gmra.mxu0 %vm649_vm3, %v6139_v47  ;;  %v617_v52 = vpop.permute.xlu0 %616  ;;  %v579_v53 = vpop.permute.xlu1 %578  ;;  %v6169_v60 = vld [vmem:[#allocation2 + $0x22] sm:$0xff] }
  0xa0   : > { %v6141_v49 = vld [vmem:[#allocation2 + $0x12] sm:$0xff]  ;;  %5410 = vmatmul.msk.f32.gmra.mxu1 %vm649_vm3, %v659_v48  ;;  %5429 = vmatmul.msk.f32.vlgmr.msra.gmra.mxu3 %vm649_vm3, %v659_v48  ;;  %v636_v54 = vmax.f32 %v6040_v9, %v617_v52  ;;  %v597_v55 = vmax.f32 %v6043_v10, %v579_v53 }
  0xa1   : > { %5420 = vmatmul.msk.f32.gmra.mxu2 %vm649_vm3, %v6141_v49  ;;  %v5447_v9 = vld [vmem:[%s8335_s2 + $0x14] sm:$0xf] }
  0xa2   : > { %v6155_v56 = vmax.f32 %v596_v50, %v636_v54  ;;  %v6157_v57 = vmax.f32 %v597_v55, %v637_v51  ;;  %5448 = vmatpush.msk.msrb.mxu1 %vm701_vm1, %v5447_v9  ;;  %v1338_v52 = vld [vmem:[#allocation2 + $0x92] sm:$0xff] }
  0xa4   : > { %8340 = vst [vmem:[#allocation7_spill] sm:$0xff] %v6155_v56  ;;  %v6206_v14 = vld [vmem:[#allocation2 + $0x42] sm:$0xff] }
  0xa5   : > { %8341 = vst [vmem:[#allocation8_spill] sm:$0xff] %v6157_v57 }
  0xa6   : > { %654 = vst.msk [vmem:[#allocation2 + $0x51] sm:$0xff] %vm649_vm3, %v6155_v56 }
  0xa7   : > { %5402 = vmatmul.msk.f32.gmra.mxu0 %vm649_vm3, %v6159_v58  ;;  %655 = vst.msk [vmem:[#allocation2 + $0x61] sm:$0xff] %vm649_vm3, %v6157_v57  ;;  %v621_v62 = vpop.permute.xlu1 %620  ;;  %v581_v63 = vpop.permute.xlu0 %580  ;;  %v791_v57 = vadd.f32 %v790_v36, %v6275_v31 }
  0xa8   : > { %5411 = vmatmul.msk.f32.gmra.mxu1 %vm649_vm3, %v6161_v59  ;;  %5430 = vmatmul.msk.f32.gmra.mxu3 %vm649_vm3, %v6161_v59  ;;  %v638_v0 = vmax.f32 %v6055_v12, %v621_v62  ;;  %v598_v1 = vmax.f32 %v6058_v13, %v581_v63  ;;  %v671_v12 = vld [vmem:[#allocation2 + $0x41] sm:$0xff] }
  0xa9   : > { %5421 = vmatmul.msk.f32.gmra.mxu2 %vm649_vm3, %v6169_v60  ;;  %v662_v13 = vld [vmem:[#allocation2 + $0x40] sm:$0xff]  ;;  %v892_v40 = vadd.f32 %v6292_v37, %v791_v57 }
  0xaa   : > { %v6183_v2 = vmax.f32 %v598_v1, %v638_v0 }
  0xac   : > { %8342 = vst [vmem:[#allocation9_spill] sm:$0xff] %v6183_v2 }
  0xad   : > { %656 = vst.msk [vmem:[#allocation2 + $0x71] sm:$0xff] %vm649_vm3, %v6183_v2  ;;  %v672_v17 = vld [vmem:[#allocation2 + $0x51] sm:$0xff] }
  0xae   : > { %v663_v18 = vld [vmem:[#allocation2 + $0x50] sm:$0xff]  ;;  %v673_v20 = vld [vmem:[#allocation2 + $0x61] sm:$0xff] }
  0xaf   : > { %5403 = vmatmul.msk.f32.gmra.mxu0 %vm649_vm3, %v670_v4  ;;  %v623_v10 = vpop.permute.xlu0 %622  ;;  %v6219_v19 = vld [vmem:[#allocation2 + $0x52] sm:$0xff]  ;;  %v664_v21 = vld [vmem:[#allocation2 + $0x60] sm:$0xff] }
  0xb0   : > { %5412 = vmatmul.msk.f32.gmra.mxu1 %vm649_vm3, %v661_v5  ;;  %5431 = vmatmul.msk.f32.gmra.mxu3 %vm649_vm3, %v661_v5  ;;  %v639_v11 = vmax.f32 %v6070_v15, %v623_v10  ;;  %v5477_v15 = vld [vmem:[%s8335_s2 + $0x20] sm:$0xf]  ;;  %s5775_s2 = sshll.u32 %s5986_s23, 6 }
  0xb1   : > { %5422 = vmatmul.msk.f32.gmra.mxu2 %vm649_vm3, %v6189_v6  ;;  %5478 = vmatpush.msk.msra.mxu0 %vm701_vm1, %v5477_v15  ;;  %v820_v22 = vld [vmem:[#allocation2 + $0x62] sm:$0xff]  ;;  %s521_s29 = scalar_lea.vmem %s8321_s16, %s5775_s2 }
  0xb2   : > { %v6204_v16 = vmax.f32 %v599_v7, %v639_v11 }
  0xb4   : > { %8343 = vst [vmem:[#allocation10_spill] sm:$0xff] %v6204_v16  ;;  %v674_v23 = vld [vmem:[#allocation2 + $0x71] sm:$0xff] }
  0xb5   : > { %657 = vst.msk [vmem:[#allocation2 + $0x81] sm:$0xff] %vm649_vm3, %v6204_v16  ;;  %v665_v24 = vld [vmem:[#allocation2 + $0x70] sm:$0xff] }
  0xb6   : > { %v821_v25 = vld [vmem:[#allocation2 + $0x72] sm:$0xff] }
  0xb7   : > { %5404 = vmatmul.msk.f32.gmra.mxu0 %vm649_vm3, %v671_v12 }
  0xb8   : > { %5413 = vmatmul.msk.f32.gmra.mxu1 %vm649_vm3, %v662_v13  ;;  %5432 = vmatmul.msk.f32.gmra.mxu3 %vm649_vm3, %v662_v13 }
  0xb9   : > { %5423 = vmatmul.msk.f32.gmra.mxu2 %vm649_vm3, %v6206_v14 }
  0xbc   : > { %v907_v26 = vld [vmem:[#allocation2 + $0x80] sm:$0xff] }
  0xbd   : > { %v993_v28 = vld [vmem:[#allocation2 + $0x81] sm:$0xff] }
  0xbe   : > { %v1079_v30 = vld [vmem:[#allocation2 + $0x82] sm:$0xff] }
  0xbf   : > { %5405 = vmatmul.msk.f32.gmra.mxu0 %vm649_vm3, %v672_v17 }
  0xc0   : > { %5414 = vmatmul.msk.f32.gmra.mxu1 %vm649_vm3, %v663_v18  ;;  %5433 = vmatmul.msk.f32.gmra.mxu3 %vm649_vm3, %v663_v18 }
  0xc1   : > { %5424 = vmatmul.msk.f32.gmra.mxu2 %vm649_vm3, %v6219_v19 }
  0xc7   : > { %5406 = vmatmul.msk.f32.gmra.mxu0 %vm649_vm3, %v673_v20 }
  0xc8   : > { %5415 = vmatmul.msk.f32.gmra.mxu1 %vm649_vm3, %v664_v21  ;;  %5434 = vmatmul.msk.f32.gmra.mxu3 %vm649_vm3, %v664_v21 }
  0xc9   : > { %5425 = vmatmul.msk.f32.gmra.mxu2 %vm649_vm3, %v820_v22 }
  0xcf   : > { %5407 = vmatmul.msk.f32.gmra.mxu0 %vm649_vm3, %v674_v23 }
  0xd0   : > { %5416 = vmatmul.msk.f32.gmra.mxu1 %vm649_vm3, %v665_v24  ;;  %5435 = vmatmul.msk.f32.gmra.mxu3 %vm649_vm3, %v665_v24 }
  0xd1   : > { %5426 = vmatmul.msk.f32.gmra.mxu2 %vm649_vm3, %v821_v25 }
  0xd7   : > { %5439 = vmatmul.msk.f32.vlgmr.msrb.gmra.mxu0 %vm649_vm3, %v6139_v47 }
  0xd8   : > { %5449 = vmatmul.msk.f32.vlgmr.msrb.gmra.mxu1 %vm649_vm3, %v6141_v49  ;;  %5436 = vmatmul.msk.f32.gmra.mxu3 %vm649_vm3, %v907_v26 }
  0xd9   : > { %5459 = vmatmul.msk.f32.vlgmr.msrb.gmra.mxu2 %vm649_vm3, %v6161_v59 }
  0xdf   : > { %5440 = vmatmul.msk.f32.gmra.mxu0 %vm649_vm3, %v6159_v58 }
  0xe0   : > { %5450 = vmatmul.msk.f32.gmra.mxu1 %vm649_vm3, %v6169_v60  ;;  %5469 = vmatmul.msk.f32.vlgmr.msrb.gmra.mxu3 %vm649_vm3, %v6159_v58 }
  0xe1   : > { %5460 = vmatmul.msk.f32.gmra.mxu2 %vm649_vm3, %v661_v5 }
  0xe7   : > { %5441 = vmatmul.msk.f32.gmra.mxu0 %vm649_vm3, %v670_v4 }
  0xe8   : > { %5451 = vmatmul.msk.f32.gmra.mxu1 %vm649_vm3, %v6189_v6  ;;  %5470 = vmatmul.msk.f32.gmra.mxu3 %vm649_vm3, %v670_v4 }
  0xe9   : > { %5461 = vmatmul.msk.f32.gmra.mxu2 %vm649_vm3, %v662_v13 }
  0xef   : > { %5442 = vmatmul.msk.f32.gmra.mxu0 %vm649_vm3, %v671_v12 }
  0xf0   : > { %5452 = vmatmul.msk.f32.gmra.mxu1 %vm649_vm3, %v6206_v14  ;;  %5471 = vmatmul.msk.f32.gmra.mxu3 %vm649_vm3, %v671_v12 }
  0xf1   : > { %5462 = vmatmul.msk.f32.gmra.mxu2 %vm649_vm3, %v663_v18 }
  0xf7   : > { %5443 = vmatmul.msk.f32.gmra.mxu0 %vm649_vm3, %v672_v17 }
  0xf8   : > { %5453 = vmatmul.msk.f32.gmra.mxu1 %vm649_vm3, %v6219_v19  ;;  %5472 = vmatmul.msk.f32.gmra.mxu3 %vm649_vm3, %v672_v17 }
  0xf9   : > { %5463 = vmatmul.msk.f32.gmra.mxu2 %vm649_vm3, %v664_v21 }
  0xff   : > { %5444 = vmatmul.msk.f32.gmra.mxu0 %vm649_vm3, %v673_v20 }
 0x100   : > { %5454 = vmatmul.msk.f32.gmra.mxu1 %vm649_vm3, %v820_v22  ;;  %5473 = vmatmul.msk.f32.gmra.mxu3 %vm649_vm3, %v673_v20 }
 0x101   : > { %5464 = vmatmul.msk.f32.gmra.mxu2 %vm649_vm3, %v665_v24 }
 0x107   : > { %5445 = vmatmul.msk.f32.gmra.mxu0 %vm649_vm3, %v674_v23 }
 0x108   : > { %5455 = vmatmul.msk.f32.gmra.mxu1 %vm649_vm3, %v821_v25  ;;  %5474 = vmatmul.msk.f32.gmra.mxu3 %vm649_vm3, %v674_v23 }
 0x109   : > { %5465 = vmatmul.msk.f32.gmra.mxu2 %vm649_vm3, %v907_v26 }
 0x10f   : > { %5446 = vmatmul.msk.f32.gmra.mxu0 %vm649_vm3, %v993_v28 }
 0x110   : > { %5456 = vmatmul.msk.f32.gmra.mxu1 %vm649_vm3, %v1079_v30  ;;  %5475 = vmatmul.msk.f32.gmra.mxu3 %vm649_vm3, %v993_v28 }
 0x111   : > { %5466 = vmatmul.msk.f32.gmra.mxu2 %vm649_vm3, %v1166_v27 }
 0x117   : > { %5479 = vmatmul.msk.f32.vlgmr.msra.gmra.mxu0 %vm649_vm3, %v6169_v60 }
 0x118   : > { %5476 = vmatmul.msk.f32.gmra.mxu3 %vm649_vm3, %v1252_v32 }
 0x11c   : > { %v6280_v33 = vpop.f32.mrf.mxu0 }
 0x11d   : > { %v793_v42 = vpop.f32.mrf.mxu1 }
 0x11e   : > { %v794_v45 = vadd.f32 %v793_v42, %v6280_v33 }
 0x11f   : > { %5480 = vmatmul.msk.f32.gmra.mxu0 %vm649_vm3, %v6189_v6 }
 0x123   : > { %v6294_v38 = vpop.f32.mrf.mxu3 }
 0x124   : > { %v6284_v34 = vpop.f32.mrf.mxu0  ;;  %v871_v43 = vpop.f32.mrf.mxu2 }
 0x125   : > { %v796_v47 = vpop.f32.mrf.mxu1  ;;  %v893_v29 = vadd.f32 %v871_v43, %v794_v45 }
 0x126   : > { %v797_v39 = vadd.f32 %v796_v47, %v6284_v34 }
 0x127   : > { %5481 = vmatmul.msk.f32.gmra.mxu0 %vm649_vm3, %v6206_v14 }
 0x12b   : > { %v957_v44 = vpop.f32.mrf.mxu3 }
 0x12c   : > { %v6288_v35 = vpop.f32.mrf.mxu0  ;;  %v874_v48 = vpop.f32.mrf.mxu2 }
 0x12d   : > { %v799_v53 = vpop.f32.mrf.mxu1 }
 0x12f   : > { %5482 = vmatmul.msk.f32.gmra.mxu0 %vm649_vm3, %v6219_v19 }
 0x133   : > { %v960_v50 = vpop.f32.mrf.mxu3 }
 0x134   : > { %v6296_v41 = vpop.f32.mrf.mxu0  ;;  %v877_v54 = vpop.f32.mrf.mxu2 }
 0x135   : > { %v802_v59 = vpop.f32.mrf.mxu1 }
 0x136   : > { %v803_v31 = vadd.f32 %v802_v59, %v6296_v41 }
 0x137   : > { %5483 = vmatmul.msk.f32.gmra.mxu0 %vm649_vm3, %v820_v22 }
 0x13b   : > { %v963_v55 = vpop.f32.mrf.mxu3 }
 0x13c   : > { %v6299_v46 = vpop.f32.mrf.mxu0  ;;  %v880_v60 = vpop.f32.mrf.mxu2 }
 0x13d   : > { %8344 = vst [vmem:[#allocation11_spill] sm:$0xff] %v6299_v46  ;;  %v805_v63 = vpop.f32.mrf.mxu1  ;;  %v896_v47 = vadd.f32 %v880_v60, %v803_v31 }
 0x13f   : > { %5484 = vmatmul.msk.f32.gmra.mxu0 %vm649_vm3, %v821_v25 }
 0x143   : > { %v966_v61 = vpop.f32.mrf.mxu3 }
 0x144   : > { %v6302_v49 = vpop.f32.mrf.mxu0  ;;  %v883_v0 = vpop.f32.mrf.mxu2  ;;  %v8352_v33 = vld [vmem:[#allocation11_spill] sm:$0xff] }
 0x145   : > { %8345 = vst [vmem:[#allocation12_spill] sm:$0xff] %v6302_v49  ;;  %v808_v4 = vpop.f32.mrf.mxu1  ;;  %v806_v42 = vadd.f32 %v805_v63, %v8352_v33 }
 0x147   : > { %5485 = vmatmul.msk.f32.gmra.mxu0 %vm649_vm3, %v1079_v30 }
 0x14b   : > { %v969_v1 = vpop.f32.mrf.mxu3 }
 0x14c   : > { %v6305_v51 = vpop.f32.mrf.mxu0  ;;  %v886_v5 = vpop.f32.mrf.mxu2  ;;  %v8353_v37 = vld [vmem:[#allocation12_spill] sm:$0xff] }
 0x14d   : > { %8346 = vst [vmem:[#allocation13_spill] sm:$0xff] %v6305_v51  ;;  %v6308_v9 = vpop.f32.mrf.mxu1 }
 0x14e   : > { %8347 = vst [vmem:[#allocation14_spill] sm:$0xff] %v6308_v9  ;;  %v978_v9 = vadd.f32 %v6294_v38, %v892_v40 }
 0x14f   : > { %5486 = vmatmul.msk.f32.gmra.mxu0 %vm649_vm3, %v1338_v52 }
 0x153   : > { %v972_v7 = vpop.f32.mrf.mxu3 }
 0x154   : > { %v1040_v58 = vpop.f32.mrf.mxu0  ;;  %v6310_v10 = vpop.f32.mrf.mxu2 }
 0x155   : > { %8348 = vst [vmem:[#allocation15_spill] sm:$0xff] %v6310_v10  ;;  %v1126_v13 = vpop.f32.mrf.mxu1  ;;  %v1064_v45 = vadd.f32 %v1040_v58, %v978_v9 }
 0x15b   : > { %v6312_v11 = vpop.f32.mrf.mxu3 }
 0x15c   : > { %v1043_v62 = vpop.f32.mrf.mxu0  ;;  %8349 = vst [vmem:[#allocation16_spill] sm:$0xff] %v6312_v11  ;;  %v1213_v14 = vpop.f32.mrf.mxu2  ;;  %v979_v11 = vadd.f32 %v957_v44, %v893_v29  ;;  %v897_v29 = vadd.f32 %v883_v0, %v806_v42  ;;  %v982_v44 = vadd.f32 %v966_v61, %v896_v47 }
 0x15d   : > { %v1129_v18 = vpop.f32.mrf.mxu1 }
 0x15e   : > { %v1065_v36 = vadd.f32 %v1043_v62, %v979_v11 }
 0x163   : > { %v1299_v15 = vpop.f32.mrf.mxu3 }
 0x164   : > { %v1046_v3 = vpop.f32.mrf.mxu0  ;;  %v1216_v19 = vpop.f32.mrf.mxu2 }
 0x165   : > { %v1132_v22 = vpop.f32.mrf.mxu1 }
 0x16b   : > { %v1302_v20 = vpop.f32.mrf.mxu3 }
 0x16c   : > { %v1049_v6 = vpop.f32.mrf.mxu0  ;;  %v1219_v23 = vpop.f32.mrf.mxu2 }
 0x16d   : > { %v1135_v27 = vpop.f32.mrf.mxu1 }
 0x173   : > { %v1305_v25 = vpop.f32.mrf.mxu3 }
 0x174   : > { %v1052_v8 = vpop.f32.mrf.mxu0  ;;  %v1222_v28 = vpop.f32.mrf.mxu2 }
 0x175   : > { %v1138_v52 = vpop.f32.mrf.mxu1  ;;  %v1068_v59 = vadd.f32 %v1052_v8, %v982_v44  ;;  %v8356_v8 = vld [vmem:[#allocation15_spill] sm:$0xff] }
 0x17b   : > { %v1308_v30 = vpop.f32.mrf.mxu3 }
 0x17c   : > { %v1055_v12 = vpop.f32.mrf.mxu0  ;;  %v1225_v16 = vpop.f32.mrf.mxu2 }
 0x17d   : > { %v1141_v10 = vpop.f32.mrf.mxu1 }
 0x183   : > { %v1311_v2 = vpop.f32.mrf.mxu3 }
 0x184   : > { %v1058_v17 = vpop.f32.mrf.mxu0  ;;  %v1228_v51 = vpop.f32.mrf.mxu2 }
 0x18b   : > { %v1314_v43 = vpop.f32.mrf.mxu3 }
 0x18c   : > { %v6314_v21 = vpop.f32.mrf.mxu0 }
 0x18d   : > { %8350 = vst [vmem:[#allocation17_spill] sm:$0xff] %v6314_v21  ;;  %v894_v21 = vadd.f32 %v874_v48, %v797_v39  ;;  %v1151_v48 = vadd.f32 %v1129_v18, %v1065_v36 }
 0x18f   : > { %v980_v46 = vadd.f32 %v960_v50, %v894_v21  ;;  %v1150_v50 = vadd.f32 %v1126_v13, %v1064_v45  ;;  %v1154_v13 = vadd.f32 %v1138_v52, %v1068_v59 }
 0x191   : > { %v1066_v39 = vadd.f32 %v1046_v3, %v980_v46  ;;  %v1237_v63 = vadd.f32 %v1213_v14, %v1150_v50  ;;  %v8354_v46 = vld [vmem:[#allocation13_spill] sm:$0xff] }
 0x193   : > { %v1152_v41 = vadd.f32 %v1132_v22, %v1066_v39  ;;  %v1323_v3 = vadd.f32 %v1299_v15, %v1237_v63  ;;  %v8358_v15 = vld [vmem:[#allocation16_spill] sm:$0xff] }
 0x194   : > { %v6316_v24 = vpop.f32.mrf.mxu0  ;;  %v8359_v36 = vld [vmem:[#allocation17_spill] sm:$0xff] }
 0x195   : > { %8351 = vst [vmem:[#allocation18_spill] sm:$0xff] %v6316_v24  ;;  %v800_v24 = vadd.f32 %v799_v53, %v6288_v35  ;;  %v809_v35 = vadd.f32 %v808_v4, %v8353_v37  ;;  %v983_v53 = vadd.f32 %v969_v1, %v897_v29  ;;  %v1239_v9 = vadd.f32 %v1219_v23, %v1152_v41  ;;  %v1231_v4 = vpop.f32.mrf.mxu2 }
 0x197   : > { %v895_v49 = vadd.f32 %v877_v54, %v800_v24  ;;  %v898_v38 = vadd.f32 %v886_v5, %v809_v35  ;;  %v1238_v54 = vadd.f32 %v1216_v19, %v1151_v48  ;;  %v1069_v58 = vadd.f32 %v1055_v12, %v983_v53  ;;  %v1317_v12 = vpop.f32.mrf.mxu3 }
 0x198   : > { %v1325_v1 = vadd.f32 %v1305_v25, %v1239_v9  ;;  %v1241_v19 = vadd.f32 %v1225_v16, %v1154_v13 }
 0x199   : > { %v981_v57 = vadd.f32 %v963_v55, %v895_v49  ;;  %v984_v62 = vadd.f32 %v972_v7, %v898_v38  ;;  %v1324_v11 = vadd.f32 %v1302_v20, %v1238_v54  ;;  %v1144_v49 = vpop.f32.mrf.mxu1  ;;  %v8355_v55 = vld [vmem:[#allocation14_spill] sm:$0xff]  ;;  %v1155_v14 = vadd.f32 %v1141_v10, %v1069_v58 }
 0x19a   : > { %v812_v0 = vadd.f32 %v8355_v55, %v8354_v46  ;;  %v1327_v31 = vadd.f32 %v1311_v2, %v1241_v19  ;;  %v5887_v55 = vmov 256.0  }
 0x19b   : > { %v1067_v40 = vadd.f32 %v1049_v6, %v981_v57  ;;  %v1070_v61 = vadd.f32 %v1058_v17, %v984_v62  ;;  %v1242_v24 = vadd.f32 %v1228_v51, %v1155_v14  ;;  %5813 = vrcp.f32 %v5887_v55 }
 0x19c   : > { %v1388_v26 = vpop.f32.mrf.mxu0  ;;  %v899_v7 = vadd.f32 %v8356_v8, %v812_v0  ;;  %v8357_v21 = vld [vmem:[#allocation18_spill] sm:$0xff] }
 0x19d   : > { %v1153_v60 = vadd.f32 %v1135_v27, %v1067_v40  ;;  %v6329_v18 = vadd.f32 %v1388_v26, %v1324_v11  ;;  %v1409_v22 = vadd.f32 %v8357_v21, %v1323_v3  ;;  %v1156_v27 = vadd.f32 %v1144_v49, %v1070_v61  ;;  %v1234_v57 = vpop.f32.mrf.mxu2 }
 0x19e   : > { %v985_v17 = vadd.f32 %v8358_v15, %v899_v7  ;;  %v1328_v52 = vadd.f32 %v1314_v43, %v1242_v24 }
 0x19f   : > { %v1240_v5 = vadd.f32 %v1222_v28, %v1153_v60  ;;  %v1418_v25 = vsel %vm649_vm3, %v6329_v18, 0.0  ;;  %v1243_v26 = vadd.f32 %v1231_v4, %v1156_v27  ;;  %v1417_v10 = vsel %vm649_vm3, %v1409_v22, 0.0  ;;  %v1320_v37 = vpop.f32.mrf.mxu3 }
 0x1a0   : > { %v1071_v33 = vadd.f32 %v8359_v36, %v985_v17  ;;  %v1419_v42 = vadd.f32 %v1418_v25, %v1417_v10 }
 0x1a1   : > { %v1326_v20 = vadd.f32 %v1308_v30, %v1240_v5  ;;  %v1329_v51 = vadd.f32 %v1317_v12, %v1243_v26  ;;  %v1147_v2 = vpop.f32.mrf.mxu1  ;;  %v5814_v0 = vpop.eup %5813 }
 0x1a2   : > { %v1157_v29 = vadd.f32 %v1147_v2, %v1071_v33  ;;  %v1443_v3 = vmul.f32 256.0, %v5814_v0  ;;  %vm1447_vm4 = vweird.f32 %v5814_v0 }
 0x1a4   : > { %v1391_v32 = vpop.f32.mrf.mxu0  ;;  %v1244_v44 = vadd.f32 %v1234_v57, %v1157_v29  ;;  %v1444_v61 = vsub.f32 1.0, %v1443_v3 }
 0x1a5   : > { %v1411_v23 = vadd.f32 %v1391_v32, %v1325_v1 }
 0x1a6   : > { %v1445_v4 = vmul.f32 %v5814_v0, %v1444_v61 }
 0x1a7   : > { %v1420_v16 = vsel %vm649_vm3, %v1411_v23, 0.0 }
 0x1a8   : > { %v1421_v39 = vadd.f32 %v1420_v16, %v1419_v42 }
 0x1ac   : > { %v1394_v56 = vpop.f32.mrf.mxu0 }
 0x1ad   : > { %v1412_v28 = vadd.f32 %v1394_v56, %v1326_v20 }
 0x1af   : > { %v1422_v45 = vsel %vm649_vm3, %v1412_v28, 0.0 }
 0x1b0   : > { %v1423_v35 = vadd.f32 %v1422_v45, %v1421_v39 }
 0x1b4   : > { %v1397_v34 = vpop.f32.mrf.mxu0 }
 0x1b5   : > { %v1413_v30 = vadd.f32 %v1397_v34, %v1327_v31  ;;  %v1330_v34 = vadd.f32 %v1320_v37, %v1244_v44 }
 0x1b7   : > { %v1424_v56 = vsel %vm649_vm3, %v1413_v30, 0.0 }
 0x1b8   : > { %v1425_v40 = vadd.f32 %v1424_v56, %v1423_v35 }
 0x1bc   : > { %v1400_v6 = vpop.f32.mrf.mxu0 }
 0x1bd   : > { %v1414_v47 = vadd.f32 %v1400_v6, %v1328_v52  ;;  %v1446_v6 = vadd.f32 %v5814_v0, %v1445_v4 }
 0x1bf   : > { %v1426_v48 = vsel %vm649_vm3, %v1414_v47, 0.0  ;;  %v6344_v5 = vsel %vm1447_vm4, %v5814_v0, %v1446_v6 }
 0x1c0   : > { %v1427_v53 = vadd.f32 %v1426_v48, %v1425_v40  ;;  %8360 = vst [vmem:[#allocation11_spill] sm:$0xff] %v6344_v5 }
 0x1c4   : > { %v1403_v32 = vpop.f32.mrf.mxu0 }
 0x1c5   : > { %v1415_v43 = vadd.f32 %v1403_v32, %v1329_v51 }
 0x1c7   : > { %v1428_v38 = vsel %vm649_vm3, %v1415_v43, 0.0 }
 0x1c8   : > { %v1429_v41 = vadd.f32 %v1428_v38, %v1427_v53 }
 0x1cc   : > { %v1406_v50 = vpop.f32.mrf.mxu0 }
 0x1cd   : > { %v1416_v54 = vadd.f32 %v1406_v50, %v1330_v34 }
 0x1cf   : > { %v1430_v59 = vsel %vm649_vm3, %v1416_v54, 0.0 }
 0x1d0   : > { %v1431_v62 = vadd.f32 %v1430_v59, %v1429_v41 }
 0x1d2   : > { %1432 = vadd.xlane.f32.xlu1 %v1431_v62  ;;  %v6376_v62 = vld [vmem:[%s8308_s3] ss:$0 sm:$0xff] }
 0x245   : > { %v1433_v63 = vpop.xlane.xlu1 %1432 }
 0x246   : > { %v1434_v58 = vrot.slane %v1433_v63, 4 }
 0x248   : > { %v1435_v9 = vadd.f32 %v1434_v58, %v1433_v63 }
 0x24a   : > { %v1436_v11 = vrot.slane %v1435_v9, 2 }
 0x24c   : > { %v1437_v60 = vadd.f32 %v1436_v11, %v1435_v9 }
 0x24e   : > { %v1438_v49 = vrot.slane %v1437_v60, 1 }
 0x250   : > { %v1439_v46 = vadd.f32 %v1438_v49, %v1437_v60  ;;  %v6387_v49 = vld [vmem:[%s8309_s4] ss:$0 sm:$0xff] }
 0x252   : > { %5777 = vpush %v1439_v46 }
 0x283   : > { %s5778_s24 = spop %5777 }
 0x284   : > { %v1441_v1 = vstv %s5778_s24 }
 0x285   : > { %v1449_v13 = vmul.f32 %v6344_v5, %v1441_v1 }
 0x287   : > { %v1450_v8 = vsub.f32 %v1409_v22, %v1449_v13  ;;  %v1451_v7 = vsub.f32 %v6329_v18, %v1449_v13  ;;  %v1452_v14 = vsub.f32 %v1411_v23, %v1449_v13  ;;  %v1453_v12 = vsub.f32 %v1412_v28, %v1449_v13 }
 0x288   : > { %v6348_v19 = vsub.f32 %v1413_v30, %v1449_v13  ;;  %v6350_v27 = vsub.f32 %v1414_v47, %v1449_v13  ;;  %v6354_v26 = vsub.f32 %v1415_v43, %v1449_v13  ;;  %v6359_v28 = vsub.f32 %v1416_v54, %v1449_v13 }
 0x289   : > { %v1458_v20 = vmul.f32 %v1450_v8, %v1450_v8  ;;  %v1459_v21 = vmul.f32 %v1451_v7, %v1451_v7  ;;  %v1460_v24 = vmul.f32 %v1452_v14, %v1452_v14  ;;  %v1461_v15 = vmul.f32 %v1453_v12, %v1453_v12 }
 0x28a   : > { %v1462_v18 = vmul.f32 %v6348_v19, %v6348_v19  ;;  %v1463_v52 = vmul.f32 %v6350_v27, %v6350_v27  ;;  %v1464_v10 = vmul.f32 %v6354_v26, %v6354_v26  ;;  %v1465_v42 = vmul.f32 %v6359_v28, %v6359_v28 }
 0x28b   : > { %v1466_v17 = vsel %vm649_vm3, %v1458_v20, 0.0  ;;  %v1467_v31 = vsel %vm649_vm3, %v1459_v21, 0.0  ;;  %v1469_v22 = vsel %vm649_vm3, %v1460_v24, 0.0  ;;  %v1471_v36 = vsel %vm649_vm3, %v1461_v15, 0.0 }
 0x28c   : > { %v1468_v25 = vadd.f32 %v1467_v31, %v1466_v17  ;;  %v1473_v16 = vsel %vm649_vm3, %v1462_v18, 0.0  ;;  %v1475_v32 = vsel %vm649_vm3, %v1463_v52, 0.0  ;;  %v1477_v45 = vsel %vm649_vm3, %v1464_v10, 0.0 }
 0x28d   : > { %v1479_v2 = vsel %vm649_vm3, %v1465_v42, 0.0 }
 0x28e   : > { %v1470_v23 = vadd.f32 %v1469_v22, %v1468_v25 }
 0x290   : > { %v1472_v33 = vadd.f32 %v1471_v36, %v1470_v23 }
 0x292   : > { %v1474_v30 = vadd.f32 %v1473_v16, %v1472_v33 }
 0x294   : > { %v1476_v51 = vadd.f32 %v1475_v32, %v1474_v30 }
 0x296   : > { %v1478_v47 = vadd.f32 %v1477_v45, %v1476_v51 }
 0x298   : > { %v1480_v57 = vadd.f32 %v1479_v2, %v1478_v47 }
 0x29a   : > { %1481 = vadd.xlane.f32.xlu2 %v1480_v57 }
 0x30d   : > { %v1482_v39 = vpop.xlane.xlu2 %1481 }
 0x30e   : > { %v1483_v29 = vrot.slane %v1482_v39, 4 }
 0x310   : > { %v1484_v56 = vadd.f32 %v1483_v29, %v1482_v39 }
 0x312   : > { %v1485_v43 = vrot.slane %v1484_v56, 2 }
 0x314   : > { %v1486_v37 = vadd.f32 %v1485_v43, %v1484_v56 }
 0x316   : > { %v1487_v35 = vrot.slane %v1486_v37, 1 }
 0x318   : > { %v1488_v44 = vadd.f32 %v1487_v35, %v1486_v37 }
 0x31a   : > { %5779 = vpush %v1488_v44 }
 0x34b   : > { %s5780_s25 = spop %5779 }
 0x34c   : > { %v1490_v48 = vstv %s5780_s25 }
 0x34d   : > { %v1491_v40 = vmul.f32 %v1490_v48, %v6344_v5 }
 0x34f   : > { %v1492_v34 = vadd.f32 1e-05, %v1491_v40 }
 0x351   : > { %5815 = vrsqrt.f32 %v1492_v34  ;;  %vm1499_vm6 = vweird.f32 %v1492_v34 }
 0x357   : > { %v5816_v38 = vpop.eup %5815 }
 0x358   : > { %v1494_v53 = vmul.f32 %v5816_v38, %v1492_v34  ;;  %vm1500_vm5 = vweird.f32 %v5816_v38 }
 0x359   : > { %vm1501_vm7 = vmor %vm1499_vm6, %vm1500_vm5 }
 0x35a   : > { %v1495_v50 = vmul.f32 %v5816_v38, %v1494_v53 }
 0x35c   : > { %v1496_v54 = vmul.f32 0.5, %v1495_v50 }
 0x35e   : > { %v1497_v41 = vsub.f32 1.5, %v1496_v54 }
 0x360   : > { %v1498_v59 = vmul.f32 %v5816_v38, %v1497_v41 }
 0x362   : > { %v6378_v63 = vsel %vm1501_vm7, %v5816_v38, %v1498_v59 }
 0x363   : > { %v1503_v58 = vmul.f32 %v6378_v63, %v1450_v8  ;;  %v1504_v9 = vmul.f32 %v6378_v63, %v1451_v7  ;;  %v1505_v11 = vmul.f32 %v6378_v63, %v1452_v14  ;;  %v1506_v60 = vmul.f32 %v6378_v63, %v1453_v12 }
 0x364   : > { %v1507_v31 = vmul.f32 %v6378_v63, %v6348_v19  ;;  %v1508_v16 = vmul.f32 %v6378_v63, %v6350_v27 }
 0x365   : > { %v1515_v46 = vmul.f32 %v6376_v62, %v1503_v58  ;;  %v1516_v55 = vmul.f32 %v6376_v62, %v1504_v9  ;;  %v1517_v0 = vmul.f32 %v6376_v62, %v1505_v11  ;;  %v1518_v3 = vmul.f32 %v6376_v62, %v1506_v60 }
 0x366   : > { %v1519_v32 = vmul.f32 %v6376_v62, %v1507_v31  ;;  %v1520_v35 = vmul.f32 %v6376_v62, %v1508_v16 }
 0x367   : > { %v6394_v61 = vadd.f32 %v6387_v49, %v1515_v46  ;;  %v6397_v4 = vadd.f32 %v6387_v49, %v1516_v55  ;;  %v6400_v6 = vadd.f32 %v6387_v49, %v1517_v0  ;;  %v6403_v1 = vadd.f32 %v6387_v49, %v1518_v3 }
 0x368   : > { %v6457_v58 = vadd.f32 %v6387_v49, %v1519_v32  ;;  %v6462_v46 = vadd.f32 %v6387_v49, %v1520_v35 }
 0x369   : > { %v6406_v13 = vmul.f32 0.70710677, %v6394_v61  ;;  %v6409_v8 = vmul.f32 0.70710677, %v6397_v4  ;;  %v6412_v7 = vmul.f32 0.70710677, %v6400_v6 }
 0x36a   : > { %v6415_v14 = vmul.f32 0.70710677, %v6403_v1  ;;  %v6476_v16 = vmul.f32 0.70710677, %v6462_v46 }
 0x36b   : > { %v1551_v12 = vmul.f32 %v6406_v13, %v6406_v13  ;;  %v1591_v20 = vmul.f32 %v6409_v8, %v6409_v8  ;;  %v1631_v21 = vmul.f32 %v6412_v7, %v6412_v7 }
 0x36c   : > { %v1671_v24 = vmul.f32 %v6415_v14, %v6415_v14 }
 0x36d   : > { %v6425_v15 = vmin.f32 %v1551_v12, 16.0  ;;  %v6427_v17 = vmin.f32 %v1591_v20, 16.0  ;;  %v6431_v25 = vmin.f32 %v1631_v21, 16.0 }
 0x36e   : > { %v6433_v18 = vmin.f32 %v1671_v24, 16.0 }
 0x36f   : > { %v1553_v22 = vmul.f32 2.1237322e-06, %v6425_v15  ;;  %v1564_v23 = vmul.f32 3.8918573e-05, %v6425_v15  ;;  %v1593_v52 = vmul.f32 2.1237322e-06, %v6427_v17 }
 0x370   : > { %v1604_v36 = vmul.f32 3.8918573e-05, %v6427_v17  ;;  %v1633_v33 = vmul.f32 2.1237322e-06, %v6431_v25  ;;  %v1644_v10 = vmul.f32 3.8918573e-05, %v6431_v25 }
 0x371   : > { %v1554_v19 = vadd.f32 0.00028619796, %v1553_v22  ;;  %v1565_v30 = vadd.f32 0.001143296, %v1564_v23  ;;  %v1594_v42 = vadd.f32 0.00028619796, %v1593_v52 }
 0x372   : > { %v1605_v51 = vadd.f32 0.001143296, %v1604_v36  ;;  %v1634_v45 = vadd.f32 0.00028619796, %v1633_v33  ;;  %v1645_v47 = vadd.f32 0.001143296, %v1644_v10  ;;  %v1509_v10 = vmul.f32 %v6378_v63, %v6354_v26 }
 0x373   : > { %v1555_v2 = vmul.f32 %v1554_v19, %v6425_v15  ;;  %v1566_v57 = vmul.f32 %v1565_v30, %v6425_v15  ;;  %v1595_v39 = vmul.f32 %v1594_v42, %v6427_v17  ;;  %v1673_v29 = vmul.f32 2.1237322e-06, %v6433_v18 }
 0x374   : > { %v1606_v56 = vmul.f32 %v1605_v51, %v6427_v17  ;;  %v1635_v27 = vmul.f32 %v1634_v45, %v6431_v25  ;;  %v1646_v43 = vmul.f32 %v1645_v47, %v6431_v25  ;;  %v1684_v37 = vmul.f32 3.8918573e-05, %v6433_v18 }
 0x375   : > { %v1556_v44 = vadd.f32 0.0036580483, %v1555_v2  ;;  %v1567_v48 = vadd.f32 0.014752088, %v1566_v57  ;;  %v1596_v40 = vadd.f32 0.0036580483, %v1595_v39  ;;  %v1510_v47 = vmul.f32 %v6378_v63, %v6359_v28 }
 0x376   : > { %v1607_v34 = vadd.f32 0.014752088, %v1606_v56  ;;  %v1636_v38 = vadd.f32 0.0036580483, %v1635_v27  ;;  %v1647_v53 = vadd.f32 0.014752088, %v1646_v43  ;;  %v1521_v43 = vmul.f32 %v6376_v62, %v1509_v10 }
 0x377   : > { %v1557_v50 = vmul.f32 %v1556_v44, %v6425_v15  ;;  %v1568_v54 = vmul.f32 %v1567_v48, %v6425_v15  ;;  %v1597_v41 = vmul.f32 %v1596_v40, %v6427_v17  ;;  %v1674_v59 = vadd.f32 0.00028619796, %v1673_v29 }
 0x378   : > { %v1608_v9 = vmul.f32 %v1607_v34, %v6427_v17  ;;  %v1648_v11 = vmul.f32 %v1647_v53, %v6431_v25  ;;  %v1685_v60 = vadd.f32 0.001143296, %v1684_v37  ;;  %v1637_v12 = vmul.f32 %v1636_v38, %v6431_v25 }
 0x379   : > { %v1569_v55 = vadd.f32 0.112945676, %v1568_v54  ;;  %v1675_v0 = vmul.f32 %v1674_v59, %v6433_v18  ;;  %v1558_v24 = vadd.f32 0.05243302, %v1557_v50  ;;  %v1598_v22 = vadd.f32 0.05243302, %v1597_v41 }
 0x37a   : > { %v1609_v3 = vadd.f32 0.112945676, %v1608_v9  ;;  %v1649_v20 = vadd.f32 0.112945676, %v1648_v11  ;;  %v1686_v21 = vmul.f32 %v1685_v60, %v6433_v18  ;;  %v6469_v23 = vmul.f32 0.70710677, %v6457_v58 }
 0x37b   : > { %v1570_v31 = vmul.f32 %v1569_v55, %v6425_v15  ;;  %v1676_v30 = vadd.f32 0.0036580483, %v1675_v0  ;;  %v1638_v32 = vadd.f32 0.05243302, %v1637_v12  ;;  %v1559_v2 = vmul.f32 %v1558_v24, %v6425_v15 }
 0x37c   : > { %v1610_v52 = vmul.f32 %v1609_v3, %v6427_v17  ;;  %v1650_v36 = vmul.f32 %v1649_v20, %v6431_v25  ;;  %v1687_v33 = vadd.f32 0.014752088, %v1686_v21  ;;  %v1599_v39 = vmul.f32 %v1598_v22, %v6427_v17 }
 0x37d   : > { %v1571_v19 = vadd.f32 0.4994258, %v1570_v31  ;;  %v1711_v27 = vmul.f32 %v6469_v23, %v6469_v23  ;;  %v1677_v28 = vmul.f32 %v1676_v30, %v6433_v18  ;;  %v1751_v63 = vmul.f32 %v6476_v16, %v6476_v16 }
 0x37e   : > { %v1611_v42 = vadd.f32 0.4994258, %v1610_v52  ;;  %v1651_v51 = vadd.f32 0.4994258, %v1650_v36  ;;  %v1688_v45 = vmul.f32 %v1687_v33, %v6433_v18  ;;  %v1639_v44 = vmul.f32 %v1638_v32, %v6431_v25 }
 0x37f   : > { %v1572_v57 = vmul.f32 %v1571_v19, %v6425_v15  ;;  %v1560_v40 = vadd.f32 0.18741608, %v1559_v2  ;;  %v1600_v34 = vadd.f32 0.18741608, %v1599_v39  ;;  %v1522_v38 = vmul.f32 %v6376_v62, %v1510_v47 }
 0x380   : > { %v1612_v26 = vmul.f32 %v1611_v42, %v6427_v17  ;;  %v1652_v29 = vmul.f32 %v1651_v51, %v6431_v25  ;;  %v1689_v56 = vadd.f32 0.112945676, %v1688_v45  ;;  %v6503_v50 = vmin.f32 %v1711_v27, 16.0 }
 0x381   : > { %v6489_v37 = vadd.f32 1.0, %v1572_v57  ;;  %v6506_v54 = vadd.f32 %v6387_v49, %v1521_v43  ;;  %v1678_v41 = vadd.f32 0.05243302, %v1677_v28  ;;  %v6508_v59 = vmin.f32 %v1751_v63, 16.0 }
 0x382   : > { %v6494_v35 = vadd.f32 1.0, %v1612_v26  ;;  %v6497_v48 = vadd.f32 1.0, %v1652_v29  ;;  %v1690_v53 = vmul.f32 %v1689_v56, %v6433_v18  ;;  %v1640_v9 = vadd.f32 0.18741608, %v1639_v44 }
 0x383   : > { %5817 = vrcp.f32 %v6489_v37  ;;  %v1561_v11 = vmul.f32 %v1560_v40, %v6425_v15  ;;  %v1601_v60 = vmul.f32 %v1600_v34, %v6427_v17  ;;  %v6514_v62 = vadd.f32 %v6387_v49, %v1522_v38 }
 0x384   : > { %5819 = vrcp.f32 %v6494_v35  ;;  %v1691_v55 = vadd.f32 0.4994258, %v1690_v53  ;;  %v1713_v0 = vmul.f32 2.1237322e-06, %v6503_v50  ;;  %v6520_v12 = vmul.f32 0.70710677, %v6506_v54 }
 0x385   : > { %5821 = vrcp.f32 %v6497_v48  ;;  %v1679_v20 = vmul.f32 %v1678_v41, %v6433_v18  ;;  %v1724_v21 = vmul.f32 3.8918573e-05, %v6503_v50  ;;  %v1753_v24 = vmul.f32 2.1237322e-06, %v6508_v59 }
 0x386   : > { %v1641_v17 = vmul.f32 %v1640_v9, %v6431_v25  ;;  %v1692_v31 = vmul.f32 %v1691_v55, %v6433_v18  ;;  %v1714_v22 = vadd.f32 0.00028619796, %v1713_v0  ;;  %v6532_v52 = vmul.f32 0.5, %v6394_v61 }
 0x387   : > { %v6535_v36 = vmul.f32 0.5, %v6397_v4  ;;  %v1562_v33 = vadd.f32 1.1283791, %v1561_v11  ;;  %v1602_v10 = vadd.f32 1.1283791, %v1601_v60  ;;  %v6543_v25 = vmul.f32 0.5, %v6400_v6 }
 0x388   : > { %v6539_v30 = vadd.f32 1.0, %v1692_v31  ;;  %v1715_v42 = vmul.f32 %v1714_v22, %v6503_v50  ;;  %v1725_v32 = vadd.f32 0.001143296, %v1724_v21  ;;  %v1754_v51 = vadd.f32 0.00028619796, %v1753_v24 }
 0x389   : > { %v6517_v3 = vpop.eup %5817  ;;  %v6546_v45 = vmul.f32 0.70710677, %v6514_v62  ;;  %v1680_v4 = vadd.f32 0.18741608, %v1679_v20  ;;  %v1642_v2 = vadd.f32 1.1283791, %v1641_v17  ;;  %v1791_v57 = vmul.f32 %v6520_v12, %v6520_v12 }
 0x38a   : > { %v6525_v15 = vpop.eup %5819  ;;  %v1575_v49 = vmul.f32 %v6517_v3, %v6489_v37  ;;  %5823 = vrcp.f32 %v6539_v30  ;;  %v6554_v39 = vmul.f32 %v1562_v33, %v6406_v13  ;;  %v1585_v6 = vand.u32 2147483648, %v6489_v37 }
 0x38b   : > { %v6537_v19 = vpop.eup %5821  ;;  %v1615_v61 = vmul.f32 %v6525_v15, %v6494_v35  ;;  %v1716_v29 = vadd.f32 0.0036580483, %v1715_v42  ;;  %vm1579_vm8 = vweird.f32 %v6489_v37  ;;  %v1583_v56 = vand.u32 2147483647, %v6489_v37 }
 0x38c   : > { %v1576_v47 = vsub.f32 1.0, %v1575_v49  ;;  %v1655_v26 = vmul.f32 %v6537_v19, %v6497_v48  ;;  %v6562_v27 = vmul.f32 %v1602_v10, %v6409_v8  ;;  %v1726_v43 = vmul.f32 %v1725_v32, %v6503_v50 }
 0x38d   : > { %v1755_v28 = vmul.f32 %v1754_v51, %v6508_v59  ;;  %v1616_v63 = vsub.f32 1.0, %v1615_v61  ;;  %v1623_v13 = vand.u32 2147483647, %v6494_v35  ;;  %v1625_v44 = vand.u32 2147483648, %v6494_v35 }
 0x38e   : > { %v1681_v40 = vmul.f32 %v1680_v4, %v6433_v18  ;;  %v1577_v34 = vmul.f32 %v6517_v3, %v1576_v47  ;;  %v6571_v38 = vmul.f32 %v1642_v2, %v6412_v7  ;;  %v1665_v53 = vand.u32 2147483648, %v6497_v48 }
 0x38f   : > { %v1727_v8 = vadd.f32 0.014752088, %v1726_v43  ;;  %v1586_v41 = vor.u32 1.1754944e-38, %v1585_v6  ;;  %v1656_v9 = vsub.f32 1.0, %v1655_v26  ;;  %v1663_v11 = vand.u32 2147483647, %v6497_v48 }
 0x390   : > { %v1717_v60 = vmul.f32 %v1716_v29, %v6503_v50  ;;  %v6576_v55 = vpop.eup %5823  ;;  %v1756_v20 = vadd.f32 0.0036580483, %v1755_v28  ;;  %v1764_v18 = vmul.f32 3.8918573e-05, %v6508_v59  ;;  %v6580_v21 = vmin.f32 %v1791_v57, 16.0 }
 0x391   : > { %v1728_v0 = vmul.f32 %v1727_v8, %v6503_v50  ;;  %vm6582_vm9 = vcmp.eq.f32.partialorder %v1583_v56, 8.507059e+37  ;;  %v1617_v24 = vmul.f32 %v6525_v15, %v1616_v63  ;;  %vm1619_vm10 = vweird.f32 %v6494_v35 }
 0x392   : > { %v1626_v49 = vor.u32 1.1754944e-38, %v1625_v44  ;;  %v1682_v17 = vadd.f32 1.1283791, %v1681_v40  ;;  %v1695_v31 = vmul.f32 %v6576_v55, %v6539_v30  ;;  %v1578_v22 = vadd.f32 %v6517_v3, %v1577_v34 }
 0x393   : > { %vm1580_vm11 = vweird.f32 %v6517_v3  ;;  %vm1659_vm12 = vweird.f32 %v6497_v48  ;;  %v1666_v33 = vor.u32 1.1754944e-38, %v1665_v53  ;;  %v1729_v10 = vadd.f32 0.112945676, %v1728_v0 }
 0x394   : > { %vm1620_vm13 = vweird.f32 %v6525_v15  ;;  %v1657_v42 = vmul.f32 %v6537_v19, %v1656_v9  ;;  %v1696_v32 = vsub.f32 1.0, %v1695_v31  ;;  %v1718_v51 = vadd.f32 0.05243302, %v1717_v60  ;;  %vm6600_vm14 = vmor %vm1579_vm8, %vm1580_vm11 }
 0x395   : > { %v1730_v61 = vmul.f32 %v1729_v10, %v6503_v50  ;;  %v1757_v4 = vmul.f32 %v1756_v20, %v6508_v59  ;;  %v1765_v47 = vadd.f32 0.001143296, %v1764_v18  ;;  %v1793_v2 = vmul.f32 2.1237322e-06, %v6580_v21  ;;  %vm6638_vm5 = vmor %vm1619_vm10, %vm1620_vm13 }
 0x396   : > { %v1618_v6 = vadd.f32 %v6525_v15, %v1617_v24  ;;  %vm6605_vm15 = vcmp.eq.f32.partialorder %v1623_v13, 8.507059e+37  ;;  %vm1660_vm2 = vweird.f32 %v6537_v19  ;;  %v6611_v29 = vmul.f32 %v1682_v17, %v6415_v14 }
 0x397   : > { %v1804_v56 = vmul.f32 3.8918573e-05, %v6580_v21  ;;  %v1582_v37 = vsel %vm6600_vm14, %v6517_v3, %v1578_v22  ;;  %vm6617_vm4 = vcmp.eq.f32.partialorder %v1663_v11, 8.507059e+37  ;;  %v1731_v28 = vadd.f32 0.4994258, %v1730_v61  ;;  %vm6654_vm6 = vmor %vm1659_vm12, %vm1660_vm2 }
 0x398   : > { %v1766_v63 = vmul.f32 %v1765_v47, %v6508_v59  ;;  %v1794_v13 = vadd.f32 0.00028619796, %v1793_v2  ;;  %v1658_v44 = vadd.f32 %v6537_v19, %v1657_v42  ;;  %v1697_v40 = vmul.f32 %v6576_v55, %v1696_v32 }
 0x399   : > { %v1805_v14 = vadd.f32 0.001143296, %v1804_v56  ;;  %v1831_v34 = vmul.f32 %v6546_v45, %v6546_v45  ;;  %v1719_v53 = vmul.f32 %v1718_v51, %v6503_v50  ;;  %v1732_v3 = vmul.f32 %v1731_v28, %v6503_v50 }
 0x39a   : > { %v1758_v8 = vadd.f32 0.05243302, %v1757_v4  ;;  %v1767_v9 = vadd.f32 0.014752088, %v1766_v63  ;;  %v1703_v11 = vand.u32 2147483647, %v6539_v30  ;;  %v1795_v0 = vmul.f32 %v1794_v13, %v6580_v21 }
 0x39b   : > { %v1705_v60 = vand.u32 2147483648, %v6539_v30  ;;  %v1806_v20 = vmul.f32 %v1805_v14, %v6580_v21  ;;  %v1587_v18 = vsel %vm6582_vm9, %v1586_v41, %v1582_v37  ;;  %v6642_v17 = vadd.f32 1.0, %v1732_v3 }
 0x39c   : > { %v1768_v31 = vmul.f32 %v1767_v9, %v6508_v59  ;;  %v6645_v22 = vmin.f32 %v1831_v34, 16.0  ;;  %v1622_v10 = vsel %vm6638_vm5, %v6525_v15, %v1618_v6  ;;  %v1698_v41 = vadd.f32 %v6576_v55, %v1697_v40 }
 0x39d   : > { %vm1700_vm7 = vweird.f32 %v6576_v55  ;;  %v1807_v7 = vadd.f32 0.014752088, %v1806_v20  ;;  %v1662_v42 = vsel %vm6654_vm6, %v6537_v19, %v1658_v44  ;;  %v1720_v32 = vadd.f32 0.18741608, %v1719_v53 }
 0x39e   : > { %5825 = vrcp.f32 %v6642_v17  ;;  %v1759_v15 = vmul.f32 %v1758_v8, %v6508_v59  ;;  %vm1699_vm8 = vweird.f32 %v6539_v30  ;;  %v1706_v48 = vor.u32 1.1754944e-38, %v1705_v60 }
 0x39f   : > { %v1769_v51 = vadd.f32 0.112945676, %v1768_v31  ;;  %v1796_v61 = vadd.f32 0.0036580483, %v1795_v0  ;;  %v1588_v4 = vmul.f32 %v1587_v18, %v6554_v39  ;;  %v1627_v47 = vsel %vm6605_vm15, %v1626_v49, %v1622_v10  ;;  %vm6669_vm9 = vmor %vm1699_vm8, %vm1700_vm7 }
 0x3a0   : > { %v1808_v19 = vmul.f32 %v1807_v7, %v6580_v21  ;;  %v1833_v57 = vmul.f32 2.1237322e-06, %v6645_v22  ;;  %v1667_v6 = vsel %vm6617_vm4, %v1666_v33, %v1662_v42  ;;  %v1702_v30 = vsel %vm6669_vm9, %v6576_v55, %v1698_v41 }
 0x3a1   : > { %v1770_v39 = vmul.f32 %v1769_v51, %v6508_v59  ;;  %v1844_v26 = vmul.f32 3.8918573e-05, %v6645_v22  ;;  %v1721_v49 = vmul.f32 %v1720_v32, %v6503_v50  ;;  %v1760_v56 = vadd.f32 0.18741608, %v1759_v15  ;;  %v1903_v51 = vld [vmem:[%s8310_s5] sm:$0xf] }
 0x3a2   : > { %v1809_v37 = vadd.f32 0.112945676, %v1808_v19  ;;  %v1834_v28 = vadd.f32 0.00028619796, %v1833_v57  ;;  %vm1704_vm10 = vcmp.eq.f32.partialorder %v1703_v11, 8.507059e+37  ;;  %v1797_v13 = vmul.f32 %v1796_v61, %v6580_v21  ;;  %v1895_v61 = vld [vmem:[#allocation2] sm:$0xff]  ;;  %5505 = vmatpush.msk.msra.mxu2 %vm701_vm1, %v1903_v51 }
 0x3a3   : > { %v1771_v63 = vadd.f32 0.4994258, %v1770_v39  ;;  %v1845_v44 = vadd.f32 0.001143296, %v1844_v26  ;;  %v5487_v33 = vclamps-f32 %v1588_v4, 1.0  ;;  %v1628_v40 = vmul.f32 %v1627_v47, %v6562_v27  ;;  %5506 = vmatmul.msk.f32.vlgmr.msra.gmra.mxu2 %vm649_vm3, %v1895_v61 }
 0x3a4   : > { %v5826_v43 = vpop.eup %5825  ;;  %v1707_v14 = vsel %vm1704_vm10, %v1706_v48, %v1702_v30  ;;  %v1810_v55 = vmul.f32 %v1809_v37, %v6580_v21  ;;  %v1668_v34 = vmul.f32 %v1667_v6, %v6571_v38  ;;  %v1835_v3 = vmul.f32 %v1834_v28, %v6645_v22  ;;  %v2050_v6 = vld [vmem:[#allocation2 + $0x2] sm:$0xff] }
 0x3a5   : > { %v1735_v53 = vmul.f32 %v5826_v43, %v6642_v17  ;;  %v1772_v50 = vmul.f32 %v1771_v63, %v6508_v59  ;;  %v1722_v8 = vadd.f32 1.1283791, %v1721_v49  ;;  %v1761_v9 = vmul.f32 %v1760_v56, %v6508_v59 }
 0x3a6   : > { %v1811_v11 = vadd.f32 0.4994258, %v1810_v55  ;;  %v1846_v60 = vmul.f32 %v1845_v44, %v6645_v22  ;;  %v1708_v0 = vmul.f32 %v1707_v14, %v6611_v29  ;;  %v1798_v18 = vadd.f32 0.05243302, %v1797_v13  ;;  %v5495_v14 = vld [vmem:[%s8310_s5 + $0x4] sm:$0xf] }
 0x3a7   : > { %v1736_v27 = vsub.f32 1.0, %v1735_v53  ;;  %v6693_v20 = vadd.f32 1.0, %v1772_v50  ;;  %v1743_v38 = vand.u32 2147483647, %v6642_v17  ;;  %v1745_v24 = vand.u32 2147483648, %v6642_v17  ;;  %5496 = vmatpush.msk.msra.mxu1 %vm701_vm1, %v5495_v14 }
 0x3a8   : > { %v1812_v31 = vmul.f32 %v1811_v11, %v6580_v21  ;;  %v1847_v10 = vadd.f32 0.014752088, %v1846_v60  ;;  %vm1740_vm11 = vweird.f32 %v5826_v43  ;;  %v1836_v59 = vadd.f32 0.0036580483, %v1835_v3 }
 0x3a9   : > { %v1737_v35 = vmul.f32 %v5826_v43, %v1736_v27  ;;  %5827 = vrcp.f32 %v6693_v20  ;;  %v5488_v41 = vclamps-f32 %v1628_v40, 1.0  ;;  %v5489_v7 = vclamps-f32 %v1668_v34, 1.0 }
 0x3aa   : > { %v1723_v29 = vmul.f32 %v1722_v8, %v6469_v23  ;;  %v6700_v42 = vadd.f32 1.0, %v1812_v31  ;;  %vm1739_vm12 = vweird.f32 %v6642_v17  ;;  %v1799_v15 = vmul.f32 %v1798_v18, %v6580_v21  ;;  %v5514_v23 = vld [vmem:[%s8310_s5 + $0x8] sm:$0xf] }
 0x3ab   : > { %v1738_v32 = vadd.f32 %v5826_v43, %v1737_v35  ;;  %v1848_v48 = vmul.f32 %v1847_v10, %v6645_v22  ;;  %v5490_v4 = vclamps-f32 %v1708_v0, 1.0  ;;  %vm1741_vm13 = vmor %vm1739_vm12, %vm1740_vm11  ;;  %v1746_v47 = vor.u32 1.1754944e-38, %v1745_v24  ;;  %5515 = vmatpush.msk.msra.mxu3 %vm701_vm1, %v5514_v23 }
 0x3ac   : > { %v1762_v2 = vadd.f32 1.1283791, %v1761_v9  ;;  %5829 = vrcp.f32 %v6700_v42  ;;  %vm1744_vm14 = vcmp.eq.f32.partialorder %v1743_v38, 8.507059e+37  ;;  %v1837_v19 = vmul.f32 %v1836_v59, %v6645_v22  ;;  %5516 = vmatmul.msk.f32.vlgmr.msra.gmra.mxu3 %vm649_vm3, %v2050_v6 }
 0x3ad   : > { %v1742_v17 = vsel %vm1741_vm13, %v5826_v43, %v1738_v32  ;;  %v1871_v57 = vadd.f32 1.0, %v5487_v33  ;;  %v1849_v39 = vadd.f32 0.112945676, %v1848_v48  ;;  %v1872_v26 = vadd.f32 1.0, %v5488_v41 }
 0x3ae   : > { %v1747_v30 = vsel %vm1744_vm14, %v1746_v47, %v1742_v17  ;;  %v1873_v49 = vadd.f32 1.0, %v5489_v7  ;;  %v1538_v37 = vmul.f32 0.5, %v6403_v1  ;;  %v1539_v28 = vmul.f32 0.5, %v6457_v58  ;;  %v5524_v58 = vld [vmem:[%s8310_s5 + $0xc] sm:$0xf] }
 0x3af   : > { %v5828_v56 = vpop.eup %5827  ;;  %v1748_v63 = vmul.f32 %v1747_v30, %v1723_v29  ;;  %v1800_v13 = vadd.f32 0.18741608, %v1799_v15  ;;  %v1763_v44 = vmul.f32 %v1762_v2, %v6476_v16  ;;  %v1850_v33 = vmul.f32 %v1849_v39, %v6645_v22  ;;  %v1904_v16 = vld [vmem:[#allocation2 + $0x1] sm:$0xff]  ;;  %5525 = vmatpush.msk.msrb.mxu0 %vm701_vm1, %v5524_v58 }
 0x3b0   : > { %v1775_v43 = vmul.f32 %v5828_v56, %v6693_v20  ;;  %v1874_v40 = vadd.f32 1.0, %v5490_v4  ;;  %v1838_v34 = vadd.f32 0.05243302, %v1837_v19  ;;  %v1879_v53 = vmul.f32 %v1871_v57, %v6532_v52  ;;  %5497 = vmatmul.msk.f32.vlgmr.msra.gmra.mxu1 %vm649_vm3, %v1904_v16  ;;  %v5534_v52 = vld [vmem:[%s8310_s5 + $0x10] sm:$0xf] }
 0x3b1   : > { %v5491_v55 = vclamps-f32 %v1748_v63, 1.0  ;;  %v1880_v1 = vmul.f32 %v1872_v26, %v6535_v36  ;;  %v1851_v8 = vadd.f32 0.4994258, %v1850_v33  ;;  %v1881_v9 = vmul.f32 %v1873_v49, %v6543_v25  ;;  %5535 = vmatpush.msk.msrb.mxu1 %vm701_vm1, %v5534_v52 }
 0x3b2   : > { %v5830_v50 = vpop.eup %5829  ;;  %v1776_v3 = vsub.f32 1.0, %v1775_v43  ;;  %v1882_v11 = vmul.f32 %v1874_v40, %v1538_v37  ;;  %v1785_v36 = vand.u32 2147483648, %v6693_v20  ;;  %v1801_v60 = vmul.f32 %v1800_v13, %v6580_v21  ;;  %1887 = vst.msk [vmem:[#allocation2 + $0x11] sm:$0xff] %vm649_vm3, %v1879_v53 }
 0x3b3   : > { %v1815_v0 = vmul.f32 %v5830_v50, %v6700_v42  ;;  %v1875_v27 = vadd.f32 1.0, %v5491_v55  ;;  %vm1780_vm15 = vweird.f32 %v5828_v56  ;;  %v1783_v18 = vand.u32 2147483647, %v6693_v20  ;;  %1888 = vst.msk [vmem:[#allocation2 + $0x21] sm:$0xff] %vm649_vm3, %v1880_v1  ;;  %v5544_v55 = vld [vmem:[%s8310_s5 + $0x14] sm:$0xf] }
 0x3b4   : > { %v1777_v25 = vmul.f32 %v5828_v56, %v1776_v3  ;;  %v1852_v38 = vmul.f32 %v1851_v8, %v6645_v22  ;;  %vm1779_vm2 = vweird.f32 %v6693_v20  ;;  %v1825_v21 = vand.u32 2147483648, %v6700_v42  ;;  %1889 = vst.msk [vmem:[#allocation2 + $0x31] sm:$0xff] %vm649_vm3, %v1881_v9  ;;  %5545 = vmatpush.msk.msrb.mxu2 %vm701_vm1, %v5544_v55 }
 0x3b5   : > { %v1816_v24 = vsub.f32 1.0, %v1815_v0  ;;  %v1883_v31 = vmul.f32 %v1875_v27, %v1539_v28  ;;  %vm1820_vm4 = vweird.f32 %v5830_v50  ;;  %v1839_v35 = vmul.f32 %v1838_v34, %v6645_v22  ;;  %1890 = vst.msk [vmem:[#allocation2 + $0x41] sm:$0xff] %vm649_vm3, %v1882_v11  ;;  %vm1781_vm5 = vmor %vm1779_vm2, %vm1780_vm15  ;;  %v5554_v34 = vld [vmem:[%s8310_s5 + $0x18] sm:$0xf] }
 0x3b6   : > { %v1778_v10 = vadd.f32 %v5828_v56, %v1777_v25  ;;  %v6749_v59 = vadd.f32 1.0, %v1852_v38  ;;  %v1786_v41 = vor.u32 1.1754944e-38, %v1785_v36  ;;  %v1802_v7 = vadd.f32 1.1283791, %v1801_v60  ;;  %5555 = vmatpush.msk.msrb.mxu3 %vm701_vm1, %v5554_v34  ;;  %v5564_v60 = vld [vmem:[%s8310_s5 + $0x1c] sm:$0xf] }
 0x3b7   : > { %v1817_v29 = vmul.f32 %v5830_v50, %v1816_v24  ;;  %v1823_v20 = vand.u32 2147483647, %v6700_v42  ;;  %1891 = vst.msk [vmem:[#allocation2 + $0x51] sm:$0xff] %vm649_vm3, %v1883_v31  ;;  %vm1784_vm6 = vcmp.eq.f32.partialorder %v1783_v18, 8.507059e+37  ;;  %vm1819_vm7 = vweird.f32 %v6700_v42  ;;  %5565 = vmatpush.msk.msra.mxu0 %vm701_vm1, %v5564_v60 }
 0x3b8   : > { %v1782_v32 = vsel %vm1781_vm5, %v5828_v56, %v1778_v10  ;;  %5831 = vrcp.f32 %v6749_v59  ;;  %vm1821_vm8 = vmor %vm1819_vm7, %vm1820_vm4  ;;  %v1826_v61 = vor.u32 1.1754944e-38, %v1825_v21  ;;  %v1840_v4 = vadd.f32 0.18741608, %v1839_v35 }
 0x3b9   : > { %v1787_v15 = vsel %vm1784_vm6, %v1786_v41, %v1782_v32  ;;  %v1818_v48 = vadd.f32 %v5830_v50, %v1817_v29  ;;  %v6757_v47 = vld [vmem:[#allocation2 + $0x11] sm:$0xff]  ;;  %v1803_v17 = vmul.f32 %v1802_v7, %v6520_v12  ;;  %vm1824_vm9 = vcmp.eq.f32.partialorder %v1823_v20, 8.507059e+37 }
 0x3ba   : > { %v1788_v51 = vmul.f32 %v1787_v15, %v1763_v44  ;;  %v1896_v2 = vld [vmem:[#allocation2 + $0x10] sm:$0xff]  ;;  %5498 = vmatmul.msk.f32.gmra.mxu1 %vm649_vm3, %v6757_v47  ;;  %v1540_v39 = vmul.f32 0.5, %v6462_v46  ;;  %v1841_v12 = vmul.f32 %v1840_v4, %v6645_v22  ;;  %v1541_v28 = vmul.f32 0.5, %v6506_v54  ;;  %v6774_v33 = vld [vmem:[#allocation2 + $0x21] sm:$0xff] }
 0x3bb   : > { %v6759_v23 = vld [vmem:[#allocation2 + $0x12] sm:$0xff]  ;;  %v1822_v19 = vsel %vm1821_vm8, %v5830_v50, %v1818_v48  ;;  %5507 = vmatmul.msk.f32.gmra.mxu2 %vm649_vm3, %v1896_v2  ;;  %5526 = vmatmul.msk.f32.vlgmr.msrb.gmra.mxu0 %vm649_vm3, %v1896_v2  ;;  %v1865_v43 = vand.u32 2147483648, %v6749_v59  ;;  %v6776_v40 = vld [vmem:[#allocation2 + $0x20] sm:$0xff]  ;;  %v1863_v22 = vand.u32 2147483647, %v6749_v59  ;;  %vm1859_vm11 = vweird.f32 %v6749_v59 }
 0x3bc   : > { %v5492_v42 = vclamps-f32 %v1788_v51, 1.0  ;;  %v1827_v57 = vsel %vm1824_vm9, %v1826_v61, %v1822_v19  ;;  %5517 = vmatmul.msk.f32.gmra.mxu3 %vm649_vm3, %v6759_v23  ;;  %v1842_v44 = vadd.f32 1.1283791, %v1841_v12  ;;  %v6783_v54 = vld [vmem:[#allocation2 + $0x22] sm:$0xff]  ;;  %v1907_v8 = vld [vmem:[#allocation2 + $0x31] sm:$0xff] }
 0x3bd   : > { %v1828_v6 = vmul.f32 %v1827_v57, %v1803_v17  ;;  %v1866_v1 = vor.u32 1.1754944e-38, %v1865_v43  ;;  %vm1864_vm13 = vcmp.eq.f32.partialorder %v1863_v22, 8.507059e+37  ;;  %v1898_v9 = vld [vmem:[#allocation2 + $0x30] sm:$0xff]  ;;  %v1908_v27 = vld [vmem:[#allocation2 + $0x41] sm:$0xff] }
 0x3be   : > { %v5832_v30 = vpop.eup %5831  ;;  %v1876_v26 = vadd.f32 1.0, %v5492_v42  ;;  %v1843_v58 = vmul.f32 %v1842_v44, %v6546_v45  ;;  %v6803_v52 = vld [vmem:[#allocation2 + $0x32] sm:$0xff]  ;;  %v1542_v45 = vmul.f32 0.5, %v6514_v62  ;;  %v1899_v25 = vld [vmem:[#allocation2 + $0x40] sm:$0xff] }
 0x3bf   : > { %v5493_v49 = vclamps-f32 %v1828_v6, 1.0  ;;  %v1855_v56 = vmul.f32 %v5832_v30, %v6749_v59  ;;  %vm1860_vm10 = vweird.f32 %v5832_v30  ;;  %v6816_v18 = vld [vmem:[#allocation2 + $0x42] sm:$0xff]  ;;  %v1909_v38 = vld [vmem:[#allocation2 + $0x51] sm:$0xff] }
 0x3c0   : > { %v1884_v37 = vmul.f32 %v1876_v26, %v1540_v39  ;;  %vm1861_vm12 = vmor %vm1859_vm11, %vm1860_vm10  ;;  %v5574_v62 = vld [vmem:[%s8310_s5 + $0x20] sm:$0xf]  ;;  %v1900_v24 = vld [vmem:[#allocation2 + $0x50] sm:$0xff] }
 0x3c1   : > { %v1856_v63 = vsub.f32 1.0, %v1855_v56  ;;  %v1877_v13 = vadd.f32 1.0, %v5493_v49  ;;  %5575 = vmatpush.msk.msra.mxu1 %vm701_vm1, %v5574_v62  ;;  %v6827_v21 = vld [vmem:[#allocation2 + $0x52] sm:$0xff] }
 0x3c2   : > { %1892 = vst.msk [vmem:[#allocation2 + $0x61] sm:$0xff] %vm649_vm3, %v1884_v37  ;;  %5499 = vmatmul.msk.f32.gmra.mxu1 %vm649_vm3, %v6774_v33  ;;  %v2401_v20 = vld [vmem:[#allocation2 + $0x90] sm:$0xff] }
 0x3c3   : > { %v1857_v46 = vmul.f32 %v5832_v30, %v1856_v63  ;;  %v1885_v14 = vmul.f32 %v1877_v13, %v1541_v28  ;;  %5508 = vmatmul.msk.f32.gmra.mxu2 %vm649_vm3, %v6776_v40  ;;  %5527 = vmatmul.msk.f32.gmra.mxu0 %vm649_vm3, %v6776_v40  ;;  %v2487_v51 = vld [vmem:[#allocation2 + $0x91] sm:$0xff] }
 0x3c4   : > { %5518 = vmatmul.msk.f32.gmra.mxu3 %vm649_vm3, %v6783_v54  ;;  %v2573_v28 = vld [vmem:[#allocation2 + $0x92] sm:$0xff] }
 0x3c5   : > { %v1858_v53 = vadd.f32 %v5832_v30, %v1857_v46  ;;  %1893 = vst.msk [vmem:[#allocation2 + $0x71] sm:$0xff] %vm649_vm3, %v1885_v14 }
 0x3c7   : > { %v1862_v16 = vsel %vm1861_vm12, %v5832_v30, %v1858_v53 }
 0x3c8   : > { %v1867_v50 = vsel %vm1864_vm13, %v1866_v1, %v1862_v16 }
 0x3c9   : > { %v1868_v3 = vmul.f32 %v1867_v50, %v1843_v58  ;;  %v1910_v31 = vld [vmem:[#allocation2 + $0x61] sm:$0xff] }
 0x3ca   : > { %5500 = vmatmul.msk.f32.gmra.mxu1 %vm649_vm3, %v1907_v8  ;;  %v1901_v10 = vld [vmem:[#allocation2 + $0x60] sm:$0xff] }
 0x3cb   : > { %v5494_v11 = vclamps-f32 %v1868_v3, 1.0  ;;  %5509 = vmatmul.msk.f32.gmra.mxu2 %vm649_vm3, %v1898_v9  ;;  %5528 = vmatmul.msk.f32.gmra.mxu0 %vm649_vm3, %v1898_v9  ;;  %v2056_v35 = vld [vmem:[#allocation2 + $0x62] sm:$0xff] }
 0x3cc   : > { %5519 = vmatmul.msk.f32.gmra.mxu3 %vm649_vm3, %v6803_v52  ;;  %v1911_v59 = vld [vmem:[#allocation2 + $0x71] sm:$0xff] }
 0x3cd   : > { %v1878_v36 = vadd.f32 1.0, %v5494_v11  ;;  %v1902_v41 = vld [vmem:[#allocation2 + $0x70] sm:$0xff] }
 0x3ce   : > { %v2057_v7 = vld [vmem:[#allocation2 + $0x72] sm:$0xff] }
 0x3cf   : > { %v1886_v0 = vmul.f32 %v1878_v36, %v1542_v45 }
 0x3d1   : > { %1894 = vst.msk [vmem:[#allocation2 + $0x81] sm:$0xff] %vm649_vm3, %v1886_v0 }
 0x3d2   : > { %5501 = vmatmul.msk.f32.gmra.mxu1 %vm649_vm3, %v1908_v27 }
 0x3d3   : > { %5510 = vmatmul.msk.f32.gmra.mxu2 %vm649_vm3, %v1899_v25  ;;  %5529 = vmatmul.msk.f32.gmra.mxu0 %vm649_vm3, %v1899_v25 }
 0x3d4   : > { %5520 = vmatmul.msk.f32.gmra.mxu3 %vm649_vm3, %v6816_v18 }
 0x3d8   : > { %v2143_v29 = vld [vmem:[#allocation2 + $0x80] sm:$0xff] }
 0x3d9   : > { %v2229_v32 = vld [vmem:[#allocation2 + $0x81] sm:$0xff] }
 0x3da   : > { %5502 = vmatmul.msk.f32.gmra.mxu1 %vm649_vm3, %v1909_v38  ;;  %v2315_v15 = vld [vmem:[#allocation2 + $0x82] sm:$0xff] }
 0x3db   : > { %5511 = vmatmul.msk.f32.gmra.mxu2 %vm649_vm3, %v1900_v24  ;;  %5530 = vmatmul.msk.f32.gmra.mxu0 %vm649_vm3, %v1900_v24 }
 0x3dc   : > { %5521 = vmatmul.msk.f32.gmra.mxu3 %vm649_vm3, %v6827_v21 }
 0x3e2   : > { %5503 = vmatmul.msk.f32.gmra.mxu1 %vm649_vm3, %v1910_v31 }
 0x3e3   : > { %5512 = vmatmul.msk.f32.gmra.mxu2 %vm649_vm3, %v1901_v10  ;;  %5531 = vmatmul.msk.f32.gmra.mxu0 %vm649_vm3, %v1901_v10 }
 0x3e4   : > { %5522 = vmatmul.msk.f32.gmra.mxu3 %vm649_vm3, %v2056_v35 }
 0x3ea   : > { %5504 = vmatmul.msk.f32.gmra.mxu1 %vm649_vm3, %v1911_v59 }
 0x3eb   : > { %5513 = vmatmul.msk.f32.gmra.mxu2 %vm649_vm3, %v1902_v41  ;;  %5532 = vmatmul.msk.f32.gmra.mxu0 %vm649_vm3, %v1902_v41 }
 0x3ec   : > { %5523 = vmatmul.msk.f32.gmra.mxu3 %vm649_vm3, %v2057_v7 }
 0x3f2   : > { %5536 = vmatmul.msk.f32.vlgmr.msrb.gmra.mxu1 %vm649_vm3, %v6757_v47 }
 0x3f3   : > { %5546 = vmatmul.msk.f32.vlgmr.msrb.gmra.mxu2 %vm649_vm3, %v6759_v23  ;;  %5533 = vmatmul.msk.f32.gmra.mxu0 %vm649_vm3, %v2143_v29 }
 0x3f4   : > { %5556 = vmatmul.msk.f32.vlgmr.msrb.gmra.mxu3 %vm649_vm3, %v6776_v40 }
 0x3fa   : > { %5537 = vmatmul.msk.f32.gmra.mxu1 %vm649_vm3, %v6774_v33 }
 0x3fb   : > { %5547 = vmatmul.msk.f32.gmra.mxu2 %vm649_vm3, %v6783_v54  ;;  %5566 = vmatmul.msk.f32.vlgmr.msra.gmra.mxu0 %vm649_vm3, %v6774_v33 }
 0x3fc   : > { %5557 = vmatmul.msk.f32.gmra.mxu3 %vm649_vm3, %v1898_v9 }
 0x402   : > { %5538 = vmatmul.msk.f32.gmra.mxu1 %vm649_vm3, %v1907_v8 }
 0x403   : > { %5548 = vmatmul.msk.f32.gmra.mxu2 %vm649_vm3, %v6803_v52  ;;  %5567 = vmatmul.msk.f32.gmra.mxu0 %vm649_vm3, %v1907_v8 }
 0x404   : > { %5558 = vmatmul.msk.f32.gmra.mxu3 %vm649_vm3, %v1899_v25 }
 0x40a   : > { %5539 = vmatmul.msk.f32.gmra.mxu1 %vm649_vm3, %v1908_v27 }
 0x40b   : > { %5549 = vmatmul.msk.f32.gmra.mxu2 %vm649_vm3, %v6816_v18  ;;  %5568 = vmatmul.msk.f32.gmra.mxu0 %vm649_vm3, %v1908_v27 }
 0x40c   : > { %5559 = vmatmul.msk.f32.gmra.mxu3 %vm649_vm3, %v1900_v24 }
 0x412   : > { %5540 = vmatmul.msk.f32.gmra.mxu1 %vm649_vm3, %v1909_v38 }
 0x413   : > { %5550 = vmatmul.msk.f32.gmra.mxu2 %vm649_vm3, %v6827_v21  ;;  %5569 = vmatmul.msk.f32.gmra.mxu0 %vm649_vm3, %v1909_v38 }
 0x414   : > { %5560 = vmatmul.msk.f32.gmra.mxu3 %vm649_vm3, %v1901_v10 }
 0x41a   : > { %5541 = vmatmul.msk.f32.gmra.mxu1 %vm649_vm3, %v1910_v31 }
 0x41b   : > { %5551 = vmatmul.msk.f32.gmra.mxu2 %vm649_vm3, %v2056_v35  ;;  %5570 = vmatmul.msk.f32.gmra.mxu0 %vm649_vm3, %v1910_v31 }
 0x41c   : > { %5561 = vmatmul.msk.f32.gmra.mxu3 %vm649_vm3, %v1902_v41 }
 0x422   : > { %5542 = vmatmul.msk.f32.gmra.mxu1 %vm649_vm3, %v1911_v59 }
 0x423   : > { %5552 = vmatmul.msk.f32.gmra.mxu2 %vm649_vm3, %v2057_v7  ;;  %5571 = vmatmul.msk.f32.gmra.mxu0 %vm649_vm3, %v1911_v59 }
 0x424   : > { %5562 = vmatmul.msk.f32.gmra.mxu3 %vm649_vm3, %v2143_v29 }
 0x426   : > { %v2026_v47 = vpop.f32.mrf.mxu2 }
 0x42a   : > { %5543 = vmatmul.msk.f32.gmra.mxu1 %vm649_vm3, %v2229_v32 }
 0x42b   : > { %5553 = vmatmul.msk.f32.gmra.mxu2 %vm649_vm3, %v2315_v15  ;;  %5572 = vmatmul.msk.f32.gmra.mxu0 %vm649_vm3, %v2229_v32 }
 0x42c   : > { %5563 = vmatmul.msk.f32.gmra.mxu3 %vm649_vm3, %v2401_v20 }
 0x42d   : > { %v6881_v48 = vpop.f32.mrf.mxu1 }
 0x42e   : > { %v2027_v32 = vadd.f32 %v2026_v47, %v6881_v48 }
 0x42f   : > { %v6898_v23 = vpop.f32.mrf.mxu3 }
 0x432   : > { %5576 = vmatmul.msk.f32.vlgmr.msra.gmra.mxu1 %vm649_vm3, %v6783_v54 }
 0x433   : > { %5573 = vmatmul.msk.f32.gmra.mxu0 %vm649_vm3, %v2487_v51 }
 0x437   : > { %v6886_v61 = vpop.f32.mrf.mxu1 }
 0x438   : > { %v6900_v17 = vpop.f32.mrf.mxu0 }
 0x43a   : > { %5577 = vmatmul.msk.f32.gmra.mxu1 %vm649_vm3, %v6803_v52 }
 0x43e   : > { %v2029_v19 = vpop.f32.mrf.mxu2 }
 0x43f   : > { %v6890_v4 = vpop.f32.mrf.mxu1  ;;  %v2107_v57 = vpop.f32.mrf.mxu3 }
 0x440   : > { %v2193_v30 = vpop.f32.mrf.mxu0 }
 0x442   : > { %5578 = vmatmul.msk.f32.gmra.mxu1 %vm649_vm3, %v6816_v18 }
 0x446   : > { %v2032_v39 = vpop.f32.mrf.mxu2 }
 0x447   : > { %v6894_v2 = vpop.f32.mrf.mxu1  ;;  %v2110_v12 = vpop.f32.mrf.mxu3  ;;  %v2033_v20 = vadd.f32 %v2032_v39, %v6890_v4 }
 0x448   : > { %v2196_v49 = vpop.f32.mrf.mxu0 }
 0x44a   : > { %5579 = vmatmul.msk.f32.gmra.mxu1 %vm649_vm3, %v6827_v21 }
 0x44e   : > { %v2035_v56 = vpop.f32.mrf.mxu2 }
 0x44f   : > { %v1970_v42 = vpop.f32.mrf.mxu1  ;;  %v2113_v63 = vpop.f32.mrf.mxu3  ;;  %v2036_v51 = vadd.f32 %v2035_v56, %v6894_v2 }
 0x450   : > { %v2199_v13 = vpop.f32.mrf.mxu0 }
 0x452   : > { %5580 = vmatmul.msk.f32.gmra.mxu1 %vm649_vm3, %v2056_v35 }
 0x456   : > { %v2038_v44 = vpop.f32.mrf.mxu2 }
 0x457   : > { %v1973_v6 = vpop.f32.mrf.mxu1  ;;  %v2116_v33 = vpop.f32.mrf.mxu3  ;;  %v2039_v5 = vadd.f32 %v2038_v44, %v1970_v42 }
 0x458   : > { %v2202_v40 = vpop.f32.mrf.mxu0 }
 0x45a   : > { %5581 = vmatmul.msk.f32.gmra.mxu1 %vm649_vm3, %v2057_v7  ;;  %v2030_v7 = vadd.f32 %v2029_v19, %v6886_v61 }
 0x45e   : > { %v2041_v46 = vpop.f32.mrf.mxu2 }
 0x45f   : > { %v6904_v26 = vpop.f32.mrf.mxu1  ;;  %v2119_v14 = vpop.f32.mrf.mxu3 }
 0x460   : > { %8375 = vst [vmem:[#allocation12_spill] sm:$0xff] %v6904_v26  ;;  %v2205_v55 = vpop.f32.mrf.mxu0  ;;  %v2132_v26 = vadd.f32 %v2116_v33, %v2039_v5 }
 0x462   : > { %5582 = vmatmul.msk.f32.gmra.mxu1 %vm649_vm3, %v2315_v15  ;;  %v2129_v15 = vadd.f32 %v2107_v57, %v2030_v7  ;;  %v2218_v7 = vadd.f32 %v2202_v40, %v2132_v26 }
 0x466   : > { %v2044_v34 = vpop.f32.mrf.mxu2 }
 0x467   : > { %v6907_v37 = vpop.f32.mrf.mxu1  ;;  %v2122_v53 = vpop.f32.mrf.mxu3  ;;  %v8383_v4 = vld [vmem:[#allocation12_spill] sm:$0xff] }
 0x468   : > { %8376 = vst [vmem:[#allocation13_spill] sm:$0xff] %v6907_v37  ;;  %v6910_v58 = vpop.f32.mrf.mxu0  ;;  %v2131_v37 = vadd.f32 %v2113_v63, %v2036_v51  ;;  %v2045_v39 = vadd.f32 %v2044_v34, %v8383_v4 }
 0x469   : > { %8377 = vst [vmem:[#allocation14_spill] sm:$0xff] %v6910_v58  ;;  %v2215_v58 = vadd.f32 %v2193_v30, %v2129_v15 }
 0x46a   : > { %5583 = vmatmul.msk.f32.gmra.mxu1 %vm649_vm3, %v2573_v28  ;;  %v2217_v2 = vadd.f32 %v2199_v13, %v2131_v37 }
 0x46e   : > { %v2047_v16 = vpop.f32.mrf.mxu2 }
 0x46f   : > { %v2276_v43 = vpop.f32.mrf.mxu1  ;;  %v6912_v3 = vpop.f32.mrf.mxu3 }
 0x470   : > { %8378 = vst [vmem:[#allocation15_spill] sm:$0xff] %v6912_v3  ;;  %v6914_v8 = vpop.f32.mrf.mxu0  ;;  %v2128_v3 = vadd.f32 %v6898_v23, %v2027_v32  ;;  %v8385_v37 = vld [vmem:[#allocation14_spill] sm:$0xff] }
 0x471   : > { %8379 = vst [vmem:[#allocation18_spill] sm:$0xff] %v6914_v8  ;;  %v2130_v8 = vadd.f32 %v2110_v12, %v2033_v20 }
 0x472   : > { %v2214_v61 = vadd.f32 %v6900_v17, %v2128_v3 }
 0x473   : > { %v2216_v19 = vadd.f32 %v2196_v49, %v2130_v8  ;;  %v8384_v49 = vld [vmem:[#allocation13_spill] sm:$0xff] }
 0x474   : > { %v2300_v56 = vadd.f32 %v2276_v43, %v2214_v61  ;;  %v2048_v3 = vadd.f32 %v2047_v16, %v8384_v49 }
 0x476   : > { %v2362_v9 = vpop.f32.mrf.mxu2 }
 0x477   : > { %v2279_v22 = vpop.f32.mrf.mxu1  ;;  %v2448_v52 = vpop.f32.mrf.mxu3  ;;  %v8386_v40 = vld [vmem:[#allocation15_spill] sm:$0xff] }
 0x478   : > { %v6916_v45 = vpop.f32.mrf.mxu0  ;;  %v2301_v48 = vadd.f32 %v2279_v22, %v2215_v58 }
 0x479   : > { %8380 = vst [vmem:[#allocation16_spill] sm:$0xff] %v6916_v45  ;;  %v2042_v45 = vadd.f32 %v2041_v46, %v1973_v6  ;;  %v2134_v6 = vadd.f32 %v2122_v53, %v2045_v39  ;;  %v2386_v46 = vadd.f32 %v2362_v9, %v2300_v56  ;;  %v2135_v53 = vadd.f32 %v8386_v40, %v2048_v3 }
 0x47b   : > { %v2133_v47 = vadd.f32 %v2119_v14, %v2042_v45  ;;  %v2220_v13 = vadd.f32 %v8385_v37, %v2134_v6  ;;  %v2472_v43 = vadd.f32 %v2448_v52, %v2386_v46 }
 0x47d   : > { %v2219_v63 = vadd.f32 %v2205_v55, %v2133_v47 }
 0x47e   : > { %v2365_v36 = vpop.f32.mrf.mxu2 }
 0x47f   : > { %v2282_v54 = vpop.f32.mrf.mxu1  ;;  %v2451_v0 = vpop.f32.mrf.mxu3  ;;  %v2387_v42 = vadd.f32 %v2365_v36, %v2301_v48 }
 0x480   : > { %v2537_v25 = vpop.f32.mrf.mxu0  ;;  %v2302_v44 = vadd.f32 %v2282_v54, %v2216_v19  ;;  %v8387_v36 = vld [vmem:[#allocation16_spill] sm:$0xff] }
 0x481   : > { %v2473_v34 = vadd.f32 %v2451_v0, %v2387_v42 }
 0x483   : > { %v2559_v8 = vadd.f32 %v2537_v25, %v2473_v34 }
 0x486   : > { %v2368_v18 = vpop.f32.mrf.mxu2 }
 0x487   : > { %v2285_v1 = vpop.f32.mrf.mxu1  ;;  %v2454_v62 = vpop.f32.mrf.mxu3  ;;  %v2388_v23 = vadd.f32 %v2368_v18, %v2302_v44  ;;  %v2558_v18 = vadd.f32 %v8387_v36, %v2472_v43 }
 0x488   : > { %v2540_v24 = vpop.f32.mrf.mxu0  ;;  %v2303_v30 = vadd.f32 %v2285_v1, %v2217_v2 }
 0x489   : > { %v2474_v54 = vadd.f32 %v2454_v62, %v2388_v23 }
 0x48b   : > { %v2560_v16 = vadd.f32 %v2540_v24, %v2474_v54 }
 0x48e   : > { %v2371_v21 = vpop.f32.mrf.mxu2 }
 0x48f   : > { %v2288_v50 = vpop.f32.mrf.mxu1  ;;  %v2457_v10 = vpop.f32.mrf.mxu3  ;;  %v2389_v22 = vadd.f32 %v2371_v21, %v2303_v30 }
 0x490   : > { %v2543_v35 = vpop.f32.mrf.mxu0  ;;  %v2304_v5 = vadd.f32 %v2288_v50, %v2218_v7 }
 0x491   : > { %v2475_v9 = vadd.f32 %v2457_v10, %v2389_v22 }
 0x493   : > { %v2561_v32 = vadd.f32 %v2543_v35, %v2475_v9 }
 0x496   : > { %v2374_v59 = vpop.f32.mrf.mxu2 }
 0x497   : > { %v2291_v11 = vpop.f32.mrf.mxu1  ;;  %v2460_v29 = vpop.f32.mrf.mxu3  ;;  %v2390_v14 = vadd.f32 %v2374_v59, %v2304_v5 }
 0x498   : > { %v2546_v28 = vpop.f32.mrf.mxu0  ;;  %v2305_v58 = vadd.f32 %v2291_v11, %v2219_v63  ;;  %v8388_v11 = vld [vmem:[#allocation18_spill] sm:$0xff] }
 0x499   : > { %v2476_v55 = vadd.f32 %v2460_v29, %v2390_v14  ;;  %v2221_v20 = vadd.f32 %v8388_v11, %v2135_v53 }
 0x49b   : > { %v2562_v15 = vadd.f32 %v2546_v28, %v2476_v55 }
 0x49f   : > { %v2294_v60 = vpop.f32.mrf.mxu1  ;;  %v2463_v57 = vpop.f32.mrf.mxu3 }
 0x4a0   : > { %v2549_v33 = vpop.f32.mrf.mxu0  ;;  %v2306_v1 = vadd.f32 %v2294_v60, %v2220_v13 }
 0x4a7   : > { %v6918_v27 = vpop.f32.mrf.mxu1  ;;  %v2466_v50 = vpop.f32.mrf.mxu3 }
 0x4a8   : > { %8381 = vst [vmem:[#allocation17_spill] sm:$0xff] %v6918_v27  ;;  %v2377_v27 = vpop.f32.mrf.mxu2  ;;  %v2552_v51 = vpop.f32.mrf.mxu0 }
 0x4a9   : > { %v2391_v26 = vadd.f32 %v2377_v27, %v2305_v58 }
 0x4ab   : > { %v2477_v59 = vadd.f32 %v2463_v57, %v2391_v26  ;;  %v8391_v26 = vld [vmem:[#allocation11_spill] sm:$0xff] }
 0x4ad   : > { %v2563_v4 = vadd.f32 %v2549_v33, %v2477_v59 }
 0x4af   : > { %v6920_v38 = vpop.f32.mrf.mxu1  ;;  %v8390_v60 = vld [vmem:[#allocation17_spill] sm:$0xff]  ;;  %v2469_v35 = vpop.f32.mrf.mxu3 }
 0x4b0   : > { %8382 = vst [vmem:[#allocation19_spill] sm:$0xff] %v6920_v38  ;;  %v2380_v17 = vpop.f32.mrf.mxu2  ;;  %v2307_v29 = vadd.f32 %v8390_v60, %v2221_v20 }
 0x4b1   : > { %v2392_v0 = vadd.f32 %v2380_v17, %v2306_v1 }
 0x4b3   : > { %v2478_v10 = vadd.f32 %v2466_v50, %v2392_v0 }
 0x4b7   : > { %v2623_v31 = vpop.f32.mrf.mxu1  ;;  %v8389_v52 = vld [vmem:[#allocation19_spill] sm:$0xff] }
 0x4b8   : > { %v2645_v21 = vadd.f32 %v2623_v31, %v2559_v8  ;;  %v2644_v62 = vadd.f32 %v8389_v52, %v2558_v18  ;;  %v2383_v25 = vpop.f32.mrf.mxu2 }
 0x4b9   : > { %v2393_v24 = vadd.f32 %v2383_v25, %v2307_v29 }
 0x4ba   : > { %v2653_v61 = vsel %vm649_vm3, %v2645_v21, 0.0  ;;  %v2652_v31 = vsel %vm649_vm3, %v2644_v62, 0.0 }
 0x4bb   : > { %v2654_v47 = vadd.f32 %v2653_v61, %v2652_v31  ;;  %v2479_v42 = vadd.f32 %v2469_v35, %v2393_v24 }
 0x4bf   : > { %v2626_v41 = vpop.f32.mrf.mxu1 }
 0x4c0   : > { %v2646_v27 = vadd.f32 %v2626_v41, %v2560_v16  ;;  %v2564_v41 = vadd.f32 %v2552_v51, %v2478_v10 }
 0x4c2   : > { %v2655_v39 = vsel %vm649_vm3, %v2646_v27, 0.0 }
 0x4c3   : > { %v2656_v56 = vadd.f32 %v2655_v39, %v2654_v47 }
 0x4c7   : > { %v2629_v38 = vpop.f32.mrf.mxu1 }
 0x4c8   : > { %v2647_v19 = vadd.f32 %v2629_v38, %v2561_v32  ;;  %v2555_v38 = vpop.f32.mrf.mxu0 }
 0x4c9   : > { %v2565_v30 = vadd.f32 %v2555_v38, %v2479_v42 }
 0x4ca   : > { %v2657_v28 = vsel %vm649_vm3, %v2647_v19, 0.0 }
 0x4cb   : > { %v2658_v6 = vadd.f32 %v2657_v28, %v2656_v56 }
 0x4cf   : > { %v2632_v12 = vpop.f32.mrf.mxu1 }
 0x4d0   : > { %v2648_v48 = vadd.f32 %v2632_v12, %v2562_v15 }
 0x4d2   : > { %v2659_v44 = vsel %vm649_vm3, %v2648_v48, 0.0 }
 0x4d3   : > { %v2660_v23 = vadd.f32 %v2659_v44, %v2658_v6 }
 0x4d7   : > { %v2635_v45 = vpop.f32.mrf.mxu1 }
 0x4d8   : > { %v2649_v2 = vadd.f32 %v2635_v45, %v2563_v4 }
 0x4da   : > { %v2661_v46 = vsel %vm649_vm3, %v2649_v2, 0.0 }
 0x4db   : > { %v2662_v63 = vadd.f32 %v2661_v46, %v2660_v23 }
 0x4df   : > { %v2638_v57 = vpop.f32.mrf.mxu1 }
 0x4e0   : > { %v2650_v7 = vadd.f32 %v2638_v57, %v2564_v41 }
 0x4e2   : > { %v2663_v12 = vsel %vm649_vm3, %v2650_v7, 0.0 }
 0x4e3   : > { %v2664_v17 = vadd.f32 %v2663_v12, %v2662_v63  ;;  %v6973_v12 = vld [vmem:[%s8311_s6] ss:$0 sm:$0xff] }
 0x4e7   : > { %v2641_v5 = vpop.f32.mrf.mxu1 }
 0x4e8   : > { %v2651_v33 = vadd.f32 %v2641_v5, %v2565_v30 }
 0x4ea   : > { %v2665_v49 = vsel %vm649_vm3, %v2651_v33, 0.0 }
 0x4eb   : > { %v2666_v3 = vadd.f32 %v2665_v49, %v2664_v17 }
 0x4ed   : > { %2667 = vadd.xlane.f32.xlu0 %v2666_v3  ;;  %v6984_v3 = vld [vmem:[%s8312_s7] ss:$0 sm:$0xff] }
 0x560   : > { %v2668_v34 = vpop.xlane.xlu0 %2667 }
 0x561   : > { %v2669_v22 = vrot.slane %v2668_v34, 4 }
 0x563   : > { %v2670_v14 = vadd.f32 %v2669_v22, %v2668_v34 }
 0x565   : > { %v2671_v58 = vrot.slane %v2670_v14, 2 }
 0x567   : > { %v2672_v37 = vadd.f32 %v2671_v58, %v2670_v14 }
 0x569   : > { %v2673_v13 = vrot.slane %v2672_v37, 1 }
 0x56b   : > { %v2674_v43 = vadd.f32 %v2673_v13, %v2672_v37 }
 0x56d   : > { %5781 = vpush %v2674_v43 }
 0x59e   : > { %s5782_s24 = spop %5781 }
 0x59f   : > { %v2676_v54 = vstv %s5782_s24 }
 0x5a0   : > { %v2677_v40 = vmul.f32 %v2676_v54, %v8391_v26 }
 0x5a2   : > { %v2678_v53 = vsub.f32 %v2644_v62, %v2677_v40  ;;  %v2679_v8 = vsub.f32 %v2645_v21, %v2677_v40  ;;  %v2680_v9 = vsub.f32 %v2646_v27, %v2677_v40  ;;  %v2681_v1 = vsub.f32 %v2647_v19, %v2677_v40 }
 0x5a3   : > { %v6945_v55 = vsub.f32 %v2648_v48, %v2677_v40  ;;  %v6947_v18 = vsub.f32 %v2649_v2, %v2677_v40  ;;  %v6951_v20 = vsub.f32 %v2650_v7, %v2677_v40  ;;  %v6956_v62 = vsub.f32 %v2651_v33, %v2677_v40 }
 0x5a4   : > { %v2686_v50 = vmul.f32 %v2678_v53, %v2678_v53  ;;  %v2687_v45 = vmul.f32 %v2679_v8, %v2679_v8  ;;  %v2688_v36 = vmul.f32 %v2680_v9, %v2680_v9  ;;  %v2689_v16 = vmul.f32 %v2681_v1, %v2681_v1 }
 0x5a5   : > { %v2690_v21 = vmul.f32 %v6945_v55, %v6945_v55  ;;  %v2691_v27 = vmul.f32 %v6947_v18, %v6947_v18  ;;  %v2692_v25 = vmul.f32 %v6951_v20, %v6951_v20  ;;  %v2693_v29 = vmul.f32 %v6956_v62, %v6956_v62 }
 0x5a6   : > { %v2694_v0 = vsel %vm649_vm3, %v2686_v50, 0.0  ;;  %v2695_v59 = vsel %vm649_vm3, %v2687_v45, 0.0  ;;  %v2697_v32 = vsel %vm649_vm3, %v2688_v36, 0.0  ;;  %v2699_v15 = vsel %vm649_vm3, %v2689_v16, 0.0  ;;  %v8395_v50 = vld [vmem:[#allocation6_spill] sm:$0xff] }
 0x5a7   : > { %v2696_v11 = vadd.f32 %v2695_v59, %v2694_v0  ;;  %v2701_v10 = vsel %vm649_vm3, %v2690_v21, 0.0  ;;  %v2703_v61 = vsel %vm649_vm3, %v2691_v27, 0.0  ;;  %v2705_v4 = vsel %vm649_vm3, %v2692_v25, 0.0 }
 0x5a8   : > { %v2707_v31 = vsel %vm649_vm3, %v2693_v29, 0.0 }
 0x5a9   : > { %v2698_v52 = vadd.f32 %v2697_v32, %v2696_v11 }
 0x5ab   : > { %v2700_v51 = vadd.f32 %v2699_v15, %v2698_v52 }
 0x5ad   : > { %v2702_v60 = vadd.f32 %v2701_v10, %v2700_v51 }
 0x5af   : > { %v2704_v19 = vadd.f32 %v2703_v61, %v2702_v60 }
 0x5b1   : > { %v2706_v24 = vadd.f32 %v2705_v4, %v2704_v19 }
 0x5b3   : > { %v2708_v39 = vadd.f32 %v2707_v31, %v2706_v24 }
 0x5b5   : > { %2709 = vadd.xlane.f32.xlu2 %v2708_v39 }
 0x628   : > { %v2710_v48 = vpop.xlane.xlu2 %2709 }
 0x629   : > { %v2711_v35 = vrot.slane %v2710_v48, 4 }
 0x62b   : > { %v2712_v47 = vadd.f32 %v2711_v35, %v2710_v48 }
 0x62d   : > { %v2713_v57 = vrot.slane %v2712_v47, 2 }
 0x62f   : > { %v2714_v41 = vadd.f32 %v2713_v57, %v2712_v47 }
 0x631   : > { %v2715_v28 = vrot.slane %v2714_v41, 1 }
 0x633   : > { %v2716_v2 = vadd.f32 %v2715_v28, %v2714_v41 }
 0x635   : > { %5783 = vpush %v2716_v2 }
 0x666   : > { %s5784_s25 = spop %5783 }
 0x667   : > { %v2718_v56 = vstv %s5784_s25 }
 0x668   : > { %v2719_v42 = vmul.f32 %v2718_v56, %v8391_v26  ;;  %v8392_v26 = vld [vmem:[#allocation5_spill] sm:$0xff] }
 0x66a   : > { %v2720_v44 = vadd.f32 1e-05, %v2719_v42 }
 0x66c   : > { %5833 = vrsqrt.f32 %v2720_v44  ;;  %vm2727_vm15 = vweird.f32 %v2720_v44 }
 0x672   : > { %v5834_v7 = vpop.eup %5833 }
 0x673   : > { %v2722_v38 = vmul.f32 %v5834_v7, %v2720_v44  ;;  %vm2728_vm14 = vweird.f32 %v5834_v7 }
 0x674   : > { %vm2729_vm2 = vmor %vm2727_vm15, %vm2728_vm14 }
 0x675   : > { %v2723_v6 = vmul.f32 %v5834_v7, %v2722_v38 }
 0x677   : > { %v2724_v46 = vmul.f32 0.5, %v2723_v6 }
 0x679   : > { %v2725_v23 = vsub.f32 1.5, %v2724_v46 }
 0x67b   : > { %v2726_v30 = vmul.f32 %v5834_v7, %v2725_v23 }
 0x67d   : > { %v6975_v63 = vsel %vm2729_vm2, %v5834_v7, %v2726_v30 }
 0x67e   : > { %v2731_v5 = vmul.f32 %v6975_v63, %v2678_v53  ;;  %v2732_v33 = vmul.f32 %v6975_v63, %v2679_v8  ;;  %v2733_v17 = vmul.f32 %v6975_v63, %v2680_v9  ;;  %v2734_v49 = vmul.f32 %v6975_v63, %v2681_v1  ;;  %v8393_v53 = vld [vmem:[#allocation4_spill] sm:$0xff]  ;;  %v8394_v9 = vld [vmem:[#allocation3_spill] sm:$0xff] }
 0x67f   : > { %v2735_v59 = vmul.f32 %v6975_v63, %v6945_v55  ;;  %v2736_v15 = vmul.f32 %v6975_v63, %v6947_v18 }
 0x680   : > { %v2743_v34 = vmul.f32 %v6973_v12, %v2731_v5  ;;  %v2744_v22 = vmul.f32 %v6973_v12, %v2732_v33  ;;  %v2745_v14 = vmul.f32 %v6973_v12, %v2733_v17  ;;  %v2746_v58 = vmul.f32 %v6973_v12, %v2734_v49 }
 0x681   : > { %v2747_v25 = vmul.f32 %v6973_v12, %v2735_v59  ;;  %v2748_v31 = vmul.f32 %v6973_v12, %v2736_v15 }
 0x682   : > { %v2755_v37 = vadd.f32 %v6984_v3, %v2743_v34  ;;  %v2756_v13 = vadd.f32 %v6984_v3, %v2744_v22  ;;  %v2757_v43 = vadd.f32 %v6984_v3, %v2745_v14  ;;  %v2758_v54 = vadd.f32 %v6984_v3, %v2746_v58 }
 0x683   : > { %v2759_v47 = vadd.f32 %v6984_v3, %v2747_v25  ;;  %v2760_v23 = vadd.f32 %v6984_v3, %v2748_v31 }
 0x684   : > { %v6995_v40 = vadd.f32 %v2755_v37, %v8392_v26  ;;  %v6998_v8 = vadd.f32 %v2756_v13, %v8393_v53  ;;  %v7001_v1 = vadd.f32 %v2757_v43, %v8394_v9  ;;  %v7004_v45 = vadd.f32 %v2758_v54, %v8395_v50  ;;  %v8396_v13 = vld [vmem:[#allocation7_spill] sm:$0xff]  ;;  %v8397_v50 = vld [vmem:[#allocation8_spill] sm:$0xff] }
 0x685   : > { %v7060_v43 = vadd.f32 %v2759_v47, %v8396_v13  ;;  %v2737_v9 = vmul.f32 %v6975_v63, %v6951_v20  ;;  %v7067_v59 = vadd.f32 %v2760_v23, %v8397_v50 }
 0x686   : > { %v7007_v36 = vmul.f32 0.70710677, %v6995_v40  ;;  %v7010_v16 = vmul.f32 0.70710677, %v6998_v8  ;;  %v7013_v0 = vmul.f32 0.70710677, %v7001_v1 }
 0x687   : > { %v7018_v11 = vmul.f32 0.70710677, %v7004_v45  ;;  %v7076_v20 = vmul.f32 0.70710677, %v7060_v43 }
 0x688   : > { %v2787_v21 = vmul.f32 %v7007_v36, %v7007_v36  ;;  %v2827_v32 = vmul.f32 %v7010_v16, %v7010_v16  ;;  %v2867_v52 = vmul.f32 %v7013_v0, %v7013_v0 }
 0x689   : > { %v2907_v27 = vmul.f32 %v7018_v11, %v7018_v11 }
 0x68a   : > { %v7030_v51 = vmin.f32 %v2787_v21, 16.0  ;;  %v7032_v55 = vmin.f32 %v2827_v32, 16.0  ;;  %v7035_v10 = vmin.f32 %v2867_v52, 16.0 }
 0x68b   : > { %v7037_v60 = vmin.f32 %v2907_v27, 16.0 }
 0x68c   : > { %v2789_v29 = vmul.f32 2.1237322e-06, %v7030_v51  ;;  %v2800_v61 = vmul.f32 3.8918573e-05, %v7030_v51  ;;  %v2829_v19 = vmul.f32 2.1237322e-06, %v7032_v55 }
 0x68d   : > { %v2840_v4 = vmul.f32 3.8918573e-05, %v7032_v55  ;;  %v2869_v18 = vmul.f32 2.1237322e-06, %v7035_v10  ;;  %v2880_v24 = vmul.f32 3.8918573e-05, %v7035_v10 }
 0x68e   : > { %v2790_v39 = vadd.f32 0.00028619796, %v2789_v29  ;;  %v2801_v48 = vadd.f32 0.001143296, %v2800_v61  ;;  %v2830_v35 = vadd.f32 0.00028619796, %v2829_v19  ;;  %v2738_v29 = vmul.f32 %v6975_v63, %v6956_v62 }
 0x68f   : > { %v2841_v57 = vadd.f32 0.001143296, %v2840_v4  ;;  %v2870_v41 = vadd.f32 0.00028619796, %v2869_v18  ;;  %v2881_v28 = vadd.f32 0.001143296, %v2880_v24 }
 0x690   : > { %v2791_v2 = vmul.f32 %v2790_v39, %v7030_v51  ;;  %v2802_v56 = vmul.f32 %v2801_v48, %v7030_v51  ;;  %v2831_v42 = vmul.f32 %v2830_v35, %v7032_v55  ;;  %v2909_v44 = vmul.f32 2.1237322e-06, %v7037_v60 }
 0x691   : > { %v2842_v7 = vmul.f32 %v2841_v57, %v7032_v55  ;;  %v2871_v38 = vmul.f32 %v2870_v41, %v7035_v10  ;;  %v2882_v6 = vmul.f32 %v2881_v28, %v7035_v10  ;;  %v2920_v46 = vmul.f32 3.8918573e-05, %v7037_v60 }
 0x692   : > { %v2792_v30 = vadd.f32 0.0036580483, %v2791_v2  ;;  %v2803_v5 = vadd.f32 0.014752088, %v2802_v56  ;;  %v2832_v33 = vadd.f32 0.0036580483, %v2831_v42  ;;  %v2749_v39 = vmul.f32 %v6973_v12, %v2737_v9 }
 0x693   : > { %v2843_v17 = vadd.f32 0.014752088, %v2842_v7  ;;  %v2872_v49 = vadd.f32 0.0036580483, %v2871_v38  ;;  %v2883_v34 = vadd.f32 0.014752088, %v2882_v6  ;;  %v2750_v28 = vmul.f32 %v6973_v12, %v2738_v29 }
 0x694   : > { %v2793_v22 = vmul.f32 %v2792_v30, %v7030_v51  ;;  %v2804_v14 = vmul.f32 %v2803_v5, %v7030_v51  ;;  %v2833_v58 = vmul.f32 %v2832_v33, %v7032_v55  ;;  %v2910_v37 = vadd.f32 0.00028619796, %v2909_v44 }
 0x695   : > { %v2844_v54 = vmul.f32 %v2843_v17, %v7032_v55  ;;  %v2884_v26 = vmul.f32 %v2883_v34, %v7035_v10  ;;  %v2921_v53 = vadd.f32 0.001143296, %v2920_v46  ;;  %v2873_v27 = vmul.f32 %v2872_v49, %v7035_v10 }
 0x696   : > { %v2805_v21 = vadd.f32 0.112945676, %v2804_v14  ;;  %v2911_v32 = vmul.f32 %v2910_v37, %v7037_v60  ;;  %v2794_v61 = vadd.f32 0.05243302, %v2793_v22  ;;  %v2834_v4 = vadd.f32 0.05243302, %v2833_v58 }
 0x697   : > { %v2845_v52 = vadd.f32 0.112945676, %v2844_v54  ;;  %v2885_v15 = vadd.f32 0.112945676, %v2884_v26  ;;  %v2922_v25 = vmul.f32 %v2921_v53, %v7037_v60  ;;  %v7082_v48 = vmul.f32 0.70710677, %v7067_v59 }
 0x698   : > { %v2806_v19 = vmul.f32 %v2805_v21, %v7030_v51  ;;  %v2912_v47 = vadd.f32 0.0036580483, %v2911_v32  ;;  %v2874_v63 = vadd.f32 0.05243302, %v2873_v27  ;;  %v2795_v2 = vmul.f32 %v2794_v61, %v7030_v51  ;;  %v8398_v37 = vld [vmem:[#allocation9_spill] sm:$0xff] }
 0x699   : > { %v2846_v18 = vmul.f32 %v2845_v52, %v7032_v55  ;;  %v2886_v24 = vmul.f32 %v2885_v15, %v7035_v10  ;;  %v2923_v31 = vadd.f32 0.014752088, %v2922_v25  ;;  %v2835_v42 = vmul.f32 %v2834_v4, %v7032_v55 }
 0x69a   : > { %v2807_v35 = vadd.f32 0.4994258, %v2806_v19  ;;  %v2947_v6 = vmul.f32 %v7076_v20, %v7076_v20  ;;  %v2761_v46 = vadd.f32 %v6984_v3, %v2749_v39  ;;  %v2913_v12 = vmul.f32 %v2912_v47, %v7037_v60 }
 0x69b   : > { %v2847_v62 = vadd.f32 0.4994258, %v2846_v18  ;;  %v2887_v57 = vadd.f32 0.4994258, %v2886_v24  ;;  %v2924_v41 = vmul.f32 %v2923_v31, %v7037_v60  ;;  %v2987_v30 = vmul.f32 %v7082_v48, %v7082_v48 }
 0x69c   : > { %v2808_v56 = vmul.f32 %v2807_v35, %v7030_v51  ;;  %v2875_v33 = vmul.f32 %v2874_v63, %v7035_v10  ;;  %v2796_v49 = vadd.f32 0.18741608, %v2795_v2  ;;  %v2836_v34 = vadd.f32 0.18741608, %v2835_v42 }
 0x69d   : > { %v2848_v44 = vmul.f32 %v2847_v62, %v7032_v55  ;;  %v2888_v7 = vmul.f32 %v2887_v57, %v7035_v10  ;;  %v2925_v38 = vadd.f32 0.112945676, %v2924_v41  ;;  %v2762_v22 = vadd.f32 %v6984_v3, %v2750_v28  ;;  %v8399_v3 = vld [vmem:[#allocation10_spill] sm:$0xff] }
 0x69e   : > { %v7094_v23 = vadd.f32 1.0, %v2808_v56  ;;  %v7108_v58 = vmin.f32 %v2947_v6, 16.0  ;;  %v7111_v13 = vadd.f32 %v2761_v46, %v8398_v37  ;;  %v2914_v54 = vadd.f32 0.05243302, %v2913_v12 }
 0x69f   : > { %v7099_v5 = vadd.f32 1.0, %v2848_v44  ;;  %v7102_v17 = vadd.f32 1.0, %v2888_v7  ;;  %v2926_v14 = vmul.f32 %v2925_v38, %v7037_v60  ;;  %v7113_v26 = vmin.f32 %v2987_v30, 16.0 }
 0x6a0   : > { %5835 = vrcp.f32 %v7094_v23  ;;  %v2876_v53 = vadd.f32 0.18741608, %v2875_v33  ;;  %v2797_v9 = vmul.f32 %v2796_v49, %v7030_v51  ;;  %v2837_v50 = vmul.f32 %v2836_v34, %v7032_v55 }
 0x6a1   : > { %5837 = vrcp.f32 %v7099_v5  ;;  %v7119_v21 = vadd.f32 %v2762_v22, %v8399_v3  ;;  %v2927_v32 = vadd.f32 0.4994258, %v2926_v14  ;;  %v2949_v52 = vmul.f32 2.1237322e-06, %v7108_v58 }
 0x6a2   : > { %5839 = vrcp.f32 %v7102_v17  ;;  %v7125_v15 = vmul.f32 0.70710677, %v7111_v13  ;;  %v2915_v25 = vmul.f32 %v2914_v54, %v7037_v60  ;;  %v2960_v29 = vmul.f32 3.8918573e-05, %v7108_v58 }
 0x6a3   : > { %v2989_v61 = vmul.f32 2.1237322e-06, %v7113_v26  ;;  %v2877_v19 = vmul.f32 %v2876_v53, %v7035_v10  ;;  %v2928_v4 = vmul.f32 %v2927_v32, %v7037_v60  ;;  %v2950_v18 = vadd.f32 0.00028619796, %v2949_v52 }
 0x6a4   : > { %v7137_v24 = vmul.f32 0.5, %v6995_v40  ;;  %v7140_v31 = vmul.f32 0.5, %v6998_v8  ;;  %v2798_v39 = vadd.f32 1.1283791, %v2797_v9  ;;  %v2838_v35 = vadd.f32 1.1283791, %v2837_v50 }
 0x6a5   : > { %v7144_v62 = vadd.f32 1.0, %v2928_v4  ;;  %v2951_v63 = vmul.f32 %v2950_v18, %v7108_v58  ;;  %v2961_v57 = vadd.f32 0.001143296, %v2960_v29  ;;  %v2990_v41 = vadd.f32 0.00028619796, %v2989_v61 }
 0x6a6   : > { %v7122_v27 = vpop.eup %5835  ;;  %v7148_v10 = vmul.f32 0.5, %v7001_v1  ;;  %v7151_v28 = vmul.f32 0.70710677, %v7119_v21  ;;  %v2916_v8 = vadd.f32 0.18741608, %v2915_v25  ;;  %v3027_v42 = vmul.f32 %v7125_v15, %v7125_v15 }
 0x6a7   : > { %v7130_v51 = vpop.eup %5837  ;;  %v2811_v55 = vmul.f32 %v7122_v27, %v7094_v23  ;;  %v2878_v56 = vadd.f32 1.1283791, %v2877_v19  ;;  %5841 = vrcp.f32 %v7144_v62  ;;  %v7159_v44 = vmul.f32 %v2798_v39, %v7007_v36 }
 0x6a8   : > { %v7142_v47 = vpop.eup %5839  ;;  %v2851_v40 = vmul.f32 %v7130_v51, %v7099_v5  ;;  %v2821_v1 = vand.u32 2147483648, %v7094_v23  ;;  %v2952_v38 = vadd.f32 0.0036580483, %v2951_v63  ;;  %vm2815_vm4 = vweird.f32 %v7094_v23 }
 0x6a9   : > { %v2812_v2 = vsub.f32 1.0, %v2811_v55  ;;  %v2891_v7 = vmul.f32 %v7142_v47, %v7102_v17  ;;  %v2819_v6 = vand.u32 2147483647, %v7094_v23  ;;  %v7167_v46 = vmul.f32 %v2838_v35, %v7010_v16 }
 0x6aa   : > { %v2962_v12 = vmul.f32 %v2961_v57, %v7108_v58  ;;  %v2991_v30 = vmul.f32 %v2990_v41, %v7113_v26  ;;  %v2852_v33 = vsub.f32 1.0, %v2851_v40  ;;  %v2859_v36 = vand.u32 2147483647, %v7099_v5 }
 0x6ab   : > { %v2861_v49 = vand.u32 2147483648, %v7099_v5  ;;  %v2917_v34 = vmul.f32 %v2916_v8, %v7037_v60  ;;  %v2813_v22 = vmul.f32 %v7122_v27, %v2812_v2  ;;  %v7176_v14 = vmul.f32 %v2878_v56, %v7013_v0 }
 0x6ac   : > { %v2901_v37 = vand.u32 2147483648, %v7102_v17  ;;  %v2963_v16 = vadd.f32 0.014752088, %v2962_v12  ;;  %v2822_v54 = vor.u32 1.1754944e-38, %v2821_v1  ;;  %v2892_v53 = vsub.f32 1.0, %v2891_v7 }
 0x6ad   : > { %v2899_v9 = vand.u32 2147483647, %v7102_v17  ;;  %v2953_v50 = vmul.f32 %v2952_v38, %v7108_v58  ;;  %v7181_v3 = vpop.eup %5841  ;;  %v2992_v52 = vadd.f32 0.0036580483, %v2991_v30  ;;  %v3000_v60 = vmul.f32 3.8918573e-05, %v7113_v26 }
 0x6ae   : > { %v2964_v32 = vmul.f32 %v2963_v16, %v7108_v58  ;;  %v7185_v25 = vmin.f32 %v3027_v42, 16.0  ;;  %vm7187_vm5 = vcmp.eq.f32.partialorder %v2819_v6, 8.507059e+37  ;;  %v2853_v29 = vmul.f32 %v7130_v51, %v2852_v33 }
 0x6af   : > { %vm2855_vm6 = vweird.f32 %v7099_v5  ;;  %v2862_v61 = vor.u32 1.1754944e-38, %v2861_v49  ;;  %v2918_v55 = vadd.f32 1.1283791, %v2917_v34  ;;  %v2931_v19 = vmul.f32 %v7181_v3, %v7144_v62 }
 0x6b0   : > { %v2814_v4 = vadd.f32 %v7122_v27, %v2813_v22  ;;  %vm2816_vm7 = vweird.f32 %v7122_v27  ;;  %vm2895_vm8 = vweird.f32 %v7102_v17  ;;  %v2902_v18 = vor.u32 1.1754944e-38, %v2901_v37 }
 0x6b1   : > { %v2965_v39 = vadd.f32 0.112945676, %v2964_v32  ;;  %vm2856_vm9 = vweird.f32 %v7130_v51  ;;  %v2893_v35 = vmul.f32 %v7142_v47, %v2892_v53  ;;  %v2932_v63 = vsub.f32 1.0, %v2931_v19  ;;  %vm7205_vm10 = vmor %vm2815_vm4, %vm2816_vm7 }
 0x6b2   : > { %v2954_v57 = vadd.f32 0.05243302, %v2953_v50  ;;  %v2993_v40 = vmul.f32 %v2992_v52, %v7113_v26  ;;  %v3001_v8 = vadd.f32 0.001143296, %v3000_v60  ;;  %v3029_v2 = vmul.f32 2.1237322e-06, %v7185_v25  ;;  %vm7243_vm14 = vmor %vm2855_vm6, %vm2856_vm9 }
 0x6b3   : > { %v2966_v41 = vmul.f32 %v2965_v39, %v7108_v58  ;;  %v2854_v42 = vadd.f32 %v7130_v51, %v2853_v29  ;;  %vm7210_vm11 = vcmp.eq.f32.partialorder %v2859_v36, 8.507059e+37  ;;  %vm2896_vm12 = vweird.f32 %v7142_v47 }
 0x6b4   : > { %v7216_v7 = vmul.f32 %v2918_v55, %v7018_v11  ;;  %v3040_v38 = vmul.f32 3.8918573e-05, %v7185_v25  ;;  %v2818_v23 = vsel %vm7205_vm10, %v7122_v27, %v2814_v4  ;;  %vm7222_vm13 = vcmp.eq.f32.partialorder %v2899_v9, 8.507059e+37  ;;  %vm7259_vm15 = vmor %vm2895_vm8, %vm2896_vm12 }
 0x6b5   : > { %v2967_v12 = vadd.f32 0.4994258, %v2966_v41  ;;  %v3002_v30 = vmul.f32 %v3001_v8, %v7113_v26  ;;  %v3030_v33 = vadd.f32 0.00028619796, %v3029_v2  ;;  %v2894_v36 = vadd.f32 %v7142_v47, %v2893_v35 }
 0x6b6   : > { %v2933_v49 = vmul.f32 %v7181_v3, %v2932_v63  ;;  %v3041_v11 = vadd.f32 0.001143296, %v3040_v38  ;;  %v3067_v34 = vmul.f32 %v7151_v28, %v7151_v28  ;;  %v2955_v22 = vmul.f32 %v2954_v57, %v7108_v58 }
 0x6b7   : > { %v2968_v27 = vmul.f32 %v2967_v12, %v7108_v58  ;;  %v2994_v37 = vadd.f32 0.05243302, %v2993_v40  ;;  %v3003_v16 = vadd.f32 0.014752088, %v3002_v30  ;;  %v2939_v53 = vand.u32 2147483647, %v7144_v62 }
 0x6b8   : > { %v2941_v9 = vand.u32 2147483648, %v7144_v62  ;;  %v3031_v50 = vmul.f32 %v3030_v33, %v7185_v25  ;;  %v3042_v32 = vmul.f32 %v3041_v11, %v7185_v25  ;;  %v2823_v52 = vsel %vm7187_vm5, %v2822_v54, %v2818_v23 }
 0x6b9   : > { %v7247_v29 = vadd.f32 1.0, %v2968_v27  ;;  %v3004_v55 = vmul.f32 %v3003_v16, %v7113_v26  ;;  %v7250_v19 = vmin.f32 %v3067_v34, 16.0  ;;  %v2858_v4 = vsel %vm7243_vm14, %v7130_v51, %v2854_v42 }
 0x6ba   : > { %v2934_v54 = vadd.f32 %v7181_v3, %v2933_v49  ;;  %vm2936_vm2 = vweird.f32 %v7181_v3  ;;  %v3043_v0 = vadd.f32 0.014752088, %v3042_v32  ;;  %v2898_v39 = vsel %vm7259_vm15, %v7142_v47, %v2894_v36 }
 0x6bb   : > { %v2956_v35 = vadd.f32 0.18741608, %v2955_v22  ;;  %5843 = vrcp.f32 %v7247_v29  ;;  %v2995_v51 = vmul.f32 %v2994_v37, %v7113_v26  ;;  %vm2935_vm4 = vweird.f32 %v7144_v62 }
 0x6bc   : > { %v2942_v17 = vor.u32 1.1754944e-38, %v2941_v9  ;;  %v3005_v63 = vadd.f32 0.112945676, %v3004_v55  ;;  %v3032_v57 = vadd.f32 0.0036580483, %v3031_v50  ;;  %v2824_v41 = vmul.f32 %v2823_v52, %v7159_v44  ;;  %vm7274_vm5 = vmor %vm2935_vm4, %vm2936_vm2 }
 0x6bd   : > { %v2863_v40 = vsel %vm7210_vm11, %v2862_v61, %v2858_v4  ;;  %v3044_v47 = vmul.f32 %v3043_v0, %v7185_v25  ;;  %v3069_v2 = vmul.f32 2.1237322e-06, %v7250_v19  ;;  %v2903_v56 = vsel %vm7222_vm13, %v2902_v18, %v2898_v39 }
 0x6be   : > { %v2938_v62 = vsel %vm7274_vm5, %v7181_v3, %v2934_v54  ;;  %v3006_v44 = vmul.f32 %v3005_v63, %v7113_v26  ;;  %v3080_v42 = vmul.f32 3.8918573e-05, %v7250_v19  ;;  %v2957_v61 = vmul.f32 %v2956_v35, %v7108_v58 }
 0x6bf   : > { %v2996_v1 = vadd.f32 0.18741608, %v2995_v51  ;;  %v3045_v38 = vadd.f32 0.112945676, %v3044_v47  ;;  %v3070_v23 = vadd.f32 0.00028619796, %v3069_v2  ;;  %v3033_v30 = vmul.f32 %v3032_v57, %v7185_v25 }
 0x6c0   : > { %vm2940_vm6 = vcmp.eq.f32.partialorder %v2939_v53, 8.507059e+37  ;;  %v3007_v12 = vadd.f32 0.4994258, %v3006_v44  ;;  %v3081_v33 = vadd.f32 0.001143296, %v3080_v42  ;;  %v5584_v18 = vclamps-f32 %v2824_v41, 1.0 }
 0x6c1   : > { %v5844_v6 = vpop.eup %5843  ;;  %v2864_v36 = vmul.f32 %v2863_v40, %v7167_v46  ;;  %v2943_v49 = vsel %vm2940_vm6, %v2942_v17, %v2938_v62  ;;  %v3046_v3 = vmul.f32 %v3045_v38, %v7185_v25  ;;  %v2904_v11 = vmul.f32 %v2903_v56, %v7176_v14  ;;  %v3139_v38 = vld [vmem:[%s8313_s8] sm:$0xf] }
 0x6c2   : > { %v2971_v34 = vmul.f32 %v5844_v6, %v7247_v29  ;;  %v3008_v58 = vmul.f32 %v3007_v12, %v7113_v26  ;;  %v3071_v22 = vmul.f32 %v3070_v23, %v7250_v19  ;;  %v2958_v27 = vadd.f32 1.1283791, %v2957_v61  ;;  %5602 = vmatpush.msk.msra.mxu3 %vm701_vm1, %v3139_v38 }
 0x6c3   : > { %v2997_v37 = vmul.f32 %v2996_v1, %v7113_v26  ;;  %v3047_v16 = vadd.f32 0.4994258, %v3046_v3  ;;  %v3082_v53 = vmul.f32 %v3081_v33, %v7250_v19  ;;  %v2944_v9 = vmul.f32 %v2943_v49, %v7216_v7  ;;  %v3286_v3 = vld [vmem:[#allocation2 + $0x2] sm:$0xff] }
 0x6c4   : > { %v2972_v46 = vsub.f32 1.0, %v2971_v34  ;;  %v7298_v50 = vadd.f32 1.0, %v3008_v58  ;;  %v3034_v32 = vadd.f32 0.05243302, %v3033_v30  ;;  %v2979_v14 = vand.u32 2147483647, %v7247_v29 }
 0x6c5   : > { %v2981_v52 = vand.u32 2147483648, %v7247_v29  ;;  %v3048_v60 = vmul.f32 %v3047_v16, %v7185_v25  ;;  %v3083_v55 = vadd.f32 0.014752088, %v3082_v53  ;;  %vm2976_vm7 = vweird.f32 %v5844_v6 }
 0x6c6   : > { %v2973_v4 = vmul.f32 %v5844_v6, %v2972_v46  ;;  %5845 = vrcp.f32 %v7298_v50  ;;  %v3072_v26 = vadd.f32 0.0036580483, %v3071_v22  ;;  %v5585_v5 = vclamps-f32 %v2864_v36, 1.0 }
 0x6c7   : > { %v5586_v54 = vclamps-f32 %v2904_v11, 1.0  ;;  %v2959_v7 = vmul.f32 %v2958_v27, %v7076_v20  ;;  %v7305_v0 = vadd.f32 1.0, %v3048_v60  ;;  %vm2975_vm8 = vweird.f32 %v7247_v29  ;;  %v5592_v29 = vld [vmem:[%s8313_s8 + $0x4] sm:$0xf]  ;;  %v5631_v11 = vld [vmem:[%s8313_s8 + $0x10] sm:$0xf] }
 0x6c8   : > { %v2974_v39 = vadd.f32 %v5844_v6, %v2973_v4  ;;  %v3035_v35 = vmul.f32 %v3034_v32, %v7185_v25  ;;  %v3084_v51 = vmul.f32 %v3083_v55, %v7250_v19  ;;  %v5587_v17 = vclamps-f32 %v2944_v9, 1.0  ;;  %vm2977_vm9 = vmor %vm2975_vm8, %vm2976_vm7  ;;  %5593 = vmatpush.msk.msra.mxu2 %vm701_vm1, %v5592_v29 }
 0x6c9   : > { %v2982_v63 = vor.u32 1.1754944e-38, %v2981_v52  ;;  %v2998_v57 = vadd.f32 1.1283791, %v2997_v37  ;;  %5847 = vrcp.f32 %v7305_v0  ;;  %vm2980_vm10 = vcmp.eq.f32.partialorder %v2979_v14, 8.507059e+37 }
 0x6ca   : > { %v2978_v41 = vsel %vm2977_vm9, %v5844_v6, %v2974_v39  ;;  %v3073_v40 = vmul.f32 %v3072_v26, %v7250_v19  ;;  %v3107_v20 = vadd.f32 1.0, %v5584_v18  ;;  %v3085_v47 = vadd.f32 0.112945676, %v3084_v51  ;;  %v5611_v6 = vld [vmem:[%s8313_s8 + $0x8] sm:$0xf]  ;;  %5632 = vmatpush.msk.msrb.mxu2 %vm701_vm1, %v5631_v11 }
 0x6cb   : > { %v2983_v8 = vsel %vm2980_vm10, %v2982_v63, %v2978_v41  ;;  %v3108_v2 = vadd.f32 1.0, %v5585_v5  ;;  %v3109_v56 = vadd.f32 1.0, %v5586_v54  ;;  %v2774_v44 = vmul.f32 0.5, %v7004_v45  ;;  %v3140_v45 = vld [vmem:[#allocation2 + $0x1] sm:$0xff]  ;;  %5612 = vmatpush.msk.msrb.mxu0 %vm701_vm1, %v5611_v6 }
 0x6cc   : > { %v7315_v62 = vpop.eup %5845  ;;  %v2775_v42 = vmul.f32 0.5, %v7060_v43  ;;  %v2984_v61 = vmul.f32 %v2983_v8, %v2959_v7  ;;  %v3036_v1 = vadd.f32 0.18741608, %v3035_v35  ;;  %v2999_v23 = vmul.f32 %v2998_v57, %v7082_v48  ;;  %v3131_v43 = vld [vmem:[#allocation2] sm:$0xff]  ;;  %5594 = vmatmul.msk.f32.vlgmr.msra.gmra.mxu2 %vm649_vm3, %v3140_v45  ;;  %5613 = vmatmul.msk.f32.vlgmr.msrb.gmra.mxu0 %vm649_vm3, %v3286_v3 }
 0x6cd   : > { %v3011_v12 = vmul.f32 %v7315_v62, %v7298_v50  ;;  %v3086_v30 = vmul.f32 %v3085_v47, %v7250_v19  ;;  %v3110_v33 = vadd.f32 1.0, %v5587_v17  ;;  %v3074_v36 = vadd.f32 0.05243302, %v3073_v40  ;;  %5603 = vmatmul.msk.f32.vlgmr.msra.gmra.mxu3 %vm649_vm3, %v3131_v43 }
 0x6ce   : > { %v5588_v18 = vclamps-f32 %v2984_v61, 1.0  ;;  %v3115_v49 = vmul.f32 %v3107_v20, %v7137_v24  ;;  %v3116_v48 = vmul.f32 %v3108_v2, %v7140_v31  ;;  %v3117_v27 = vmul.f32 %v3109_v56, %v7148_v10  ;;  %v5621_v24 = vld [vmem:[%s8313_s8 + $0xc] sm:$0xf] }
 0x6cf   : > { %v5848_v34 = vpop.eup %5847  ;;  %v3012_v58 = vsub.f32 1.0, %v3011_v12  ;;  %v3087_v22 = vadd.f32 0.4994258, %v3086_v30  ;;  %v3118_v37 = vmul.f32 %v3110_v33, %v2774_v44  ;;  %v3021_v31 = vand.u32 2147483648, %v7298_v50  ;;  %5622 = vmatpush.msk.msrb.mxu1 %vm701_vm1, %v5621_v24  ;;  %v5651_v24 = vld [vmem:[%s8313_s8 + $0x18] sm:$0xf] }
 0x6d0   : > { %v3037_v16 = vmul.f32 %v3036_v1, %v7185_v25  ;;  %v3051_v53 = vmul.f32 %v5848_v34, %v7305_v0  ;;  %v3111_v9 = vadd.f32 1.0, %v5588_v18  ;;  %3123 = vst.msk [vmem:[#allocation2 + $0x11] sm:$0xff] %vm649_vm3, %v3115_v49  ;;  %vm3016_vm11 = vweird.f32 %v7315_v62  ;;  %5652 = vmatpush.msk.msra.mxu0 %vm701_vm1, %v5651_v24 }
 0x6d1   : > { %v3013_v10 = vmul.f32 %v7315_v62, %v3012_v58  ;;  %v3019_v46 = vand.u32 2147483647, %v7298_v50  ;;  %v3088_v32 = vmul.f32 %v3087_v22, %v7250_v19  ;;  %3124 = vst.msk [vmem:[#allocation2 + $0x21] sm:$0xff] %vm649_vm3, %v3116_v48  ;;  %vm3015_vm12 = vweird.f32 %v7298_v50 }
 0x6d2   : > { %v3052_v25 = vsub.f32 1.0, %v3051_v53  ;;  %v3061_v14 = vand.u32 2147483648, %v7305_v0  ;;  %v3119_v52 = vmul.f32 %v3111_v9, %v2775_v42  ;;  %3125 = vst.msk [vmem:[#allocation2 + $0x31] sm:$0xff] %vm649_vm3, %v3117_v27  ;;  %vm3056_vm13 = vweird.f32 %v5848_v34  ;;  %vm3017_vm14 = vmor %vm3015_vm12, %vm3016_vm11  ;;  %v5671_v9 = vld [vmem:[%s8313_s8 + $0x20] sm:$0xf] }
 0x6d3   : > { %v3014_v60 = vadd.f32 %v7315_v62, %v3013_v10  ;;  %v3075_v55 = vmul.f32 %v3074_v36, %v7250_v19  ;;  %v7360_v4 = vadd.f32 1.0, %v3088_v32  ;;  %3126 = vst.msk [vmem:[#allocation2 + $0x41] sm:$0xff] %vm649_vm3, %v3118_v37  ;;  %v3022_v26 = vor.u32 1.1754944e-38, %v3021_v31  ;;  %v5641_v37 = vld [vmem:[%s8313_s8 + $0x14] sm:$0xf]  ;;  %5672 = vmatpush.msk.msra.mxu2 %vm701_vm1, %v5671_v9 }
 0x6d4   : > { %v3038_v5 = vadd.f32 1.1283791, %v3037_v16  ;;  %v3053_v54 = vmul.f32 %v5848_v34, %v3052_v25  ;;  %v3059_v50 = vand.u32 2147483647, %v7305_v0  ;;  %3127 = vst.msk [vmem:[#allocation2 + $0x51] sm:$0xff] %vm649_vm3, %v3119_v52  ;;  %vm3020_vm15 = vcmp.eq.f32.partialorder %v3019_v46, 8.507059e+37  ;;  %5642 = vmatpush.msk.msrb.mxu3 %vm701_vm1, %v5641_v37 }
 0x6d5   : > { %v3018_v7 = vsel %vm3017_vm14, %v7315_v62, %v3014_v60  ;;  %vm3055_vm2 = vweird.f32 %v7305_v0  ;;  %5849 = vrcp.f32 %v7360_v4  ;;  %v3062_v17 = vor.u32 1.1754944e-38, %v3061_v14  ;;  %v5661_v10 = vld [vmem:[%s8313_s8 + $0x1c] sm:$0xf] }
 0x6d6   : > { %v3023_v39 = vsel %vm3020_vm15, %v3022_v26, %v3018_v7  ;;  %v3054_v35 = vadd.f32 %v5848_v34, %v3053_v54  ;;  %vm3057_vm4 = vmor %vm3055_vm2, %vm3056_vm13  ;;  %v3076_v63 = vadd.f32 0.18741608, %v3075_v55  ;;  %v3039_v20 = vmul.f32 %v3038_v5, %v7125_v15  ;;  %5662 = vmatpush.msk.msra.mxu1 %vm701_vm1, %v5661_v10  ;;  %v3637_v54 = vld [vmem:[#allocation2 + $0x90] sm:$0xff] }
 0x6d7   : > { %v3024_v51 = vmul.f32 %v3023_v39, %v2999_v23  ;;  %v7369_v57 = vld [vmem:[#allocation2 + $0x11] sm:$0xff]  ;;  %vm3060_vm5 = vcmp.eq.f32.partialorder %v3059_v50, 8.507059e+37  ;;  %v2776_v29 = vmul.f32 0.5, %v7067_v59  ;;  %v2777_v1 = vmul.f32 0.5, %v7111_v13 }
 0x6d8   : > { %v3132_v41 = vld [vmem:[#allocation2 + $0x10] sm:$0xff]  ;;  %v3058_v8 = vsel %vm3057_vm4, %v5848_v34, %v3054_v35  ;;  %5595 = vmatmul.msk.f32.gmra.mxu2 %vm649_vm3, %v7369_v57  ;;  %v3077_v15 = vmul.f32 %v3076_v63, %v7250_v19  ;;  %v3101_v30 = vand.u32 2147483648, %v7360_v4  ;;  %v7386_v33 = vld [vmem:[#allocation2 + $0x21] sm:$0xff]  ;;  %v3099_v19 = vand.u32 2147483647, %v7360_v4 }
 0x6d9   : > { %v7371_v40 = vld [vmem:[#allocation2 + $0x12] sm:$0xff]  ;;  %5604 = vmatmul.msk.f32.gmra.mxu3 %vm649_vm3, %v3132_v41  ;;  %v5589_v0 = vclamps-f32 %v3024_v51, 1.0  ;;  %v3063_v47 = vsel %vm3060_vm5, %v3062_v17, %v3058_v8  ;;  %5623 = vmatmul.msk.f32.vlgmr.msrb.gmra.mxu1 %vm649_vm3, %v3132_v41  ;;  %v7388_v45 = vld [vmem:[#allocation2 + $0x20] sm:$0xff]  ;;  %vm3095_vm7 = vweird.f32 %v7360_v4 }
 0x6da   : > { %5614 = vmatmul.msk.f32.gmra.mxu0 %vm649_vm3, %v7371_v40  ;;  %v3064_v2 = vmul.f32 %v3063_v47, %v3039_v20  ;;  %v3078_v12 = vadd.f32 1.1283791, %v3077_v15  ;;  %v7395_v13 = vld [vmem:[#allocation2 + $0x22] sm:$0xff]  ;;  %v3102_v18 = vor.u32 1.1754944e-38, %v3101_v30  ;;  %vm3100_vm9 = vcmp.eq.f32.partialorder %v3099_v19, 8.507059e+37  ;;  %v3143_v11 = vld [vmem:[#allocation2 + $0x31] sm:$0xff] }
 0x6db   : > { %v5850_v56 = vpop.eup %5849  ;;  %v3112_v62 = vadd.f32 1.0, %v5589_v0  ;;  %v3134_v34 = vld [vmem:[#allocation2 + $0x30] sm:$0xff]  ;;  %v3144_v16 = vld [vmem:[#allocation2 + $0x41] sm:$0xff] }
 0x6dc   : > { %v5590_v44 = vclamps-f32 %v3064_v2, 1.0  ;;  %v3091_v42 = vmul.f32 %v5850_v56, %v7360_v4  ;;  %vm3096_vm6 = vweird.f32 %v5850_v56  ;;  %v3079_v36 = vmul.f32 %v3078_v12, %v7151_v28  ;;  %v7406_v22 = vld [vmem:[#allocation2 + $0x32] sm:$0xff]  ;;  %v3135_v53 = vld [vmem:[#allocation2 + $0x40] sm:$0xff] }
 0x6dd   : > { %v3120_v61 = vmul.f32 %v3112_v62, %v2776_v29  ;;  %vm3097_vm8 = vmor %vm3095_vm7, %vm3096_vm6  ;;  %v2778_v28 = vmul.f32 0.5, %v7119_v21  ;;  %v7423_v21 = vld [vmem:[#allocation2 + $0x42] sm:$0xff]  ;;  %v3145_v46 = vld [vmem:[#allocation2 + $0x51] sm:$0xff] }
 0x6de   : > { %v3092_v38 = vsub.f32 1.0, %v3091_v42  ;;  %v3113_v23 = vadd.f32 1.0, %v5590_v44  ;;  %v3136_v32 = vld [vmem:[#allocation2 + $0x50] sm:$0xff] }
 0x6df   : > { %3128 = vst.msk [vmem:[#allocation2 + $0x61] sm:$0xff] %vm649_vm3, %v3120_v61  ;;  %v3291_v25 = vld [vmem:[#allocation2 + $0x52] sm:$0xff] }
 0x6e0   : > { %v3093_v59 = vmul.f32 %v5850_v56, %v3092_v38  ;;  %v3121_v43 = vmul.f32 %v3113_v23, %v2777_v1  ;;  %5596 = vmatmul.msk.f32.gmra.mxu2 %vm649_vm3, %v7386_v33  ;;  %v3723_v39 = vld [vmem:[#allocation2 + $0x91] sm:$0xff] }
 0x6e1   : > { %5605 = vmatmul.msk.f32.gmra.mxu3 %vm649_vm3, %v7388_v45  ;;  %5624 = vmatmul.msk.f32.gmra.mxu1 %vm649_vm3, %v7388_v45  ;;  %v3809_v62 = vld [vmem:[#allocation2 + $0x92] sm:$0xff] }
 0x6e2   : > { %5615 = vmatmul.msk.f32.gmra.mxu0 %vm649_vm3, %v7395_v13  ;;  %v3094_v6 = vadd.f32 %v5850_v56, %v3093_v59  ;;  %3129 = vst.msk [vmem:[#allocation2 + $0x71] sm:$0xff] %vm649_vm3, %v3121_v43 }
 0x6e4   : > { %v3098_v49 = vsel %vm3097_vm8, %v5850_v56, %v3094_v6 }
 0x6e5   : > { %v3103_v48 = vsel %vm3100_vm9, %v3102_v18, %v3098_v49 }
 0x6e6   : > { %v3104_v3 = vmul.f32 %v3103_v48, %v3079_v36  ;;  %v3146_v14 = vld [vmem:[#allocation2 + $0x61] sm:$0xff] }
 0x6e7   : > { %v3137_v52 = vld [vmem:[#allocation2 + $0x60] sm:$0xff] }
 0x6e8   : > { %v5591_v58 = vclamps-f32 %v3104_v3, 1.0  ;;  %5597 = vmatmul.msk.f32.gmra.mxu2 %vm649_vm3, %v3143_v11  ;;  %v3292_v60 = vld [vmem:[#allocation2 + $0x62] sm:$0xff] }
 0x6e9   : > { %5606 = vmatmul.msk.f32.gmra.mxu3 %vm649_vm3, %v3134_v34  ;;  %5625 = vmatmul.msk.f32.gmra.mxu1 %vm649_vm3, %v3134_v34  ;;  %v3147_v55 = vld [vmem:[#allocation2 + $0x71] sm:$0xff] }
 0x6ea   : > { %5616 = vmatmul.msk.f32.gmra.mxu0 %vm649_vm3, %v7406_v22  ;;  %v3114_v27 = vadd.f32 1.0, %v5591_v58  ;;  %v3138_v4 = vld [vmem:[#allocation2 + $0x70] sm:$0xff] }
 0x6eb   : > { %v3293_v26 = vld [vmem:[#allocation2 + $0x72] sm:$0xff] }
 0x6ec   : > { %v3122_v31 = vmul.f32 %v3114_v27, %v2778_v28 }
 0x6ee   : > { %3130 = vst.msk [vmem:[#allocation2 + $0x81] sm:$0xff] %vm649_vm3, %v3122_v31 }
 0x6f0   : > { %5598 = vmatmul.msk.f32.gmra.mxu2 %vm649_vm3, %v3144_v16 }
 0x6f1   : > { %5607 = vmatmul.msk.f32.gmra.mxu3 %vm649_vm3, %v3135_v53  ;;  %5626 = vmatmul.msk.f32.gmra.mxu1 %vm649_vm3, %v3135_v53 }
 0x6f2   : > { %5617 = vmatmul.msk.f32.gmra.mxu0 %vm649_vm3, %v7423_v21 }
 0x6f5   : > { %v3379_v5 = vld [vmem:[#allocation2 + $0x80] sm:$0xff] }
 0x6f6   : > { %v3465_v50 = vld [vmem:[#allocation2 + $0x81] sm:$0xff] }
 0x6f7   : > { %v3551_v7 = vld [vmem:[#allocation2 + $0x82] sm:$0xff] }
 0x6f8   : > { %5599 = vmatmul.msk.f32.gmra.mxu2 %vm649_vm3, %v3145_v46 }
 0x6f9   : > { %5608 = vmatmul.msk.f32.gmra.mxu3 %vm649_vm3, %v3136_v32  ;;  %5627 = vmatmul.msk.f32.gmra.mxu1 %vm649_vm3, %v3136_v32 }
 0x6fa   : > { %5618 = vmatmul.msk.f32.gmra.mxu0 %vm649_vm3, %v3291_v25 }
 0x700   : > { %5600 = vmatmul.msk.f32.gmra.mxu2 %vm649_vm3, %v3146_v14 }
 0x701   : > { %5609 = vmatmul.msk.f32.gmra.mxu3 %vm649_vm3, %v3137_v52  ;;  %5628 = vmatmul.msk.f32.gmra.mxu1 %vm649_vm3, %v3137_v52 }
 0x702   : > { %5619 = vmatmul.msk.f32.gmra.mxu0 %vm649_vm3, %v3292_v60 }
 0x708   : > { %5601 = vmatmul.msk.f32.gmra.mxu2 %vm649_vm3, %v3147_v55 }
 0x709   : > { %5610 = vmatmul.msk.f32.gmra.mxu3 %vm649_vm3, %v3138_v4  ;;  %5629 = vmatmul.msk.f32.gmra.mxu1 %vm649_vm3, %v3138_v4 }
 0x70a   : > { %5620 = vmatmul.msk.f32.gmra.mxu0 %vm649_vm3, %v3293_v26 }
 0x710   : > { %5633 = vmatmul.msk.f32.vlgmr.msrb.gmra.mxu2 %vm649_vm3, %v7369_v57 }
 0x711   : > { %5643 = vmatmul.msk.f32.vlgmr.msrb.gmra.mxu3 %vm649_vm3, %v7371_v40  ;;  %5630 = vmatmul.msk.f32.gmra.mxu1 %vm649_vm3, %v3379_v5 }
 0x712   : > { %5653 = vmatmul.msk.f32.vlgmr.msra.gmra.mxu0 %vm649_vm3, %v7388_v45 }
 0x718   : > { %5634 = vmatmul.msk.f32.gmra.mxu2 %vm649_vm3, %v7386_v33 }
 0x719   : > { %5644 = vmatmul.msk.f32.gmra.mxu3 %vm649_vm3, %v7395_v13  ;;  %5663 = vmatmul.msk.f32.vlgmr.msra.gmra.mxu1 %vm649_vm3, %v7386_v33 }
 0x71a   : > { %5654 = vmatmul.msk.f32.gmra.mxu0 %vm649_vm3, %v3134_v34 }
 0x720   : > { %5635 = vmatmul.msk.f32.gmra.mxu2 %vm649_vm3, %v3143_v11 }
 0x721   : > { %5645 = vmatmul.msk.f32.gmra.mxu3 %vm649_vm3, %v7406_v22  ;;  %5664 = vmatmul.msk.f32.gmra.mxu1 %vm649_vm3, %v3143_v11 }
 0x722   : > { %5655 = vmatmul.msk.f32.gmra.mxu0 %vm649_vm3, %v3135_v53 }
 0x728   : > { %5636 = vmatmul.msk.f32.gmra.mxu2 %vm649_vm3, %v3144_v16 }
 0x729   : > { %5646 = vmatmul.msk.f32.gmra.mxu3 %vm649_vm3, %v7423_v21  ;;  %5665 = vmatmul.msk.f32.gmra.mxu1 %vm649_vm3, %v3144_v16 }
 0x72a   : > { %5656 = vmatmul.msk.f32.gmra.mxu0 %vm649_vm3, %v3136_v32 }
 0x730   : > { %5637 = vmatmul.msk.f32.gmra.mxu2 %vm649_vm3, %v3145_v46 }
 0x731   : > { %5647 = vmatmul.msk.f32.gmra.mxu3 %vm649_vm3, %v3291_v25  ;;  %5666 = vmatmul.msk.f32.gmra.mxu1 %vm649_vm3, %v3145_v46 }
 0x732   : > { %5657 = vmatmul.msk.f32.gmra.mxu0 %vm649_vm3, %v3137_v52 }
 0x738   : > { %5638 = vmatmul.msk.f32.gmra.mxu2 %vm649_vm3, %v3146_v14 }
 0x739   : > { %5648 = vmatmul.msk.f32.gmra.mxu3 %vm649_vm3, %v3292_v60  ;;  %5667 = vmatmul.msk.f32.gmra.mxu1 %vm649_vm3, %v3146_v14 }
 0x73a   : > { %5658 = vmatmul.msk.f32.gmra.mxu0 %vm649_vm3, %v3138_v4 }
 0x740   : > { %5639 = vmatmul.msk.f32.gmra.mxu2 %vm649_vm3, %v3147_v55 }
 0x741   : > { %5649 = vmatmul.msk.f32.gmra.mxu3 %vm649_vm3, %v3293_v26  ;;  %5668 = vmatmul.msk.f32.gmra.mxu1 %vm649_vm3, %v3147_v55 }
 0x742   : > { %5659 = vmatmul.msk.f32.gmra.mxu0 %vm649_vm3, %v3379_v5 }
 0x748   : > { %5640 = vmatmul.msk.f32.gmra.mxu2 %vm649_vm3, %v3465_v50 }
 0x749   : > { %5650 = vmatmul.msk.f32.gmra.mxu3 %vm649_vm3, %v3551_v7  ;;  %5669 = vmatmul.msk.f32.gmra.mxu1 %vm649_vm3, %v3465_v50  ;;  %v3340_v41 = vpop.f32.mrf.mxu0 }
 0x74a   : > { %5660 = vmatmul.msk.f32.gmra.mxu0 %vm649_vm3, %v3637_v54 }
 0x74f   : > { %v7491_v35 = vpop.f32.mrf.mxu2 }
 0x750   : > { %5673 = vmatmul.msk.f32.vlgmr.msra.gmra.mxu2 %vm649_vm3, %v7395_v13  ;;  %v3262_v57 = vpop.f32.mrf.mxu3 }
 0x751   : > { %5670 = vmatmul.msk.f32.gmra.mxu1 %vm649_vm3, %v3723_v39 }
 0x756   : > { %v7501_v40 = vpop.f32.mrf.mxu1 }
 0x757   : > { %8414 = vst [vmem:[#allocation12_spill] sm:$0xff] %v7501_v40  ;;  %v3343_v0 = vpop.f32.mrf.mxu0 }
 0x758   : > { %5674 = vmatmul.msk.f32.gmra.mxu2 %vm649_vm3, %v7406_v22 }
 0x75b   : > { %v3197_v51 = vpop.f32.mrf.mxu2 }
 0x75c   : > { %v3265_v8 = vpop.f32.mrf.mxu3 }
 0x75d   : > { %v3266_v4 = vadd.f32 %v3265_v8, %v3197_v51 }
 0x75e   : > { %v3429_v2 = vpop.f32.mrf.mxu1  ;;  %v8420_v8 = vld [vmem:[#allocation12_spill] sm:$0xff] }
 0x75f   : > { %v3346_v29 = vpop.f32.mrf.mxu0  ;;  %v3365_v50 = vadd.f32 %v3343_v0, %v3266_v4 }
 0x760   : > { %5675 = vmatmul.msk.f32.gmra.mxu2 %vm649_vm3, %v7423_v21 }
 0x763   : > { %v3200_v17 = vpop.f32.mrf.mxu2 }
 0x764   : > { %v3268_v56 = vpop.f32.mrf.mxu3 }
 0x765   : > { %v3269_v5 = vadd.f32 %v3268_v56, %v3200_v17 }
 0x766   : > { %v3432_v44 = vpop.f32.mrf.mxu1 }
 0x767   : > { %v3349_v1 = vpop.f32.mrf.mxu0 }
 0x768   : > { %5676 = vmatmul.msk.f32.gmra.mxu2 %vm649_vm3, %v3291_v25 }
 0x76b   : > { %v7498_v63 = vpop.f32.mrf.mxu2 }
 0x76c   : > { %v3271_v42 = vpop.f32.mrf.mxu3 }
 0x76e   : > { %v3435_v38 = vpop.f32.mrf.mxu1 }
 0x76f   : > { %v3352_v30 = vpop.f32.mrf.mxu0 }
 0x770   : > { %5677 = vmatmul.msk.f32.gmra.mxu2 %vm649_vm3, %v3292_v60 }
 0x773   : > { %v3206_v20 = vpop.f32.mrf.mxu2 }
 0x774   : > { %v3274_v23 = vpop.f32.mrf.mxu3 }
 0x776   : > { %v3438_v33 = vpop.f32.mrf.mxu1 }
 0x777   : > { %v3355_v19 = vpop.f32.mrf.mxu0 }
 0x778   : > { %5678 = vmatmul.msk.f32.gmra.mxu2 %vm649_vm3, %v3293_v26  ;;  %v3263_v26 = vadd.f32 %v3262_v57, %v7491_v35 }
 0x77a   : > { %v3364_v39 = vadd.f32 %v3340_v41, %v3263_v26 }
 0x77b   : > { %v3209_v47 = vpop.f32.mrf.mxu2 }
 0x77c   : > { %v3277_v59 = vpop.f32.mrf.mxu3  ;;  %v3450_v51 = vadd.f32 %v8420_v8, %v3364_v39 }
 0x77e   : > { %v3441_v13 = vpop.f32.mrf.mxu1 }
 0x77f   : > { %v3358_v18 = vpop.f32.mrf.mxu0 }
 0x780   : > { %5679 = vmatmul.msk.f32.gmra.mxu2 %vm649_vm3, %v3551_v7  ;;  %v3272_v7 = vadd.f32 %v3271_v42, %v7498_v63 }
 0x782   : > { %v3367_v40 = vadd.f32 %v3349_v1, %v3272_v7 }
 0x783   : > { %v3212_v15 = vpop.f32.mrf.mxu2 }
 0x784   : > { %v3280_v6 = vpop.f32.mrf.mxu3  ;;  %v3453_v63 = vadd.f32 %v3435_v38, %v3367_v40 }
 0x785   : > { %v3281_v56 = vadd.f32 %v3280_v6, %v3212_v15 }
 0x786   : > { %v3444_v49 = vpop.f32.mrf.mxu1 }
 0x787   : > { %v3361_v11 = vpop.f32.mrf.mxu0 }
 0x788   : > { %5680 = vmatmul.msk.f32.gmra.mxu2 %vm649_vm3, %v3809_v62  ;;  %v3366_v62 = vadd.f32 %v3346_v29, %v3269_v5  ;;  %v3370_v29 = vadd.f32 %v3358_v18, %v3281_v56 }
 0x78a   : > { %v3452_v57 = vadd.f32 %v3432_v44, %v3366_v62  ;;  %v3456_v15 = vadd.f32 %v3444_v49, %v3370_v29 }
 0x78b   : > { %v7506_v61 = vpop.f32.mrf.mxu2 }
 0x78c   : > { %8415 = vst [vmem:[#allocation13_spill] sm:$0xff] %v7506_v61  ;;  %v3283_v48 = vpop.f32.mrf.mxu3  ;;  %v3451_v61 = vadd.f32 %v3429_v2, %v3365_v50 }
 0x78e   : > { %v7508_v34 = vpop.f32.mrf.mxu1 }
 0x78f   : > { %8416 = vst [vmem:[#allocation14_spill] sm:$0xff] %v7508_v34  ;;  %v3684_v28 = vpop.f32.mrf.mxu0 }
 0x793   : > { %v3512_v12 = vpop.f32.mrf.mxu2 }
 0x794   : > { %v3598_v58 = vpop.f32.mrf.mxu3  ;;  %v3536_v42 = vadd.f32 %v3512_v12, %v3450_v51 }
 0x796   : > { %v7510_v27 = vpop.f32.mrf.mxu1  ;;  %v3622_v1 = vadd.f32 %v3598_v58, %v3536_v42 }
 0x797   : > { %8417 = vst [vmem:[#allocation15_spill] sm:$0xff] %v7510_v27  ;;  %v3687_v31 = vpop.f32.mrf.mxu0  ;;  %v3278_v27 = vadd.f32 %v3277_v59, %v3209_v47  ;;  %v8421_v59 = vld [vmem:[#allocation13_spill] sm:$0xff] }
 0x798   : > { %v3284_v2 = vadd.f32 %v3283_v48, %v8421_v59  ;;  %v3708_v40 = vadd.f32 %v3684_v28, %v3622_v1 }
 0x799   : > { %v3369_v4 = vadd.f32 %v3355_v19, %v3278_v27 }
 0x79a   : > { %v3371_v12 = vadd.f32 %v3361_v11, %v3284_v2 }
 0x79b   : > { %v3515_v45 = vpop.f32.mrf.mxu2 }
 0x79c   : > { %v3601_v24 = vpop.f32.mrf.mxu3  ;;  %v3537_v0 = vadd.f32 %v3515_v45, %v3451_v61 }
 0x79e   : > { %v3773_v53 = vpop.f32.mrf.mxu1  ;;  %v8423_v58 = vld [vmem:[#allocation15_spill] sm:$0xff] }
 0x79f   : > { %v3690_v9 = vpop.f32.mrf.mxu0  ;;  %v3794_v27 = vadd.f32 %v8423_v58, %v3708_v40 }
 0x7a3   : > { %v3518_v43 = vpop.f32.mrf.mxu2 }
 0x7a4   : > { %v3604_v21 = vpop.f32.mrf.mxu3  ;;  %v3538_v26 = vadd.f32 %v3518_v43, %v3452_v57 }
 0x7a6   : > { %v3776_v46 = vpop.f32.mrf.mxu1  ;;  %v3624_v7 = vadd.f32 %v3604_v21, %v3538_v26 }
 0x7a7   : > { %v3693_v14 = vpop.f32.mrf.mxu0 }
 0x7a8   : > { %v3710_v19 = vadd.f32 %v3690_v9, %v3624_v7 }
 0x7ab   : > { %v3521_v36 = vpop.f32.mrf.mxu2 }
 0x7ac   : > { %v3607_v32 = vpop.f32.mrf.mxu3  ;;  %v3539_v47 = vadd.f32 %v3521_v36, %v3453_v63  ;;  %v8422_v36 = vld [vmem:[#allocation14_spill] sm:$0xff] }
 0x7ad   : > { %v3457_v48 = vadd.f32 %v8422_v36, %v3371_v12 }
 0x7ae   : > { %v3779_v52 = vpop.f32.mrf.mxu1  ;;  %v3625_v45 = vadd.f32 %v3607_v32, %v3539_v47 }
 0x7af   : > { %v3696_v54 = vpop.f32.mrf.mxu0 }
 0x7b3   : > { %v3524_v3 = vpop.f32.mrf.mxu2 }
 0x7b4   : > { %v3610_v60 = vpop.f32.mrf.mxu3 }
 0x7b7   : > { %v3699_v41 = vpop.f32.mrf.mxu0 }
 0x7bb   : > { %v3527_v22 = vpop.f32.mrf.mxu2 }
 0x7bc   : > { %v3613_v35 = vpop.f32.mrf.mxu3 }
 0x7c3   : > { %v3530_v37 = vpop.f32.mrf.mxu2 }
 0x7c4   : > { %v3616_v38 = vpop.f32.mrf.mxu3  ;;  %v3542_v43 = vadd.f32 %v3530_v37, %v3456_v15 }
 0x7c6   : > { %v3628_v49 = vadd.f32 %v3616_v38, %v3542_v43  ;;  %v5888_v38 = vmov 512.0  }
 0x7c7   : > { %5851 = vrcp.f32 %v5888_v38 }
 0x7cb   : > { %v7512_v16 = vpop.f32.mrf.mxu2 }
 0x7cc   : > { %8418 = vst [vmem:[#allocation16_spill] sm:$0xff] %v7512_v16  ;;  %v3275_v16 = vadd.f32 %v3274_v23, %v3206_v20  ;;  %v3623_v20 = vadd.f32 %v3601_v24, %v3537_v0  ;;  %v3455_v23 = vadd.f32 %v3441_v13, %v3369_v4  ;;  %v3711_v13 = vadd.f32 %v3693_v14, %v3625_v45  ;;  %v3702_v24 = vpop.f32.mrf.mxu0  ;;  %v3619_v57 = vpop.f32.mrf.mxu3 }
 0x7cd   : > { %v3714_v14 = vadd.f32 %v3702_v24, %v3628_v49 }
 0x7ce   : > { %v3368_v17 = vadd.f32 %v3352_v30, %v3275_v16  ;;  %v3541_v44 = vadd.f32 %v3527_v22, %v3455_v23  ;;  %v3709_v61 = vadd.f32 %v3687_v31, %v3623_v20  ;;  %v3796_v22 = vadd.f32 %v3776_v46, %v3710_v19  ;;  %v5852_v19 = vpop.eup %5851 }
 0x7cf   : > { %v3797_v11 = vadd.f32 %v3779_v52, %v3711_v13  ;;  %vm3918_vm1 = vweird.f32 %v5852_v19 }
 0x7d0   : > { %v3454_v5 = vadd.f32 %v3438_v33, %v3368_v17  ;;  %v3627_v6 = vadd.f32 %v3613_v35, %v3541_v44  ;;  %v3795_v18 = vadd.f32 %v3773_v53, %v3709_v61 }
 0x7d2   : > { %v3540_v39 = vadd.f32 %v3524_v3, %v3454_v5  ;;  %v3713_v21 = vadd.f32 %v3699_v41, %v3627_v6 }
 0x7d3   : > { %v7514_v10 = vpop.f32.mrf.mxu2  ;;  %v8424_v28 = vld [vmem:[#allocation16_spill] sm:$0xff] }
 0x7d4   : > { %8419 = vst [vmem:[#allocation18_spill] sm:$0xff] %v7514_v10  ;;  %v3782_v10 = vpop.f32.mrf.mxu1  ;;  %v3626_v33 = vadd.f32 %v3610_v60, %v3540_v39  ;;  %v3543_v32 = vadd.f32 %v8424_v28, %v3457_v48  ;;  %v3705_v52 = vpop.f32.mrf.mxu0 }
 0x7d6   : > { %v3712_v16 = vadd.f32 %v3696_v54, %v3626_v33  ;;  %v3629_v17 = vadd.f32 %v3619_v57, %v3543_v32  ;;  %v3914_v33 = vmul.f32 512.0, %v5852_v19 }
 0x7d8   : > { %v3798_v53 = vadd.f32 %v3782_v10, %v3712_v16  ;;  %v3715_v63 = vadd.f32 %v3705_v52, %v3629_v17  ;;  %v3915_v43 = vsub.f32 1.0, %v3914_v33 }
 0x7da   : > { %v3916_v6 = vmul.f32 %v5852_v19, %v3915_v43 }
 0x7db   : > { %v3859_v25 = vpop.f32.mrf.mxu2  ;;  %v8425_v9 = vld [vmem:[#allocation18_spill] sm:$0xff] }
 0x7dc   : > { %v3785_v30 = vpop.f32.mrf.mxu1  ;;  %v3881_v31 = vadd.f32 %v3859_v25, %v3795_v18  ;;  %v3880_v60 = vadd.f32 %v8425_v9, %v3794_v27  ;;  %v3917_v18 = vadd.f32 %v5852_v19, %v3916_v6 }
 0x7dd   : > { %v3799_v35 = vadd.f32 %v3785_v30, %v3713_v21 }
 0x7de   : > { %v3889_v8 = vsel %vm522_vm0, %v3881_v31, 0.0  ;;  %v3888_v46 = vsel %vm522_vm0, %v3880_v60, 0.0  ;;  %v7532_v13 = vsel %vm3918_vm1, %v5852_v19, %v3917_v18 }
 0x7df   : > { %v3890_v56 = vadd.f32 %v3889_v8, %v3888_v46 }
 0x7e3   : > { %v3862_v55 = vpop.f32.mrf.mxu2 }
 0x7e4   : > { %v3882_v37 = vadd.f32 %v3862_v55, %v3796_v22  ;;  %v3788_v62 = vpop.f32.mrf.mxu1 }
 0x7e5   : > { %v3800_v4 = vadd.f32 %v3788_v62, %v3714_v14 }
 0x7e6   : > { %v3891_v25 = vsel %vm522_vm0, %v3882_v37, 0.0 }
 0x7e7   : > { %v3892_v10 = vadd.f32 %v3891_v25, %v3890_v56 }
 0x7eb   : > { %v3865_v34 = vpop.f32.mrf.mxu2 }
 0x7ec   : > { %v3883_v51 = vadd.f32 %v3865_v34, %v3797_v11  ;;  %v3791_v41 = vpop.f32.mrf.mxu1 }
 0x7ed   : > { %v3801_v47 = vadd.f32 %v3791_v41, %v3715_v63 }
 0x7ee   : > { %v3893_v55 = vsel %vm522_vm0, %v3883_v51, 0.0 }
 0x7ef   : > { %v3894_v5 = vadd.f32 %v3893_v55, %v3892_v10 }
 0x7f3   : > { %v3868_v50 = vpop.f32.mrf.mxu2 }
 0x7f4   : > { %v3884_v54 = vadd.f32 %v3868_v50, %v3798_v53 }
 0x7f6   : > { %v3895_v26 = vsel %vm522_vm0, %v3884_v54, 0.0 }
 0x7f7   : > { %v3896_v20 = vadd.f32 %v3895_v26, %v3894_v5 }
 0x7fb   : > { %v3871_v3 = vpop.f32.mrf.mxu2 }
 0x7fc   : > { %v3885_v42 = vadd.f32 %v3871_v3, %v3799_v35 }
 0x7fe   : > { %v3897_v29 = vsel %vm522_vm0, %v3885_v42, 0.0 }
 0x7ff   : > { %v3898_v59 = vadd.f32 %v3897_v29, %v3896_v20 }
 0x803   : > { %v3874_v0 = vpop.f32.mrf.mxu2 }
 0x804   : > { %v3886_v34 = vadd.f32 %v3874_v0, %v3800_v4 }
 0x806   : > { %v3899_v23 = vsel %vm522_vm0, %v3886_v34, 0.0 }
 0x807   : > { %v3900_v50 = vadd.f32 %v3899_v23, %v3898_v59 }
 0x80b   : > { %v3877_v2 = vpop.f32.mrf.mxu2 }
 0x80c   : > { %v3887_v1 = vadd.f32 %v3877_v2, %v3801_v47 }
 0x80e   : > { %v3901_v7 = vsel %vm522_vm0, %v3887_v1, 0.0 }
 0x80f   : > { %v3902_v39 = vadd.f32 %v3901_v7, %v3900_v50 }
 0x811   : > { %3903 = vadd.xlane.f32.xlu1 %v3902_v39  ;;  %v7563_v39 = vld [vmem:[%s8314_s9] ss:$0 sm:$0xff] }
 0x884   : > { %v3904_v44 = vpop.xlane.xlu1 %3903 }
 0x885   : > { %v3905_v30 = vrot.slane %v3904_v44, 4 }
 0x887   : > { %v3906_v15 = vadd.f32 %v3905_v30, %v3904_v44 }
 0x889   : > { %v3907_v61 = vrot.slane %v3906_v15, 2 }
 0x88b   : > { %v3908_v45 = vadd.f32 %v3907_v61, %v3906_v15 }
 0x88d   : > { %v3909_v12 = vrot.slane %v3908_v45, 1 }
 0x88f   : > { %v3910_v40 = vadd.f32 %v3909_v12, %v3908_v45  ;;  %v7574_v12 = vld [vmem:[%s8315_s10] ss:$0 sm:$0xff] }
 0x891   : > { %5785 = vpush %v3910_v40 }
 0x8c2   : > { %s5786_s24 = spop %5785 }
 0x8c3   : > { %v3912_v36 = vstv %s5786_s24 }
 0x8c4   : > { %v3920_v48 = vmul.f32 %v7532_v13, %v3912_v36 }
 0x8c6   : > { %v3921_v58 = vsub.f32 %v3880_v60, %v3920_v48  ;;  %v3922_v27 = vsub.f32 %v3881_v31, %v3920_v48  ;;  %v3923_v24 = vsub.f32 %v3882_v37, %v3920_v48  ;;  %v3924_v3 = vsub.f32 %v3883_v51, %v3920_v48 }
 0x8c7   : > { %v7535_v22 = vsub.f32 %v3884_v54, %v3920_v48  ;;  %v7537_v11 = vsub.f32 %v3885_v42, %v3920_v48  ;;  %v7541_v53 = vsub.f32 %v3886_v34, %v3920_v48  ;;  %v7546_v14 = vsub.f32 %v3887_v1, %v3920_v48 }
 0x8c8   : > { %v3929_v16 = vmul.f32 %v3921_v58, %v3921_v58  ;;  %v3930_v49 = vmul.f32 %v3922_v27, %v3922_v27  ;;  %v3931_v21 = vmul.f32 %v3923_v24, %v3923_v24  ;;  %v3932_v28 = vmul.f32 %v3924_v3, %v3924_v3 }
 0x8c9   : > { %v3933_v31 = vmul.f32 %v7535_v22, %v7535_v22  ;;  %v3934_v8 = vmul.f32 %v7537_v11, %v7537_v11  ;;  %v3935_v57 = vmul.f32 %v7541_v53, %v7541_v53  ;;  %v3936_v25 = vmul.f32 %v7546_v14, %v7546_v14 }
 0x8ca   : > { %v3937_v32 = vsel %vm522_vm0, %v3929_v16, 0.0  ;;  %v3938_v9 = vsel %vm522_vm0, %v3930_v49, 0.0  ;;  %v3940_v60 = vsel %vm522_vm0, %v3931_v21, 0.0  ;;  %v3942_v51 = vsel %vm522_vm0, %v3932_v28, 0.0 }
 0x8cb   : > { %v3939_v62 = vadd.f32 %v3938_v9, %v3937_v32  ;;  %v3944_v17 = vsel %vm522_vm0, %v3933_v31, 0.0  ;;  %v3946_v54 = vsel %vm522_vm0, %v3934_v8, 0.0  ;;  %v3948_v56 = vsel %vm522_vm0, %v3935_v57, 0.0 }
 0x8cc   : > { %v3950_v4 = vsel %vm522_vm0, %v3936_v25, 0.0 }
 0x8cd   : > { %v3941_v37 = vadd.f32 %v3940_v60, %v3939_v62 }
 0x8cf   : > { %v3943_v35 = vadd.f32 %v3942_v51, %v3941_v37 }
 0x8d1   : > { %v3945_v46 = vadd.f32 %v3944_v17, %v3943_v35 }
 0x8d3   : > { %v3947_v52 = vadd.f32 %v3946_v54, %v3945_v46 }
 0x8d5   : > { %v3949_v0 = vadd.f32 %v3948_v56, %v3947_v52 }
 0x8d7   : > { %v3951_v55 = vadd.f32 %v3950_v4, %v3949_v0 }
 0x8d9   : > { %3952 = vadd.xlane.f32.xlu2 %v3951_v55 }
 0x94c   : > { %v3953_v42 = vpop.xlane.xlu2 %3952 }
 0x94d   : > { %v3954_v10 = vrot.slane %v3953_v42, 4 }
 0x94f   : > { %v3955_v63 = vadd.f32 %v3954_v10, %v3953_v42 }
 0x951   : > { %v3956_v26 = vrot.slane %v3955_v63, 2 }
 0x953   : > { %v3957_v34 = vadd.f32 %v3956_v26, %v3955_v63 }
 0x955   : > { %v3958_v41 = vrot.slane %v3957_v34, 1 }
 0x957   : > { %v3959_v5 = vadd.f32 %v3958_v41, %v3957_v34 }
 0x959   : > { %5787 = vpush %v3959_v5 }
 0x98a   : > { %s5788_s25 = spop %5787 }
 0x98b   : > { %v3961_v29 = vstv %s5788_s25  ;;  %s5210_s25 = sand.u32 1, %s5980_s22 }
 0x98c   : > { %v3962_v20 = vmul.f32 %v3961_v29, %v7532_v13  ;;  %s5213_s18 = sadd.s32 %s5776_s26, %s5210_s25 }
 0x98d   : > { %s5214_s26 = scalar_lea.vmem %s8306_s1, %s5213_s18 }
 0x98e   : > { %v3963_v47 = vadd.f32 1e-05, %v3962_v20 }
 0x990   : > { %5853 = vrsqrt.f32 %v3963_v47  ;;  %vm3970_vm10 = vweird.f32 %v3963_v47 }
 0x996   : > { %v5854_v23 = vpop.eup %5853 }
 0x997   : > { %v3965_v59 = vmul.f32 %v5854_v23, %v3963_v47  ;;  %vm3971_vm3 = vweird.f32 %v5854_v23 }
 0x998   : > { %vm3972_vm11 = vmor %vm3970_vm10, %vm3971_vm3 }
 0x999   : > { %v3966_v2 = vmul.f32 %v5854_v23, %v3965_v59 }
 0x99b   : > { %v3967_v1 = vmul.f32 0.5, %v3966_v2 }
 0x99d   : > { %v3968_v50 = vsub.f32 1.5, %v3967_v1 }
 0x99f   : > { %v3969_v7 = vmul.f32 %v5854_v23, %v3968_v50 }
 0x9a1   : > { %v7565_v44 = vsel %vm3972_vm11, %v5854_v23, %v3969_v7 }
 0x9a2   : > { %v3974_v30 = vmul.f32 %v7565_v44, %v3921_v58  ;;  %v3975_v15 = vmul.f32 %v7565_v44, %v3922_v27  ;;  %v3976_v61 = vmul.f32 %v7565_v44, %v3923_v24  ;;  %v3977_v45 = vmul.f32 %v7565_v44, %v3924_v3 }
 0x9a3   : > { %v3978_v9 = vmul.f32 %v7565_v44, %v7535_v22  ;;  %v3979_v17 = vmul.f32 %v7565_v44, %v7537_v11 }
 0x9a4   : > { %v3986_v40 = vmul.f32 %v7563_v39, %v3974_v30  ;;  %v3987_v38 = vmul.f32 %v7563_v39, %v3975_v15  ;;  %v3988_v19 = vmul.f32 %v7563_v39, %v3976_v61  ;;  %v3989_v33 = vmul.f32 %v7563_v39, %v3977_v45 }
 0x9a5   : > { %v3990_v54 = vmul.f32 %v7563_v39, %v3978_v9  ;;  %v3991_v41 = vmul.f32 %v7563_v39, %v3979_v17 }
 0x9a6   : > { %v7581_v43 = vadd.f32 %v7574_v12, %v3986_v40  ;;  %v7584_v6 = vadd.f32 %v7574_v12, %v3987_v38  ;;  %v7587_v18 = vadd.f32 %v7574_v12, %v3988_v19  ;;  %v7590_v36 = vadd.f32 %v7574_v12, %v3989_v33 }
 0x9a7   : > { %v7644_v30 = vadd.f32 %v7574_v12, %v3990_v54  ;;  %v7649_v40 = vadd.f32 %v7574_v12, %v3991_v41 }
 0x9a8   : > { %v7593_v48 = vmul.f32 0.70710677, %v7581_v43  ;;  %v7596_v58 = vmul.f32 0.70710677, %v7584_v6  ;;  %v7599_v27 = vmul.f32 0.70710677, %v7587_v18 }
 0x9a9   : > { %v7602_v24 = vmul.f32 0.70710677, %v7590_v36  ;;  %v7663_v17 = vmul.f32 0.70710677, %v7649_v40 }
 0x9aa   : > { %v4022_v3 = vmul.f32 %v7593_v48, %v7593_v48  ;;  %v4062_v16 = vmul.f32 %v7596_v58, %v7596_v58  ;;  %v4102_v49 = vmul.f32 %v7599_v27, %v7599_v27 }
 0x9ab   : > { %v4142_v21 = vmul.f32 %v7602_v24, %v7602_v24 }
 0x9ac   : > { %v7612_v28 = vmin.f32 %v4022_v3, 16.0  ;;  %v7614_v32 = vmin.f32 %v4062_v16, 16.0  ;;  %v7618_v62 = vmin.f32 %v4102_v49, 16.0 }
 0x9ad   : > { %v7620_v31 = vmin.f32 %v4142_v21, 16.0 }
 0x9ae   : > { %v4024_v60 = vmul.f32 2.1237322e-06, %v7612_v28  ;;  %v4035_v37 = vmul.f32 3.8918573e-05, %v7612_v28  ;;  %v4064_v8 = vmul.f32 2.1237322e-06, %v7614_v32 }
 0x9af   : > { %v4075_v51 = vmul.f32 3.8918573e-05, %v7614_v32  ;;  %v4104_v35 = vmul.f32 2.1237322e-06, %v7618_v62  ;;  %v4115_v57 = vmul.f32 3.8918573e-05, %v7618_v62 }
 0x9b0   : > { %v4025_v22 = vadd.f32 0.00028619796, %v4024_v60  ;;  %v4036_v46 = vadd.f32 0.001143296, %v4035_v37  ;;  %v4065_v25 = vadd.f32 0.00028619796, %v4064_v8 }
 0x9b1   : > { %v4076_v52 = vadd.f32 0.001143296, %v4075_v51  ;;  %v4105_v56 = vadd.f32 0.00028619796, %v4104_v35  ;;  %v4116_v0 = vadd.f32 0.001143296, %v4115_v57  ;;  %v3980_v57 = vmul.f32 %v7565_v44, %v7541_v53 }
 0x9b2   : > { %v4026_v4 = vmul.f32 %v4025_v22, %v7612_v28  ;;  %v4037_v55 = vmul.f32 %v4036_v46, %v7612_v28  ;;  %v4066_v42 = vmul.f32 %v4065_v25, %v7614_v32  ;;  %v4144_v10 = vmul.f32 2.1237322e-06, %v7620_v31 }
 0x9b3   : > { %v4077_v63 = vmul.f32 %v4076_v52, %v7614_v32  ;;  %v4106_v11 = vmul.f32 %v4105_v56, %v7618_v62  ;;  %v4117_v26 = vmul.f32 %v4116_v0, %v7618_v62  ;;  %v4155_v34 = vmul.f32 3.8918573e-05, %v7620_v31 }
 0x9b4   : > { %v4027_v5 = vadd.f32 0.0036580483, %v4026_v4  ;;  %v4038_v29 = vadd.f32 0.014752088, %v4037_v55  ;;  %v4067_v20 = vadd.f32 0.0036580483, %v4066_v42  ;;  %v3981_v0 = vmul.f32 %v7565_v44, %v7546_v14 }
 0x9b5   : > { %v4078_v47 = vadd.f32 0.014752088, %v4077_v63  ;;  %v4107_v23 = vadd.f32 0.0036580483, %v4106_v11  ;;  %v4118_v59 = vadd.f32 0.014752088, %v4117_v26  ;;  %v3992_v26 = vmul.f32 %v7563_v39, %v3980_v57 }
 0x9b6   : > { %v4028_v2 = vmul.f32 %v4027_v5, %v7612_v28  ;;  %v4039_v1 = vmul.f32 %v4038_v29, %v7612_v28  ;;  %v4068_v50 = vmul.f32 %v4067_v20, %v7614_v32  ;;  %v4145_v7 = vadd.f32 0.00028619796, %v4144_v10 }
 0x9b7   : > { %v4079_v15 = vmul.f32 %v4078_v47, %v7614_v32  ;;  %v4119_v61 = vmul.f32 %v4118_v59, %v7618_v62  ;;  %v4156_v45 = vadd.f32 0.001143296, %v4155_v34  ;;  %v4108_v3 = vmul.f32 %v4107_v23, %v7618_v62 }
 0x9b8   : > { %v4040_v38 = vadd.f32 0.112945676, %v4039_v1  ;;  %v4146_v19 = vmul.f32 %v4145_v7, %v7620_v31  ;;  %v4029_v21 = vadd.f32 0.05243302, %v4028_v2  ;;  %v4069_v60 = vadd.f32 0.05243302, %v4068_v50 }
 0x9b9   : > { %v4080_v33 = vadd.f32 0.112945676, %v4079_v15  ;;  %v4120_v16 = vadd.f32 0.112945676, %v4119_v61  ;;  %v4157_v49 = vmul.f32 %v4156_v45, %v7620_v31  ;;  %v7656_v37 = vmul.f32 0.70710677, %v7644_v30 }
 0x9ba   : > { %v4041_v9 = vmul.f32 %v4040_v38, %v7612_v28  ;;  %v4147_v46 = vadd.f32 0.0036580483, %v4146_v19  ;;  %v4109_v54 = vadd.f32 0.05243302, %v4108_v3  ;;  %v4030_v4 = vmul.f32 %v4029_v21, %v7612_v28 }
 0x9bb   : > { %v4081_v8 = vmul.f32 %v4080_v33, %v7614_v32  ;;  %v4121_v51 = vmul.f32 %v4120_v16, %v7618_v62  ;;  %v4158_v35 = vadd.f32 0.014752088, %v4157_v49  ;;  %v4070_v42 = vmul.f32 %v4069_v60, %v7614_v32 }
 0x9bc   : > { %v4042_v22 = vadd.f32 0.4994258, %v4041_v9  ;;  %v4182_v11 = vmul.f32 %v7656_v37, %v7656_v37  ;;  %v4148_v14 = vmul.f32 %v4147_v46, %v7620_v31  ;;  %v4222_v44 = vmul.f32 %v7663_v17, %v7663_v17 }
 0x9bd   : > { %v4082_v25 = vadd.f32 0.4994258, %v4081_v8  ;;  %v4122_v52 = vadd.f32 0.4994258, %v4121_v51  ;;  %v4159_v56 = vmul.f32 %v4158_v35, %v7620_v31  ;;  %v4110_v5 = vmul.f32 %v4109_v54, %v7618_v62 }
 0x9be   : > { %v4043_v55 = vmul.f32 %v4042_v22, %v7612_v28  ;;  %v4031_v20 = vadd.f32 0.18741608, %v4030_v4  ;;  %v4071_v47 = vadd.f32 0.18741608, %v4070_v42  ;;  %v3993_v23 = vmul.f32 %v7563_v39, %v3981_v0 }
 0x9bf   : > { %v4083_v53 = vmul.f32 %v4082_v25, %v7614_v32  ;;  %v4123_v10 = vmul.f32 %v4122_v52, %v7618_v62  ;;  %v4160_v63 = vadd.f32 0.112945676, %v4159_v56  ;;  %v7690_v2 = vmin.f32 %v4182_v11, 16.0 }
 0x9c0   : > { %v7676_v34 = vadd.f32 1.0, %v4043_v55  ;;  %v7693_v1 = vadd.f32 %v7574_v12, %v3992_v26  ;;  %v4149_v50 = vadd.f32 0.05243302, %v4148_v14  ;;  %v7695_v7 = vmin.f32 %v4222_v44, 16.0 }
 0x9c1   : > { %v7681_v41 = vadd.f32 1.0, %v4083_v53  ;;  %v7684_v29 = vadd.f32 1.0, %v4123_v10  ;;  %v4161_v59 = vmul.f32 %v4160_v63, %v7620_v31  ;;  %v4111_v15 = vadd.f32 0.18741608, %v4110_v5 }
 0x9c2   : > { %5855 = vrcp.f32 %v7676_v34  ;;  %v4032_v61 = vmul.f32 %v4031_v20, %v7612_v28  ;;  %v4072_v45 = vmul.f32 %v4071_v47, %v7614_v32  ;;  %v7701_v39 = vadd.f32 %v7574_v12, %v3993_v23 }
 0x9c3   : > { %5857 = vrcp.f32 %v7681_v41  ;;  %v4162_v38 = vadd.f32 0.4994258, %v4161_v59  ;;  %v4184_v19 = vmul.f32 2.1237322e-06, %v7690_v2  ;;  %v7707_v3 = vmul.f32 0.70710677, %v7693_v1 }
 0x9c4   : > { %5859 = vrcp.f32 %v7684_v29  ;;  %v4150_v16 = vmul.f32 %v4149_v50, %v7620_v31  ;;  %v4195_v49 = vmul.f32 3.8918573e-05, %v7690_v2  ;;  %v4224_v21 = vmul.f32 2.1237322e-06, %v7695_v7 }
 0x9c5   : > { %v4112_v32 = vmul.f32 %v4111_v15, %v7618_v62  ;;  %v4163_v9 = vmul.f32 %v4162_v38, %v7620_v31  ;;  %v4185_v60 = vadd.f32 0.00028619796, %v4184_v19  ;;  %v7719_v8 = vmul.f32 0.5, %v7581_v43 }
 0x9c6   : > { %v7722_v51 = vmul.f32 0.5, %v7584_v6  ;;  %v4033_v35 = vadd.f32 1.1283791, %v4032_v61  ;;  %v4073_v57 = vadd.f32 1.1283791, %v4072_v45  ;;  %v7730_v62 = vmul.f32 0.5, %v7587_v18 }
 0x9c7   : > { %v7726_v46 = vadd.f32 1.0, %v4163_v9  ;;  %v4186_v25 = vmul.f32 %v4185_v60, %v7690_v2  ;;  %v4196_v54 = vadd.f32 0.001143296, %v4195_v49  ;;  %v4225_v52 = vadd.f32 0.00028619796, %v4224_v21 }
 0x9c8   : > { %v7704_v33 = vpop.eup %5855  ;;  %v7733_v56 = vmul.f32 0.70710677, %v7701_v39  ;;  %v4151_v6 = vadd.f32 0.18741608, %v4150_v16  ;;  %v4113_v4 = vadd.f32 1.1283791, %v4112_v32  ;;  %v4262_v55 = vmul.f32 %v7707_v3, %v7707_v3 }
 0x9c9   : > { %v7712_v28 = vpop.eup %5857  ;;  %v4046_v12 = vmul.f32 %v7704_v33, %v7676_v34  ;;  %5861 = vrcp.f32 %v7726_v46  ;;  %v7741_v42 = vmul.f32 %v4033_v35, %v7593_v48  ;;  %v4056_v18 = vand.u32 2147483648, %v7676_v34 }
 0x9ca   : > { %v7724_v22 = vpop.eup %5859  ;;  %v4086_v43 = vmul.f32 %v7712_v28, %v7681_v41  ;;  %v4187_v10 = vadd.f32 0.0036580483, %v4186_v25  ;;  %vm4050_vm12 = vweird.f32 %v7676_v34  ;;  %v4054_v63 = vand.u32 2147483647, %v7676_v34 }
 0x9cb   : > { %v4047_v0 = vsub.f32 1.0, %v4046_v12  ;;  %v4126_v53 = vmul.f32 %v7724_v22, %v7684_v29  ;;  %v7749_v11 = vmul.f32 %v4073_v57, %v7596_v58  ;;  %v4197_v26 = vmul.f32 %v4196_v54, %v7690_v2 }
 0x9cc   : > { %v4226_v14 = vmul.f32 %v4225_v52, %v7695_v7  ;;  %v4087_v44 = vsub.f32 1.0, %v4086_v43  ;;  %v4094_v48 = vand.u32 2147483647, %v7681_v41  ;;  %v4096_v5 = vand.u32 2147483648, %v7681_v41 }
 0x9cd   : > { %v4152_v20 = vmul.f32 %v4151_v6, %v7620_v31  ;;  %v4048_v47 = vmul.f32 %v7704_v33, %v4047_v0  ;;  %v7758_v23 = vmul.f32 %v4113_v4, %v7599_v27  ;;  %v4136_v59 = vand.u32 2147483648, %v7684_v29 }
 0x9ce   : > { %v4198_v58 = vadd.f32 0.014752088, %v4197_v26  ;;  %v4057_v50 = vor.u32 1.1754944e-38, %v4056_v18  ;;  %v4127_v15 = vsub.f32 1.0, %v4126_v53  ;;  %v4134_v61 = vand.u32 2147483647, %v7684_v29 }
 0x9cf   : > { %v4188_v45 = vmul.f32 %v4187_v10, %v7690_v2  ;;  %v7763_v38 = vpop.eup %5861  ;;  %v4227_v16 = vadd.f32 0.0036580483, %v4226_v14  ;;  %v4235_v31 = vmul.f32 3.8918573e-05, %v7695_v7  ;;  %v7767_v49 = vmin.f32 %v4262_v55, 16.0 }
 0x9d0   : > { %v4199_v19 = vmul.f32 %v4198_v58, %v7690_v2  ;;  %vm7769_vm13 = vcmp.eq.f32.partialorder %v4054_v63, 8.507059e+37  ;;  %v4088_v21 = vmul.f32 %v7712_v28, %v4087_v44  ;;  %vm4090_vm14 = vweird.f32 %v7681_v41 }
 0x9d1   : > { %v4097_v12 = vor.u32 1.1754944e-38, %v4096_v5  ;;  %v4153_v32 = vadd.f32 1.1283791, %v4152_v20  ;;  %v4166_v9 = vmul.f32 %v7763_v38, %v7726_v46  ;;  %v4049_v60 = vadd.f32 %v7704_v33, %v4048_v47 }
 0x9d2   : > { %vm4051_vm15 = vweird.f32 %v7704_v33  ;;  %vm4130_vm2 = vweird.f32 %v7684_v29  ;;  %v4137_v35 = vor.u32 1.1754944e-38, %v4136_v59  ;;  %v4200_v57 = vadd.f32 0.112945676, %v4199_v19 }
 0x9d3   : > { %vm4091_vm4 = vweird.f32 %v7712_v28  ;;  %v4128_v25 = vmul.f32 %v7724_v22, %v4127_v15  ;;  %v4167_v54 = vsub.f32 1.0, %v4166_v9  ;;  %v4189_v52 = vadd.f32 0.05243302, %v4188_v45  ;;  %vm7787_vm5 = vmor %vm4050_vm12, %vm4051_vm15 }
 0x9d4   : > { %v4201_v43 = vmul.f32 %v4200_v57, %v7690_v2  ;;  %v4228_v6 = vmul.f32 %v4227_v16, %v7695_v7  ;;  %v4236_v0 = vadd.f32 0.001143296, %v4235_v31  ;;  %v4264_v4 = vmul.f32 2.1237322e-06, %v7767_v49  ;;  %vm7825_vm9 = vmor %vm4090_vm14, %vm4091_vm4 }
 0x9d5   : > { %v4089_v18 = vadd.f32 %v7712_v28, %v4088_v21  ;;  %vm7792_vm6 = vcmp.eq.f32.partialorder %v4094_v48, 8.507059e+37  ;;  %vm4131_vm7 = vweird.f32 %v7724_v22  ;;  %v7798_v10 = vmul.f32 %v4153_v32, %v7602_v24 }
 0x9d6   : > { %v4275_v63 = vmul.f32 3.8918573e-05, %v7767_v49  ;;  %v4053_v34 = vsel %vm7787_vm5, %v7704_v33, %v4049_v60  ;;  %vm7804_vm8 = vcmp.eq.f32.partialorder %v4134_v61, 8.507059e+37  ;;  %v4202_v14 = vadd.f32 0.4994258, %v4201_v43  ;;  %vm7841_vm1 = vmor %vm4130_vm2, %vm4131_vm7 }
 0x9d7   : > { %v4237_v44 = vmul.f32 %v4236_v0, %v7695_v7  ;;  %v4265_v48 = vadd.f32 0.00028619796, %v4264_v4  ;;  %v4129_v5 = vadd.f32 %v7724_v22, %v4128_v25  ;;  %v4168_v20 = vmul.f32 %v7763_v38, %v4167_v54 }
 0x9d8   : > { %v4276_v24 = vadd.f32 0.001143296, %v4275_v63  ;;  %v4302_v47 = vmul.f32 %v7733_v56, %v7733_v56  ;;  %v4190_v59 = vmul.f32 %v4189_v52, %v7690_v2  ;;  %v4203_v33 = vmul.f32 %v4202_v14, %v7690_v2 }
 0x9d9   : > { %v4229_v58 = vadd.f32 0.05243302, %v4228_v6  ;;  %v4238_v15 = vadd.f32 0.014752088, %v4237_v44  ;;  %v4174_v61 = vand.u32 2147483647, %v7726_v46  ;;  %v4266_v19 = vmul.f32 %v4265_v48, %v7767_v49 }
 0x9da   : > { %v4176_v45 = vand.u32 2147483648, %v7726_v46  ;;  %v4277_v16 = vmul.f32 %v4276_v24, %v7767_v49  ;;  %v4058_v31 = vsel %vm7769_vm13, %v4057_v50, %v4053_v34  ;;  %v7829_v32 = vadd.f32 1.0, %v4203_v33 }
 0x9db   : > { %v4239_v9 = vmul.f32 %v4238_v15, %v7695_v7  ;;  %v7832_v60 = vmin.f32 %v4302_v47, 16.0  ;;  %v4093_v57 = vsel %vm7825_vm9, %v7712_v28, %v4089_v18  ;;  %v4169_v50 = vadd.f32 %v7763_v38, %v4168_v20 }
 0x9dc   : > { %vm4171_vm3 = vweird.f32 %v7763_v38  ;;  %v4278_v27 = vadd.f32 0.014752088, %v4277_v16  ;;  %v4133_v25 = vsel %vm7841_vm1, %v7724_v22, %v4129_v5  ;;  %v4191_v54 = vadd.f32 0.18741608, %v4190_v59 }
 0x9dd   : > { %5863 = vrcp.f32 %v7829_v32  ;;  %v4230_v28 = vmul.f32 %v4229_v58, %v7695_v7  ;;  %vm4170_vm10 = vweird.f32 %v7726_v46  ;;  %v4177_v29 = vor.u32 1.1754944e-38, %v4176_v45 }
 0x9de   : > { %v4240_v52 = vadd.f32 0.112945676, %v4239_v9  ;;  %v4267_v43 = vadd.f32 0.0036580483, %v4266_v19  ;;  %v4059_v6 = vmul.f32 %v4058_v31, %v7741_v42  ;;  %v4098_v0 = vsel %vm7792_vm6, %v4097_v12, %v4093_v57  ;;  %vm7856_vm11 = vmor %vm4170_vm10, %vm4171_vm3 }
 0x9df   : > { %v4279_v22 = vmul.f32 %v4278_v27, %v7767_v49  ;;  %v4304_v55 = vmul.f32 2.1237322e-06, %v7832_v60  ;;  %v4138_v18 = vsel %vm7804_vm8, %v4137_v35, %v4133_v25  ;;  %v4173_v46 = vsel %vm7856_vm11, %v7763_v38, %v4169_v50 }
 0x9e0   : > { %v4241_v42 = vmul.f32 %v4240_v52, %v7695_v7  ;;  %v4315_v53 = vmul.f32 3.8918573e-05, %v7832_v60  ;;  %v4192_v12 = vmul.f32 %v4191_v54, %v7690_v2  ;;  %v4231_v63 = vadd.f32 0.18741608, %v4230_v28 }
 0x9e1   : > { %v4280_v34 = vadd.f32 0.112945676, %v4279_v22  ;;  %v4305_v14 = vadd.f32 0.00028619796, %v4304_v55  ;;  %vm4175_vm12 = vcmp.eq.f32.partialorder %v4174_v61, 8.507059e+37  ;;  %v4268_v48 = vmul.f32 %v4267_v43, %v7767_v49 }
 0x9e2   : > { %v4242_v44 = vadd.f32 0.4994258, %v4241_v42  ;;  %v4316_v5 = vadd.f32 0.001143296, %v4315_v53  ;;  %v5681_v35 = vclamps-f32 %v4059_v6, 1.0  ;;  %v4099_v20 = vmul.f32 %v4098_v0, %v7749_v11 }
 0x9e3   : > { %v5864_v26 = vpop.eup %5863  ;;  %v4178_v24 = vsel %vm4175_vm12, %v4177_v29, %v4173_v46  ;;  %v4281_v38 = vmul.f32 %v4280_v34, %v7767_v49  ;;  %v4139_v47 = vmul.f32 %v4138_v18, %v7758_v23  ;;  %v4306_v33 = vmul.f32 %v4305_v14, %v7832_v60 }
 0x9e4   : > { %v4206_v59 = vmul.f32 %v5864_v26, %v7829_v32  ;;  %v4243_v2 = vmul.f32 %v4242_v44, %v7695_v7  ;;  %v4193_v58 = vadd.f32 1.1283791, %v4192_v12  ;;  %v4232_v15 = vmul.f32 %v4231_v63, %v7695_v7 }
 0x9e5   : > { %v4282_v61 = vadd.f32 0.4994258, %v4281_v38  ;;  %v4317_v45 = vmul.f32 %v4316_v5, %v7832_v60  ;;  %v4179_v19 = vmul.f32 %v4178_v24, %v7798_v10  ;;  %v4269_v31 = vadd.f32 0.05243302, %v4268_v48  ;;  %v5689_v5 = vld [vmem:[%s8316_s11 + $0x8] sm:$0xff]  ;;  %v5715_v24 = vld [vmem:[%s8316_s11 + $0x18] sm:$0xff] }
 0x9e6   : > { %v4207_v11 = vsub.f32 1.0, %v4206_v59  ;;  %v7880_v16 = vadd.f32 1.0, %v4243_v2  ;;  %v4214_v23 = vand.u32 2147483647, %v7829_v32  ;;  %v4216_v21 = vand.u32 2147483648, %v7829_v32  ;;  %4424 = vmatpush.msra.mxu3 %v5689_v5  ;;  %v4375_v38 = vld [vmem:[#allocation2 + $0x1] sm:$0xff]  ;;  %4647 = vmatpush.msrb.mxu2 %v5715_v24 }
 0x9e7   : > { %v4283_v9 = vmul.f32 %v4282_v61, %v7767_v49  ;;  %v4318_v57 = vadd.f32 0.014752088, %v4317_v45  ;;  %vm4211_vm13 = vweird.f32 %v5864_v26  ;;  %v4307_v7 = vadd.f32 0.0036580483, %v4306_v33  ;;  %v4515_v61 = vld [vmem:[#allocation2 + $0x2] sm:$0xff]  ;;  %5690 = vmatmul.msk.f32.vlgmr.msra.gmra.mxu3 %vm522_vm0, %v4375_v38 }
 0x9e8   : > { %v4208_v41 = vmul.f32 %v5864_v26, %v4207_v11  ;;  %5865 = vrcp.f32 %v7880_v16  ;;  %v5682_v50 = vclamps-f32 %v4099_v20, 1.0  ;;  %v5683_v27 = vclamps-f32 %v4139_v47, 1.0 }
 0x9e9   : > { %v4194_v10 = vmul.f32 %v4193_v58, %v7656_v37  ;;  %v7887_v25 = vadd.f32 1.0, %v4283_v9  ;;  %vm4210_vm14 = vweird.f32 %v7829_v32  ;;  %v4270_v28 = vmul.f32 %v4269_v31, %v7767_v49 }
 0x9ea   : > { %v4209_v54 = vadd.f32 %v5864_v26, %v4208_v41  ;;  %v4319_v29 = vmul.f32 %v4318_v57, %v7832_v60  ;;  %v5684_v52 = vclamps-f32 %v4179_v19, 1.0  ;;  %vm4212_vm15 = vmor %vm4210_vm14, %vm4211_vm13  ;;  %v4217_v43 = vor.u32 1.1754944e-38, %v4216_v21 }
 0x9eb   : > { %v4233_v6 = vadd.f32 1.1283791, %v4232_v15  ;;  %5867 = vrcp.f32 %v7887_v25  ;;  %vm4215_vm2 = vcmp.eq.f32.partialorder %v4214_v23, 8.507059e+37  ;;  %v4308_v4 = vmul.f32 %v4307_v7, %v7832_v60  ;;  %v4366_v15 = vld [vmem:[#allocation2] sm:$0xff] }
 0x9ec   : > { %v4213_v0 = vsel %vm4212_vm15, %v5864_v26, %v4209_v54  ;;  %v4342_v37 = vadd.f32 1.0, %v5681_v35  ;;  %v4320_v55 = vadd.f32 0.112945676, %v4319_v29  ;;  %v4343_v18 = vadd.f32 1.0, %v5682_v50 }
 0x9ed   : > { %v4218_v22 = vsel %vm4215_vm2, %v4217_v43, %v4213_v0  ;;  %v4344_v46 = vadd.f32 1.0, %v5683_v27  ;;  %v4009_v42 = vmul.f32 0.5, %v7590_v36  ;;  %v4010_v53 = vmul.f32 0.5, %v7644_v30  ;;  %v4374_v36 = vld [vmem:[%s8316_s11] sm:$0xff]  ;;  %v5706_v30 = vld [vmem:[%s8316_s11 + $0x10] sm:$0xff] }
 0x9ee   : > { %v7894_v32 = vpop.eup %5865  ;;  %v4219_v12 = vmul.f32 %v4218_v22, %v4194_v10  ;;  %v4271_v63 = vadd.f32 0.18741608, %v4270_v28  ;;  %v4234_v34 = vmul.f32 %v4233_v6, %v7663_v17  ;;  %v4321_v44 = vmul.f32 %v4320_v55, %v7832_v60  ;;  %4489 = vmatpush.msrb.mxu0 %v4374_v36  ;;  %4564 = vmatpush.msrb.mxu1 %v5706_v30 }
 0x9ef   : > { %v4246_v14 = vmul.f32 %v7894_v32, %v7880_v16  ;;  %v4345_v48 = vadd.f32 1.0, %v5684_v52  ;;  %v4309_v17 = vadd.f32 0.05243302, %v4308_v4  ;;  %v4350_v35 = vmul.f32 %v4342_v37, %v7719_v8  ;;  %v5724_v8 = vld [vmem:[%s8316_s11 + $0x20] sm:$0xff]  ;;  %5698 = vmatmul.msk.f32.vlgmr.msrb.gmra.mxu0 %vm522_vm0, %v4366_v15  ;;  %5707 = vmatmul.msk.f32.vlgmr.msrb.gmra.mxu1 %vm522_vm0, %v4515_v61 }
 0x9f0   : > { %v5685_v26 = vclamps-f32 %v4219_v12, 1.0  ;;  %v4351_v20 = vmul.f32 %v4343_v18, %v7722_v51  ;;  %v4322_v2 = vadd.f32 0.4994258, %v4321_v44  ;;  %v4352_v33 = vmul.f32 %v4344_v46, %v7730_v62  ;;  %4730 = vmatpush.msrb.mxu3 %v5724_v8  ;;  %v5751_v8 = vld [vmem:[%s8316_s11 + $0x38] sm:$0xff] }
 0x9f1   : > { %v5868_v47 = vpop.eup %5867  ;;  %v4247_v59 = vsub.f32 1.0, %v4246_v14  ;;  %v4353_v58 = vmul.f32 %v4345_v48, %v4009_v42  ;;  %v4256_v51 = vand.u32 2147483648, %v7880_v16  ;;  %v4272_v45 = vmul.f32 %v4271_v63, %v7767_v49  ;;  %4358 = vst.msk [vmem:[#allocation2 + $0x11] sm:$0xff] %vm522_vm0, %v4350_v35  ;;  %4979 = vmatpush.msra.mxu2 %v5751_v8 }
 0x9f2   : > { %v4286_v19 = vmul.f32 %v5868_v47, %v7887_v25  ;;  %v4346_v11 = vadd.f32 1.0, %v5685_v26  ;;  %vm4251_vm4 = vweird.f32 %v7894_v32  ;;  %v4254_v31 = vand.u32 2147483647, %v7880_v16  ;;  %4359 = vst.msk [vmem:[#allocation2 + $0x21] sm:$0xff] %vm522_vm0, %v4351_v20 }
 0x9f3   : > { %v4248_v62 = vmul.f32 %v7894_v32, %v4247_v59  ;;  %v4323_v23 = vmul.f32 %v4322_v2, %v7832_v60  ;;  %vm4250_vm5 = vweird.f32 %v7880_v16  ;;  %v4296_v21 = vand.u32 2147483648, %v7887_v25  ;;  %4360 = vst.msk [vmem:[#allocation2 + $0x31] sm:$0xff] %vm522_vm0, %v4352_v33 }
 0x9f4   : > { %v4287_v49 = vsub.f32 1.0, %v4286_v19  ;;  %v4354_v9 = vmul.f32 %v4346_v11, %v4010_v53  ;;  %vm4291_vm6 = vweird.f32 %v5868_v47  ;;  %v4310_v41 = vmul.f32 %v4309_v17, %v7832_v60  ;;  %4361 = vst.msk [vmem:[#allocation2 + $0x41] sm:$0xff] %vm522_vm0, %v4353_v58  ;;  %vm4252_vm7 = vmor %vm4250_vm5, %vm4251_vm4 }
 0x9f5   : > { %v4249_v57 = vadd.f32 %v7894_v32, %v4248_v62  ;;  %v7937_v7 = vadd.f32 1.0, %v4323_v23  ;;  %v4257_v50 = vor.u32 1.1754944e-38, %v4256_v51  ;;  %v4273_v16 = vadd.f32 1.1283791, %v4272_v45  ;;  %v5733_v51 = vld [vmem:[%s8316_s11 + $0x28] sm:$0xff]  ;;  %v5742_v45 = vld [vmem:[%s8316_s11 + $0x30] sm:$0xff] }
 0x9f6   : > { %v4288_v27 = vmul.f32 %v5868_v47, %v4287_v49  ;;  %v4294_v10 = vand.u32 2147483647, %v7887_v25  ;;  %4362 = vst.msk [vmem:[#allocation2 + $0x51] sm:$0xff] %vm522_vm0, %v4354_v9  ;;  %vm4255_vm8 = vcmp.eq.f32.partialorder %v4254_v31, 8.507059e+37  ;;  %vm4290_vm9 = vweird.f32 %v7887_v25  ;;  %4813 = vmatpush.msra.mxu0 %v5733_v51  ;;  %4896 = vmatpush.msra.mxu1 %v5742_v45  ;;  %v5760_v31 = vld [vmem:[%s8316_s11 + $0x40] sm:$0xff]  ;;  %v5020_v45 = vld [vmem:[#allocation2 + $0x92] sm:$0xff] }
 0x9f7   : > { %v4253_v54 = vsel %vm4252_vm7, %v7894_v32, %v4249_v57  ;;  %5869 = vrcp.f32 %v7937_v7  ;;  %vm4292_vm1 = vmor %vm4290_vm9, %vm4291_vm6  ;;  %v4297_v43 = vor.u32 1.1754944e-38, %v4296_v21  ;;  %v4311_v6 = vadd.f32 0.18741608, %v4310_v41  ;;  %5062 = vmatpush.msra.mxu3 %v5760_v31 }
 0x9f8   : > { %v4258_v28 = vsel %vm4255_vm8, %v4257_v50, %v4253_v54  ;;  %v4289_v29 = vadd.f32 %v5868_v47, %v4288_v27  ;;  %v7948_v0 = vld [vmem:[#allocation2 + $0x11] sm:$0xff]  ;;  %v4274_v22 = vmul.f32 %v4273_v16, %v7707_v3  ;;  %vm4295_vm3 = vcmp.eq.f32.partialorder %v4294_v10, 8.507059e+37 }
 0x9f9   : > { %v4259_v52 = vmul.f32 %v4258_v28, %v4234_v34  ;;  %v4367_v4 = vld [vmem:[#allocation2 + $0x10] sm:$0xff]  ;;  %5691 = vmatmul.msk.f32.gmra.mxu3 %vm522_vm0, %v7948_v0  ;;  %v4011_v42 = vmul.f32 0.5, %v7649_v40  ;;  %v4312_v3 = vmul.f32 %v4311_v6, %v7832_v60  ;;  %v4012_v14 = vmul.f32 0.5, %v7693_v1  ;;  %v7965_v30 = vld [vmem:[#allocation2 + $0x21] sm:$0xff] }
 0x9fa   : > { %v7950_v37 = vld [vmem:[#allocation2 + $0x12] sm:$0xff]  ;;  %v4293_v55 = vsel %vm4292_vm1, %v5868_v47, %v4289_v29  ;;  %5699 = vmatmul.msk.f32.gmra.mxu0 %vm522_vm0, %v4367_v4  ;;  %5716 = vmatmul.msk.f32.vlgmr.msrb.gmra.mxu2 %vm522_vm0, %v4367_v4  ;;  %v4336_v36 = vand.u32 2147483648, %v7937_v7  ;;  %v7967_v26 = vld [vmem:[#allocation2 + $0x20] sm:$0xff]  ;;  %v4334_v60 = vand.u32 2147483647, %v7937_v7  ;;  %vm4330_vm11 = vweird.f32 %v7937_v7 }
 0x9fb   : > { %v5686_v25 = vclamps-f32 %v4259_v52, 1.0  ;;  %v4298_v18 = vsel %vm4295_vm3, %v4297_v43, %v4293_v55  ;;  %5708 = vmatmul.msk.f32.gmra.mxu1 %vm522_vm0, %v7950_v37  ;;  %v4313_v5 = vadd.f32 1.1283791, %v4312_v3  ;;  %v7974_v1 = vld [vmem:[#allocation2 + $0x22] sm:$0xff]  ;;  %v4378_v2 = vld [vmem:[#allocation2 + $0x31] sm:$0xff] }
 0x9fc   : > { %v4299_v46 = vmul.f32 %v4298_v18, %v4274_v22  ;;  %v4337_v20 = vor.u32 1.1754944e-38, %v4336_v36  ;;  %vm4335_vm13 = vcmp.eq.f32.partialorder %v4334_v60, 8.507059e+37  ;;  %v4369_v33 = vld [vmem:[#allocation2 + $0x30] sm:$0xff]  ;;  %v4370_v11 = vld [vmem:[#allocation2 + $0x40] sm:$0xff] }
 0x9fd   : > { %v5870_v32 = vpop.eup %5869  ;;  %v4347_v53 = vadd.f32 1.0, %v5686_v25  ;;  %v4314_v24 = vmul.f32 %v4313_v5, %v7733_v56  ;;  %v7985_v15 = vld [vmem:[#allocation2 + $0x32] sm:$0xff]  ;;  %v4013_v56 = vmul.f32 0.5, %v7701_v39  ;;  %v4379_v39 = vld [vmem:[#allocation2 + $0x41] sm:$0xff] }
 0x9fe   : > { %v5687_v12 = vclamps-f32 %v4299_v46, 1.0  ;;  %v4326_v63 = vmul.f32 %v5870_v32, %v7937_v7  ;;  %vm4331_vm10 = vweird.f32 %v5870_v32  ;;  %v8003_v62 = vld [vmem:[#allocation2 + $0x42] sm:$0xff]  ;;  %v4380_v23 = vld [vmem:[#allocation2 + $0x51] sm:$0xff] }
 0x9ff   : > { %v4355_v34 = vmul.f32 %v4347_v53, %v4011_v42  ;;  %vm4332_vm12 = vmor %vm4330_vm11, %vm4331_vm10  ;;  %v4371_v49 = vld [vmem:[#allocation2 + $0x50] sm:$0xff] }
 0xa00   : > { %v4327_v44 = vsub.f32 1.0, %v4326_v63  ;;  %v4348_v48 = vadd.f32 1.0, %v5687_v12  ;;  %v8013_v21 = vld [vmem:[#allocation2 + $0x52] sm:$0xff] }
 0xa01   : > { %4363 = vst.msk [vmem:[#allocation2 + $0x61] sm:$0xff] %vm522_vm0, %v4355_v34  ;;  %5692 = vmatmul.msk.f32.gmra.mxu3 %vm522_vm0, %v7965_v30  ;;  %v4854_v10 = vld [vmem:[#allocation2 + $0x90] sm:$0xff] }
 0xa02   : > { %v4328_v40 = vmul.f32 %v5870_v32, %v4327_v44  ;;  %v4356_v17 = vmul.f32 %v4348_v48, %v4012_v14  ;;  %5700 = vmatmul.msk.f32.gmra.mxu0 %vm522_vm0, %v7967_v26  ;;  %5717 = vmatmul.msk.f32.gmra.mxu2 %vm522_vm0, %v7967_v26  ;;  %v4937_v43 = vld [vmem:[#allocation2 + $0x91] sm:$0xff] }
 0xa03   : > { %5709 = vmatmul.msk.f32.gmra.mxu1 %vm522_vm0, %v7974_v1 }
 0xa04   : > { %v4329_v35 = vadd.f32 %v5870_v32, %v4328_v40  ;;  %4364 = vst.msk [vmem:[#allocation2 + $0x71] sm:$0xff] %vm522_vm0, %v4356_v17 }
 0xa06   : > { %v4333_v38 = vsel %vm4332_vm12, %v5870_v32, %v4329_v35 }
 0xa07   : > { %v4338_v47 = vsel %vm4335_vm13, %v4337_v20, %v4333_v38 }
 0xa08   : > { %v4339_v59 = vmul.f32 %v4338_v47, %v4314_v24  ;;  %v4381_v9 = vld [vmem:[#allocation2 + $0x61] sm:$0xff] }
 0xa09   : > { %5693 = vmatmul.msk.f32.gmra.mxu3 %vm522_vm0, %v4378_v2  ;;  %v4372_v57 = vld [vmem:[#allocation2 + $0x60] sm:$0xff] }
 0xa0a   : > { %v5688_v58 = vclamps-f32 %v4339_v59, 1.0  ;;  %5701 = vmatmul.msk.f32.gmra.mxu0 %vm522_vm0, %v4369_v33  ;;  %5718 = vmatmul.msk.f32.gmra.mxu2 %vm522_vm0, %v4369_v33  ;;  %v8020_v41 = vld [vmem:[#allocation2 + $0x62] sm:$0xff] }
 0xa0b   : > { %5710 = vmatmul.msk.f32.gmra.mxu1 %vm522_vm0, %v7985_v15  ;;  %v4382_v7 = vld [vmem:[#allocation2 + $0x71] sm:$0xff] }
 0xa0c   : > { %v4349_v61 = vadd.f32 1.0, %v5688_v58  ;;  %v4373_v50 = vld [vmem:[#allocation2 + $0x70] sm:$0xff] }
 0xa0d   : > { %v8027_v16 = vld [vmem:[#allocation2 + $0x72] sm:$0xff] }
 0xa0e   : > { %v4357_v19 = vmul.f32 %v4349_v61, %v4013_v56 }
 0xa10   : > { %4365 = vst.msk [vmem:[#allocation2 + $0x81] sm:$0xff] %vm522_vm0, %v4357_v19 }
 0xa11   : > { %5694 = vmatmul.msk.f32.gmra.mxu3 %vm522_vm0, %v4379_v39 }
 0xa12   : > { %5702 = vmatmul.msk.f32.gmra.mxu0 %vm522_vm0, %v4370_v11  ;;  %5719 = vmatmul.msk.f32.gmra.mxu2 %vm522_vm0, %v4370_v11 }
 0xa13   : > { %5711 = vmatmul.msk.f32.gmra.mxu1 %vm522_vm0, %v8003_v62 }
 0xa17   : > { %v4605_v27 = vld [vmem:[#allocation2 + $0x80] sm:$0xff] }
 0xa18   : > { %v4688_v54 = vld [vmem:[#allocation2 + $0x81] sm:$0xff] }
 0xa19   : > { %5695 = vmatmul.msk.f32.gmra.mxu3 %vm522_vm0, %v4380_v23  ;;  %v4771_v28 = vld [vmem:[#allocation2 + $0x82] sm:$0xff] }
 0xa1a   : > { %5703 = vmatmul.msk.f32.gmra.mxu0 %vm522_vm0, %v4371_v49  ;;  %5720 = vmatmul.msk.f32.gmra.mxu2 %vm522_vm0, %v4371_v49 }
 0xa1b   : > { %5712 = vmatmul.msk.f32.gmra.mxu1 %vm522_vm0, %v8013_v21 }
 0xa21   : > { %5696 = vmatmul.msk.f32.gmra.mxu3 %vm522_vm0, %v4381_v9 }
 0xa22   : > { %5704 = vmatmul.msk.f32.gmra.mxu0 %vm522_vm0, %v4372_v57  ;;  %5721 = vmatmul.msk.f32.gmra.mxu2 %vm522_vm0, %v4372_v57 }
 0xa23   : > { %5713 = vmatmul.msk.f32.gmra.mxu1 %vm522_vm0, %v8020_v41 }
 0xa29   : > { %5697 = vmatmul.msk.f32.gmra.mxu3 %vm522_vm0, %v4382_v7 }
 0xa2a   : > { %5705 = vmatmul.msk.f32.gmra.mxu0 %vm522_vm0, %v4373_v50  ;;  %5722 = vmatmul.msk.f32.gmra.mxu2 %vm522_vm0, %v4373_v50 }
 0xa2b   : > { %5714 = vmatmul.msk.f32.gmra.mxu1 %vm522_vm0, %v8027_v16 }
 0xa31   : > { %5725 = vmatmul.msk.f32.vlgmr.msrb.gmra.mxu3 %vm522_vm0, %v7948_v0 }
 0xa32   : > { %5734 = vmatmul.msk.f32.vlgmr.msra.gmra.mxu0 %vm522_vm0, %v7950_v37  ;;  %5723 = vmatmul.msk.f32.gmra.mxu2 %vm522_vm0, %v4605_v27 }
 0xa33   : > { %5743 = vmatmul.msk.f32.vlgmr.msra.gmra.mxu1 %vm522_vm0, %v7967_v26 }
 0xa39   : > { %5726 = vmatmul.msk.f32.gmra.mxu3 %vm522_vm0, %v7965_v30 }
 0xa3a   : > { %5735 = vmatmul.msk.f32.gmra.mxu0 %vm522_vm0, %v7974_v1  ;;  %5752 = vmatmul.msk.f32.vlgmr.msra.gmra.mxu2 %vm522_vm0, %v7965_v30 }
 0xa3b   : > { %5744 = vmatmul.msk.f32.gmra.mxu1 %vm522_vm0, %v4369_v33 }
 0xa41   : > { %5727 = vmatmul.msk.f32.gmra.mxu3 %vm522_vm0, %v4378_v2 }
 0xa42   : > { %5736 = vmatmul.msk.f32.gmra.mxu0 %vm522_vm0, %v7985_v15  ;;  %5753 = vmatmul.msk.f32.gmra.mxu2 %vm522_vm0, %v4378_v2 }
 0xa43   : > { %5745 = vmatmul.msk.f32.gmra.mxu1 %vm522_vm0, %v4370_v11 }
 0xa49   : > { %5728 = vmatmul.msk.f32.gmra.mxu3 %vm522_vm0, %v4379_v39 }
 0xa4a   : > { %5737 = vmatmul.msk.f32.gmra.mxu0 %vm522_vm0, %v8003_v62  ;;  %5754 = vmatmul.msk.f32.gmra.mxu2 %vm522_vm0, %v4379_v39 }
 0xa4b   : > { %5746 = vmatmul.msk.f32.gmra.mxu1 %vm522_vm0, %v4371_v49 }
 0xa51   : > { %5729 = vmatmul.msk.f32.gmra.mxu3 %vm522_vm0, %v4380_v23 }
 0xa52   : > { %5738 = vmatmul.msk.f32.gmra.mxu0 %vm522_vm0, %v8013_v21  ;;  %5755 = vmatmul.msk.f32.gmra.mxu2 %vm522_vm0, %v4380_v23 }
 0xa53   : > { %5747 = vmatmul.msk.f32.gmra.mxu1 %vm522_vm0, %v4372_v57 }
 0xa59   : > { %5730 = vmatmul.msk.f32.gmra.mxu3 %vm522_vm0, %v4381_v9 }
 0xa5a   : > { %5739 = vmatmul.msk.f32.gmra.mxu0 %vm522_vm0, %v8020_v41  ;;  %5756 = vmatmul.msk.f32.gmra.mxu2 %vm522_vm0, %v4381_v9 }
 0xa5b   : > { %5748 = vmatmul.msk.f32.gmra.mxu1 %vm522_vm0, %v4373_v50 }
 0xa61   : > { %5731 = vmatmul.msk.f32.gmra.mxu3 %vm522_vm0, %v4382_v7 }
 0xa62   : > { %5740 = vmatmul.msk.f32.gmra.mxu0 %vm522_vm0, %v8027_v16  ;;  %5757 = vmatmul.msk.f32.gmra.mxu2 %vm522_vm0, %v4382_v7 }
 0xa63   : > { %5749 = vmatmul.msk.f32.gmra.mxu1 %vm522_vm0, %v4605_v27 }
 0xa69   : > { %5732 = vmatmul.msk.f32.gmra.mxu3 %vm522_vm0, %v4688_v54 }
 0xa6a   : > { %5741 = vmatmul.msk.f32.gmra.mxu0 %vm522_vm0, %v4771_v28  ;;  %5758 = vmatmul.msk.f32.gmra.mxu2 %vm522_vm0, %v4688_v54  ;;  %v4426_v6 = vpop.f32.mrf.mxu3 }
 0xa6b   : > { %5750 = vmatmul.msk.f32.gmra.mxu1 %vm522_vm0, %v4854_v10 }
 0xa6c   : > { %v4491_v29 = vpop.f32.mrf.mxu0  ;;  %v4566_v52 = vpop.f32.mrf.mxu1 }
 0xa6d   : > { %v4492_v0 = vadd.f32 %v4491_v29, %v4426_v6 }
 0xa6f   : > { %v4590_v22 = vadd.f32 %v4566_v52, %v4492_v0 }
 0xa71   : > { %5761 = vmatmul.msk.f32.vlgmr.msra.gmra.mxu3 %vm522_vm0, %v7974_v1 }
 0xa72   : > { %5759 = vmatmul.msk.f32.gmra.mxu2 %vm522_vm0, %v4937_v43 }
 0xa77   : > { %v4494_v4 = vpop.f32.mrf.mxu0 }
 0xa78   : > { %v4569_v37 = vpop.f32.mrf.mxu1 }
 0xa79   : > { %5762 = vmatmul.msk.f32.gmra.mxu3 %vm522_vm0, %v7985_v15 }
 0xa7c   : > { %v4429_v55 = vpop.f32.mrf.mxu3 }
 0xa7d   : > { %v4495_v25 = vadd.f32 %v4494_v4, %v4429_v55  ;;  %v4649_v18 = vpop.f32.mrf.mxu2 }
 0xa7e   : > { %v4673_v46 = vadd.f32 %v4649_v18, %v4590_v22 }
 0xa7f   : > { %v4497_v32 = vpop.f32.mrf.mxu0  ;;  %v4591_v42 = vadd.f32 %v4569_v37, %v4495_v25 }
 0xa80   : > { %v4572_v3 = vpop.f32.mrf.mxu1 }
 0xa81   : > { %5763 = vmatmul.msk.f32.gmra.mxu3 %vm522_vm0, %v8003_v62 }
 0xa84   : > { %v4432_v53 = vpop.f32.mrf.mxu3 }
 0xa85   : > { %v4498_v12 = vadd.f32 %v4497_v32, %v4432_v53  ;;  %v4652_v63 = vpop.f32.mrf.mxu2 }
 0xa86   : > { %v4674_v34 = vadd.f32 %v4652_v63, %v4591_v42 }
 0xa87   : > { %v4592_v14 = vadd.f32 %v4572_v3, %v4498_v12  ;;  %v4500_v44 = vpop.f32.mrf.mxu0 }
 0xa88   : > { %v4575_v48 = vpop.f32.mrf.mxu1 }
 0xa89   : > { %5764 = vmatmul.msk.f32.gmra.mxu3 %vm522_vm0, %v8013_v21 }
 0xa8c   : > { %v4435_v5 = vpop.f32.mrf.mxu3 }
 0xa8d   : > { %v4501_v36 = vadd.f32 %v4500_v44, %v4435_v5  ;;  %v4655_v30 = vpop.f32.mrf.mxu2 }
 0xa8e   : > { %v4675_v26 = vadd.f32 %v4655_v30, %v4592_v14 }
 0xa8f   : > { %v4593_v40 = vadd.f32 %v4575_v48, %v4501_v36  ;;  %v4503_v60 = vpop.f32.mrf.mxu0 }
 0xa90   : > { %v4578_v17 = vpop.f32.mrf.mxu1 }
 0xa91   : > { %5765 = vmatmul.msk.f32.gmra.mxu3 %vm522_vm0, %v8020_v41 }
 0xa94   : > { %v4438_v1 = vpop.f32.mrf.mxu3 }
 0xa95   : > { %v4504_v35 = vadd.f32 %v4503_v60, %v4438_v1  ;;  %v4658_v20 = vpop.f32.mrf.mxu2 }
 0xa96   : > { %v4676_v24 = vadd.f32 %v4658_v20, %v4593_v40 }
 0xa97   : > { %v4594_v38 = vadd.f32 %v4578_v17, %v4504_v35  ;;  %v4506_v47 = vpop.f32.mrf.mxu0 }
 0xa98   : > { %v4581_v58 = vpop.f32.mrf.mxu1 }
 0xa99   : > { %5766 = vmatmul.msk.f32.gmra.mxu3 %vm522_vm0, %v8027_v16 }
 0xa9c   : > { %v4441_v59 = vpop.f32.mrf.mxu3 }
 0xa9d   : > { %v4507_v2 = vadd.f32 %v4506_v47, %v4441_v59  ;;  %v4661_v33 = vpop.f32.mrf.mxu2 }
 0xa9e   : > { %v4677_v15 = vadd.f32 %v4661_v33, %v4594_v38 }
 0xa9f   : > { %v4595_v56 = vadd.f32 %v4581_v58, %v4507_v2  ;;  %v4509_v21 = vpop.f32.mrf.mxu0 }
 0xaa0   : > { %v4584_v57 = vpop.f32.mrf.mxu1 }
 0xaa1   : > { %5767 = vmatmul.msk.f32.gmra.mxu3 %vm522_vm0, %v4771_v28 }
 0xaa4   : > { %v4444_v61 = vpop.f32.mrf.mxu3 }
 0xaa5   : > { %v4664_v8 = vpop.f32.mrf.mxu2  ;;  %v4510_v36 = vadd.f32 %v4509_v21, %v4444_v61 }
 0xaa6   : > { %v4678_v51 = vadd.f32 %v4664_v8, %v4595_v56 }
 0xaa7   : > { %v4512_v50 = vpop.f32.mrf.mxu0  ;;  %v4596_v1 = vadd.f32 %v4584_v57, %v4510_v36 }
 0xaa8   : > { %v4587_v10 = vpop.f32.mrf.mxu1 }
 0xaa9   : > { %5768 = vmatmul.msk.f32.gmra.mxu3 %vm522_vm0, %v5020_v45 }
 0xaac   : > { %v4447_v19 = vpop.f32.mrf.mxu3 }
 0xaad   : > { %v4667_v7 = vpop.f32.mrf.mxu2  ;;  %v4513_v20 = vadd.f32 %v4512_v50, %v4447_v19 }
 0xaae   : > { %v4679_v38 = vadd.f32 %v4667_v7, %v4596_v1 }
 0xaaf   : > { %v4815_v52 = vpop.f32.mrf.mxu0  ;;  %v4597_v8 = vadd.f32 %v4587_v10, %v4513_v20 }
 0xab0   : > { %v4898_v43 = vpop.f32.mrf.mxu1 }
 0xab4   : > { %v4732_v39 = vpop.f32.mrf.mxu3 }
 0xab5   : > { %v4756_v11 = vadd.f32 %v4732_v39, %v4673_v46  ;;  %v4670_v54 = vpop.f32.mrf.mxu2 }
 0xab7   : > { %v4818_v4 = vpop.f32.mrf.mxu0  ;;  %v4839_v17 = vadd.f32 %v4815_v52, %v4756_v11  ;;  %v4680_v11 = vadd.f32 %v4670_v54, %v4597_v8  ;;  %v5244_v8 = vld [vmem:[%s8319_s14 + $0xe0] sm:$0xff] }
 0xab8   : > { %v4901_v37 = vpop.f32.mrf.mxu1 }
 0xab9   : > { %v4922_v59 = vadd.f32 %v4898_v43, %v4839_v17 }
 0xabc   : > { %v4735_v62 = vpop.f32.mrf.mxu3 }
 0xabd   : > { %v4757_v31 = vadd.f32 %v4735_v62, %v4674_v34  ;;  %v4981_v6 = vpop.f32.mrf.mxu2 }
 0xabe   : > { %v5005_v39 = vadd.f32 %v4981_v6, %v4922_v59  ;;  %v5247_v59 = vld [vmem:[%s8319_s14 + $0xf8] sm:$0xff] }
 0xabf   : > { %v4821_v25 = vpop.f32.mrf.mxu0  ;;  %v4840_v60 = vadd.f32 %v4818_v4, %v4757_v31  ;;  %5274 = vmatpush.msrb.mxu1 %v5247_v59 }
 0xac0   : > { %v4904_v46 = vpop.f32.mrf.mxu1 }
 0xac1   : > { %v4923_v47 = vadd.f32 %v4901_v37, %v4840_v60 }
 0xac4   : > { %v4738_v23 = vpop.f32.mrf.mxu3 }
 0xac5   : > { %v4758_v49 = vadd.f32 %v4738_v23, %v4675_v26  ;;  %v4984_v22 = vpop.f32.mrf.mxu2 }
 0xac6   : > { %v5006_v33 = vadd.f32 %v4984_v22, %v4923_v47  ;;  %v5231_v47 = vld [vmem:[%s8319_s14 + $0x78] sm:$0xff] }
 0xac7   : > { %v4824_v42 = vpop.f32.mrf.mxu0  ;;  %v4841_v35 = vadd.f32 %v4821_v25, %v4758_v49  ;;  %5254 = vmatpush.msrb.mxu0 %v5231_v47 }
 0xac8   : > { %v4907_v53 = vpop.f32.mrf.mxu1 }
 0xac9   : > { %v4924_v58 = vadd.f32 %v4904_v46, %v4841_v35 }
 0xacc   : > { %v4741_v9 = vpop.f32.mrf.mxu3 }
 0xacd   : > { %v4759_v41 = vadd.f32 %v4741_v9, %v4676_v24  ;;  %v4987_v32 = vpop.f32.mrf.mxu2 }
 0xace   : > { %v5007_v62 = vadd.f32 %v4987_v32, %v4924_v58  ;;  %v5229_v58 = vld [vmem:[%s8319_s14 + $0x68] sm:$0xff] }
 0xacf   : > { %v4827_v34 = vpop.f32.mrf.mxu0  ;;  %v4842_v24 = vadd.f32 %v4824_v42, %v4759_v41 }
 0xad0   : > { %v4910_v14 = vpop.f32.mrf.mxu1 }
 0xad4   : > { %v4744_v16 = vpop.f32.mrf.mxu3 }
 0xad5   : > { %v4760_v27 = vadd.f32 %v4744_v16, %v4677_v15  ;;  %v4990_v12 = vpop.f32.mrf.mxu2 }
 0xad7   : > { %v4830_v5 = vpop.f32.mrf.mxu0  ;;  %v4843_v15 = vadd.f32 %v4827_v34, %v4760_v27 }
 0xad8   : > { %v4913_v30 = vpop.f32.mrf.mxu1 }
 0xad9   : > { %v4926_v21 = vadd.f32 %v4910_v14, %v4843_v15  ;;  %v5245_v15 = vld [vmem:[%s8319_s14 + $0xe8] sm:$0xff] }
 0xadc   : > { %v4747_v28 = vpop.f32.mrf.mxu3 }
 0xadd   : > { %v4761_v29 = vadd.f32 %v4747_v28, %v4678_v51  ;;  %v4993_v44 = vpop.f32.mrf.mxu2  ;;  %v4925_v51 = vadd.f32 %v4907_v53, %v4842_v24 }
 0xade   : > { %v5009_v50 = vadd.f32 %v4993_v44, %v4926_v21  ;;  %v5222_v21 = vld [vmem:[%s8319_s14 + $0x30] sm:$0xff] }
 0xadf   : > { %v4833_v2 = vpop.f32.mrf.mxu0  ;;  %v4844_v61 = vadd.f32 %v4830_v5, %v4761_v29  ;;  %v5008_v23 = vadd.f32 %v4990_v12, %v4925_v51  ;;  %v5227_v51 = vld [vmem:[%s8319_s14 + $0x58] sm:$0xff] }
 0xae0   : > { %v4916_v19 = vpop.f32.mrf.mxu1 }
 0xae1   : > { %v4927_v7 = vadd.f32 %v4913_v30, %v4844_v61  ;;  %v5243_v61 = vld [vmem:[%s8319_s14 + $0xd8] sm:$0xff] }
 0xae4   : > { %v4750_v0 = vpop.f32.mrf.mxu3 }
 0xae5   : > { %v4996_v26 = vpop.f32.mrf.mxu2  ;;  %v4762_v56 = vadd.f32 %v4750_v0, %v4679_v38 }
 0xae6   : > { %v5010_v28 = vadd.f32 %v4996_v26, %v4927_v7  ;;  %v5221_v7 = vld [vmem:[%s8319_s14 + $0x28] sm:$0xff] }
 0xae7   : > { %v4845_v9 = vadd.f32 %v4833_v2, %v4762_v56  ;;  %v4836_v6 = vpop.f32.mrf.mxu0  ;;  %v5230_v2 = vld [vmem:[%s8319_s14 + $0x70] sm:$0xff]  ;;  %v5228_v56 = vld [vmem:[%s8319_s14 + $0x60] sm:$0xff] }
 0xae8   : > { %5255 = vmatpush.msrb.mxu0 %v5230_v2 }
 0xae9   : > { %v4928_v29 = vadd.f32 %v4916_v19, %v4845_v9  ;;  %v5223_v19 = vld [vmem:[%s8319_s14 + $0x38] sm:$0xff] }
 0xaea   : > { %5256 = vmatpush.msrb.mxu0 %v5229_v58  ;;  %v5239_v9 = vld [vmem:[%s8319_s14 + $0xb8] sm:$0xff] }
 0xaec   : > { %v4753_v55 = vpop.f32.mrf.mxu3  ;;  %5257 = vmatpush.msrb.mxu0 %v5228_v56 }
 0xaed   : > { %v4999_v49 = vpop.f32.mrf.mxu2  ;;  %v4763_v16 = vadd.f32 %v4753_v55, %v4680_v11  ;;  %v5241_v11 = vld [vmem:[%s8319_s14 + $0xc8] sm:$0xff] }
 0xaee   : > { %v5011_v37 = vadd.f32 %v4999_v49, %v4928_v29  ;;  %5258 = vmatpush.msrb.mxu0 %v5227_v51  ;;  %v5240_v49 = vld [vmem:[%s8319_s14 + $0xc0] sm:$0xff] }
 0xaef   : > { %v4846_v22 = vadd.f32 %v4836_v6, %v4763_v16  ;;  %v5220_v16 = vld [vmem:[%s8319_s14 + $0x20] sm:$0xff] }
 0xaf0   : > { %v5236_v29 = vld [vmem:[%s8319_s14 + $0xa0] sm:$0xff] }
 0xaf1   : > { %v5215_v6 = vld [vmem:[%s5214_s26] ss:$2 sm:$0x3] }
 0xaf4   : > { %v5064_v18 = vpop.f32.mrf.mxu3 }
 0xaf5   : > { %v8092_v57 = vadd.f32 %v5064_v18, %v5005_v39  ;;  %v4919_v18 = vpop.f32.mrf.mxu1  ;;  %v5242_v39 = vld [vmem:[%s8319_s14 + $0xd0] sm:$0xff] }
 0xaf6   : > { %v4929_v12 = vadd.f32 %v4919_v18, %v4846_v22  ;;  %v5234_v22 = vld [vmem:[%s8319_s14 + $0x90] sm:$0xff]  ;;  %v5250_v18 = vperm.slane %v5215_v6, 0 }
 0xaf7   : > { %v5096_v54 = vsel %vm522_vm0, %v8092_v57, 0.0 }
 0xafc   : > { %v5067_v3 = vpop.f32.mrf.mxu3 }
 0xafd   : > { %v8090_v31 = vadd.f32 %v5067_v3, %v5006_v33  ;;  %v5002_v3 = vpop.f32.mrf.mxu2  ;;  %v5246_v33 = vld [vmem:[%s8319_s14 + $0xf0] sm:$0xff] }
 0xafe   : > { %v5012_v14 = vadd.f32 %v5002_v3, %v4929_v12  ;;  %5275 = vmatpush.msrb.mxu1 %v5246_v33  ;;  %v5233_v12 = vld [vmem:[%s8319_s14 + $0x88] sm:$0xff] }
 0xaff   : > { %v5097_v27 = vsel %vm522_vm0, %v8090_v31, 0.0 }
 0xb00   : > { %v5098_v0 = vadd.f32 %v5097_v27, %v5096_v54  ;;  %5276 = vmatpush.msrb.mxu1 %v5245_v15  ;;  %v5237_v27 = vld [vmem:[%s8319_s14 + $0xa8] sm:$0xff]  ;;  %v5218_v54 = vld [vmem:[%s8319_s14 + $0x10] sm:$0xff] }
 0xb02   : > { %5277 = vmatpush.msrb.mxu1 %v5244_v8 }
 0xb04   : > { %v5070_v63 = vpop.f32.mrf.mxu3  ;;  %5278 = vmatpush.msrb.mxu1 %v5243_v61 }
 0xb05   : > { %v8094_v41 = vadd.f32 %v5070_v63, %v5007_v62  ;;  %v5225_v62 = vld [vmem:[%s8319_s14 + $0x48] sm:$0xff] }
 0xb06   : > { %5279 = vmatpush.msrb.mxu1 %v5242_v39 }
 0xb07   : > { %v5099_v52 = vsel %vm522_vm0, %v8094_v41, 0.0 }
 0xb08   : > { %v5100_v46 = vadd.f32 %v5099_v52, %v5098_v0  ;;  %5280 = vmatpush.msrb.mxu1 %v5241_v11  ;;  %v5235_v52 = vld [vmem:[%s8319_s14 + $0x98] sm:$0xff] }
 0xb0a   : > { %5281 = vmatpush.msrb.mxu1 %v5240_v49 }
 0xb0c   : > { %v5073_v48 = vpop.f32.mrf.mxu3  ;;  %5282 = vmatpush.msrb.mxu1 %v5239_v9 }
 0xb0d   : > { %v8098_v10 = vadd.f32 %v5073_v48, %v5008_v23  ;;  %v5224_v23 = vld [vmem:[%s8319_s14 + $0x40] sm:$0xff] }
 0xb0f   : > { %v5101_v55 = vsel %vm522_vm0, %v8098_v10, 0.0 }
 0xb10   : > { %v5102_v53 = vadd.f32 %v5101_v55, %v5100_v46  ;;  %v5216_v55 = vld [vmem:[%s8319_s14] sm:$0xff] }
 0xb14   : > { %v5076_v40 = vpop.f32.mrf.mxu3 }
 0xb15   : > { %v8104_v43 = vadd.f32 %v5076_v40, %v5009_v50  ;;  %v5238_v50 = vld [vmem:[%s8319_s14 + $0xb0] sm:$0xff] }
 0xb16   : > { %5283 = vmatpush.msrb.mxu1 %v5238_v50 }
 0xb17   : > { %v5103_v32 = vsel %vm522_vm0, %v8104_v43, 0.0 }
 0xb18   : > { %v5104_v34 = vadd.f32 %v5103_v32, %v5102_v53  ;;  %5284 = vmatpush.msrb.mxu1 %v5237_v27 }
 0xb1a   : > { %5285 = vmatpush.msrb.mxu1 %v5236_v29 }
 0xb1c   : > { %v5079_v45 = vpop.f32.mrf.mxu3  ;;  %5286 = vmatpush.msrb.mxu1 %v5235_v52 }
 0xb1d   : > { %v8108_v25 = vadd.f32 %v5079_v45, %v5010_v28  ;;  %v5226_v45 = vld [vmem:[%s8319_s14 + $0x50] sm:$0xff]  ;;  %v5219_v28 = vld [vmem:[%s8319_s14 + $0x18] sm:$0xff] }
 0xb1e   : > { %5259 = vmatpush.msrb.mxu0 %v5226_v45  ;;  %5287 = vmatpush.msrb.mxu1 %v5234_v22 }
 0xb1f   : > { %v5105_v63 = vsel %vm522_vm0, %v8108_v25, 0.0 }
 0xb20   : > { %v5106_v48 = vadd.f32 %v5105_v63, %v5104_v34  ;;  %5260 = vmatpush.msrb.mxu0 %v5225_v62  ;;  %v5251_v63 = vperm.slane %v5215_v6, 1  ;;  %5288 = vmatpush.msrb.mxu1 %v5233_v12  ;;  %v5248_v62 = vld [vmem:[%s8320_s15] sm:$0x1] }
 0xb22   : > { %5261 = vmatpush.msrb.mxu0 %v5224_v23 }
 0xb24   : > { %v5082_v4 = vpop.f32.mrf.mxu3  ;;  %5262 = vmatpush.msrb.mxu0 %v5223_v19 }
 0xb25   : > { %v8112_v42 = vadd.f32 %v5082_v4, %v5011_v37  ;;  %v5217_v4 = vld [vmem:[%s8319_s14 + $0x8] sm:$0xff] }
 0xb26   : > { %5263 = vmatpush.msrb.mxu0 %v5222_v21 }
 0xb27   : > { %v5107_v44 = vsel %vm522_vm0, %v8112_v42, 0.0 }
 0xb28   : > { %v5108_v30 = vadd.f32 %v5107_v44, %v5106_v48  ;;  %5264 = vmatpush.msrb.mxu0 %v5221_v7 }
 0xb2a   : > { %5265 = vmatpush.msrb.mxu0 %v5220_v16 }
 0xb2c   : > { %v5085_v5 = vpop.f32.mrf.mxu3  ;;  %5266 = vmatpush.msrb.mxu0 %v5219_v28 }
 0xb2d   : > { %v8118_v36 = vadd.f32 %v5085_v5, %v5012_v14 }
 0xb2e   : > { %5267 = vmatpush.msrb.mxu0 %v5218_v54 }
 0xb2f   : > { %v5109_v26 = vsel %vm522_vm0, %v8118_v36, 0.0 }
 0xb30   : > { %v5110_v40 = vadd.f32 %v5109_v26, %v5108_v30  ;;  %5268 = vmatpush.msrb.mxu0 %v5217_v4 }
 0xb32   : > { %5111 = vadd.xlane.f32.xlu0 %v5110_v40  ;;  %5269 = vmatpush.msrb.mxu0 %v5216_v55 }
 0xb33   : > { %5270 = vmatmul.f32.vlgmr.msrb.gmra.mxu0 %v5250_v18 }
 0xba5   : > { %v5112_v60 = vpop.xlane.xlu0 %5111 }
 0xba6   : > { %v5113_v17 = vrot.slane %v5112_v60, 4 }
 0xba8   : > { %v5114_v1 = vadd.f32 %v5113_v17, %v5112_v60 }
 0xbaa   : > { %v5115_v35 = vrot.slane %v5114_v1, 2 }
 0xbac   : > { %v5116_v20 = vadd.f32 %v5115_v35, %v5114_v1 }
 0xbae   : > { %v5117_v24 = vrot.slane %v5116_v20, 1 }
 0xbb0   : > { %v5118_v38 = vadd.f32 %v5117_v24, %v5116_v20  ;;  %v5271_v11 = vpop.f32.mrf.mxu0 }
 0xbb1   : > { %v5272_v23 = vadd.f32 %v5271_v11, %v5248_v62 }
 0xbb2   : > { %5789 = vpush %v5118_v38 }
 0xbe3   : > { %s5790_s30 = spop %5789 }
 0xbe4   : > { %v5120_v0 = vstv %s5790_s30 }
 0xbe5   : > { %v5121_v37 = vmul.f32 %v5120_v0, %v7532_v13 }
 0xbe7   : > { %v8219_v46 = vsub.f32 %v8092_v57, %v5121_v37  ;;  %v8222_v32 = vsub.f32 %v8090_v31, %v5121_v37  ;;  %v8225_v3 = vsub.f32 %v8094_v41, %v5121_v37  ;;  %v8228_v53 = vsub.f32 %v8098_v10, %v5121_v37  ;;  %v5232_v10 = vld [vmem:[%s8319_s14 + $0x80] sm:$0xff] }
 0xbe8   : > { %v8234_v34 = vsub.f32 %v8104_v43, %v5121_v37  ;;  %v8246_v14 = vsub.f32 %v8108_v25, %v5121_v37  ;;  %5289 = vmatpush.msrb.mxu1 %v5232_v10  ;;  %v8253_v30 = vsub.f32 %v8112_v42, %v5121_v37  ;;  %v8259_v60 = vsub.f32 %v8118_v36, %v5121_v37  ;;  %v5811_v10 = vld [vmem:[%s8317_s12] ss:$0 sm:$0xff] }
 0xbe9   : > { %v5130_v31 = vmul.f32 %v8219_v46, %v8219_v46  ;;  %v5131_v57 = vmul.f32 %v8222_v32, %v8222_v32  ;;  %v5132_v41 = vmul.f32 %v8225_v3, %v8225_v3  ;;  %v5133_v43 = vmul.f32 %v8228_v53, %v8228_v53  ;;  %5290 = vmatmul.f32.vlgmr.msrb.gmra.mxu1 %v5251_v63 }
 0xbea   : > { %v5134_v26 = vmul.f32 %v8234_v34, %v8234_v34  ;;  %v5135_v17 = vmul.f32 %v8246_v14, %v8246_v14  ;;  %v5136_v42 = vmul.f32 %v8253_v30, %v8253_v30  ;;  %v5137_v38 = vmul.f32 %v8259_v60, %v8259_v60 }
 0xbeb   : > { %v5138_v44 = vsel %vm522_vm0, %v5130_v31, 0.0  ;;  %v5139_v48 = vsel %vm522_vm0, %v5131_v57, 0.0  ;;  %v5141_v40 = vsel %vm522_vm0, %v5132_v41, 0.0  ;;  %v5143_v1 = vsel %vm522_vm0, %v5133_v43, 0.0 }
 0xbec   : > { %v5140_v5 = vadd.f32 %v5139_v48, %v5138_v44  ;;  %v5145_v20 = vsel %vm522_vm0, %v5134_v26, 0.0  ;;  %v5147_v47 = vsel %vm522_vm0, %v5135_v17, 0.0  ;;  %v5149_v36 = vsel %vm522_vm0, %v5136_v42, 0.0 }
 0xbed   : > { %v5151_v33 = vsel %vm522_vm0, %v5137_v38, 0.0 }
 0xbee   : > { %v5142_v25 = vadd.f32 %v5141_v40, %v5140_v5 }
 0xbf0   : > { %v5144_v35 = vadd.f32 %v5143_v1, %v5142_v25  ;;  %v5812_v25 = vld [vmem:[%s8318_s13] ss:$0 sm:$0xff] }
 0xbf2   : > { %v5146_v24 = vadd.f32 %v5145_v20, %v5144_v35 }
 0xbf4   : > { %v5148_v59 = vadd.f32 %v5147_v47, %v5146_v24 }
 0xbf6   : > { %v5150_v2 = vadd.f32 %v5149_v36, %v5148_v59 }
 0xbf8   : > { %v5152_v58 = vadd.f32 %v5151_v33, %v5150_v2 }
 0xbfa   : > { %5153 = vadd.xlane.f32.xlu1 %v5152_v58 }
 0xc66   : > { %v5291_v19 = vpop.f32.mrf.mxu1 }
 0xc67   : > { %v5292_v49 = vadd.f32 %v5291_v19, %v5272_v23 }
 0xc69   : > { %v5771_v21 = vmul.f32 -1.442695, %v5292_v49 }
 0xc6b   : > { %5871 = vpow2.f32 %v5771_v21 }
 0xc6d   : > { %v5154_v15 = vpop.xlane.xlu1 %5153 }
 0xc6e   : > { %v5155_v56 = vrot.slane %v5154_v15, 4 }
 0xc70   : > { %v5156_v8 = vadd.f32 %v5155_v56, %v5154_v15 }
 0xc71   : > { %v5872_v9 = vpop.eup %5871 }
 0xc72   : > { %v5157_v51 = vrot.slane %v5156_v8, 2  ;;  %v5297_v7 = vadd.f32 1.0, %v5872_v9 }
 0xc74   : > { %v5158_v61 = vadd.f32 %v5157_v51, %v5156_v8  ;;  %5873 = vrcp.f32 %v5297_v7  ;;  %vm5303_vm14 = vweird.f32 %v5297_v7  ;;  %v5309_v6 = vand.u32 2147483648, %v5297_v7 }
 0xc75   : > { %v5307_v4 = vand.u32 2147483647, %v5297_v7 }
 0xc76   : > { %v5159_v45 = vrot.slane %v5158_v61, 1  ;;  %v5310_v22 = vor.u32 1.1754944e-38, %v5309_v6 }
 0xc77   : > { %vm5308_vm4 = vcmp.eq.f32.partialorder %v5307_v4, 8.507059e+37 }
 0xc78   : > { %v5160_v39 = vadd.f32 %v5159_v45, %v5158_v61 }
 0xc7a   : > { %5791 = vpush %v5160_v39  ;;  %v5874_v50 = vpop.eup %5873 }
 0xc7b   : > { %v5299_v16 = vmul.f32 %v5874_v50, %v5297_v7  ;;  %vm5304_vm15 = vweird.f32 %v5874_v50 }
 0xc7c   : > { %vm5305_vm2 = vmor %vm5303_vm14, %vm5304_vm15 }
 0xc7d   : > { %v5300_v27 = vsub.f32 1.0, %v5299_v16 }
 0xc7f   : > { %v5301_v52 = vmul.f32 %v5874_v50, %v5300_v27 }
 0xc81   : > { %v5302_v0 = vadd.f32 %v5874_v50, %v5301_v52 }
 0xc83   : > { %v5306_v55 = vsel %vm5305_vm2, %v5874_v50, %v5302_v0 }
 0xc84   : > { %v5311_v63 = vsel %vm5308_vm4, %v5310_v22, %v5306_v55 }
 0xc85   : > { %v5313_v57 = vmul.f32 %v5311_v63, %v5292_v49 }
 0xc87   : > { %v5314_v43 = vperm.slane %v5313_v57, 0 }
 0xcab   : > { %s5792_s22 = spop %5791 }
 0xcac   : > { %v5162_v28 = vstv %s5792_s22 }
 0xcad   : > { %v5163_v29 = vmul.f32 %v5162_v28, %v7532_v13 }
 0xcaf   : > { %v5164_v54 = vadd.f32 1e-05, %v5163_v29 }
 0xcb1   : > { %5875 = vrsqrt.f32 %v5164_v54  ;;  %vm5171_vm6 = vweird.f32 %v5164_v54 }
 0xcb7   : > { %v5876_v37 = vpop.eup %5875 }
 0xcb8   : > { %v5166_v18 = vmul.f32 %v5876_v37, %v5164_v54  ;;  %vm5172_vm5 = vweird.f32 %v5876_v37 }
 0xcb9   : > { %vm5173_vm7 = vmor %vm5171_vm6, %vm5172_vm5 }
 0xcba   : > { %v5167_v12 = vmul.f32 %v5876_v37, %v5166_v18 }
 0xcbc   : > { %v5168_v31 = vmul.f32 0.5, %v5167_v12 }
 0xcbe   : > { %v5169_v41 = vsub.f32 1.5, %v5168_v31 }
 0xcc0   : > { %v5170_v13 = vmul.f32 %v5876_v37, %v5169_v41 }
 0xcc2   : > { %v5174_v44 = vsel %vm5173_vm7, %v5876_v37, %v5170_v13 }
 0xcc3   : > { %v5175_v48 = vmul.f32 %v5174_v44, %v8219_v46  ;;  %v5176_v5 = vmul.f32 %v5174_v44, %v8222_v32  ;;  %v5177_v26 = vmul.f32 %v5174_v44, %v8225_v3  ;;  %v5178_v40 = vmul.f32 %v5174_v44, %v8228_v53 }
 0xcc4   : > { %v5179_v17 = vmul.f32 %v5174_v44, %v8234_v34  ;;  %v5180_v1 = vmul.f32 %v5174_v44, %v8246_v14  ;;  %v5181_v35 = vmul.f32 %v5174_v44, %v8253_v30  ;;  %v5182_v42 = vmul.f32 %v5174_v44, %v8259_v60 }
 0xcc5   : > { %v5187_v46 = vmul.f32 %v5811_v10, %v5175_v48  ;;  %v5188_v20 = vmul.f32 %v5811_v10, %v5176_v5  ;;  %v5189_v32 = vmul.f32 %v5811_v10, %v5177_v26  ;;  %v5190_v24 = vmul.f32 %v5811_v10, %v5178_v40 }
 0xcc6   : > { %v5191_v3 = vmul.f32 %v5811_v10, %v5179_v17  ;;  %v5192_v38 = vmul.f32 %v5811_v10, %v5180_v1  ;;  %v5193_v53 = vmul.f32 %v5811_v10, %v5181_v35  ;;  %v5194_v47 = vmul.f32 %v5811_v10, %v5182_v42 }
 0xcc7   : > { %v5199_v59 = vadd.f32 %v5812_v25, %v5187_v46  ;;  %v5200_v36 = vadd.f32 %v5812_v25, %v5188_v20  ;;  %v5201_v2 = vadd.f32 %v5812_v25, %v5189_v32  ;;  %v5202_v33 = vadd.f32 %v5812_v25, %v5190_v24 }
 0xcc8   : > { %v5203_v34 = vadd.f32 %v5812_v25, %v5191_v3  ;;  %v5204_v14 = vadd.f32 %v5812_v25, %v5192_v38  ;;  %v5205_v30 = vadd.f32 %v5812_v25, %v5193_v53  ;;  %v5206_v56 = vadd.f32 %v5812_v25, %v5194_v47 }
 0xcc9   : > { %v5315_v60 = vadd.f32 %v5314_v43, %v5199_v59  ;;  %v5316_v58 = vadd.f32 %v5314_v43, %v5200_v36  ;;  %v5317_v15 = vadd.f32 %v5314_v43, %v5201_v2  ;;  %v5318_v8 = vadd.f32 %v5314_v43, %v5202_v33 }
 0xcca   : > { %v5319_v51 = vadd.f32 %v5314_v43, %v5203_v34  ;;  %v5320_v61 = vadd.f32 %v5314_v43, %v5204_v14  ;;  %v5321_v45 = vadd.f32 %v5314_v43, %v5205_v30  ;;  %v5322_v39 = vadd.f32 %v5314_v43, %v5206_v56 }
 0xccb   : > { %5323 = vst.msk [vmem:[%s521_s29] sm:$0xff] %vm522_vm0, %v5315_v60 }
 0xccc   : > { %5324 = vst.msk [vmem:[%s521_s29 + $0x8] sm:$0xff] %vm522_vm0, %v5316_v58 }
 0xccd   : > { %5325 = vst.msk [vmem:[%s521_s29 + $0x10] sm:$0xff] %vm522_vm0, %v5317_v15 }
 0xcce   : > { %5326 = vst.msk [vmem:[%s521_s29 + $0x18] sm:$0xff] %vm522_vm0, %v5318_v8 }
 0xccf   : > { %5327 = vst.msk [vmem:[%s521_s29 + $0x20] sm:$0xff] %vm522_vm0, %v5319_v51 }
 0xcd0   : > { %5328 = vst.msk [vmem:[%s521_s29 + $0x28] sm:$0xff] %vm522_vm0, %v5320_v61 }
 0xcd1   : > { %5329 = vst.msk [vmem:[%s521_s29 + $0x30] sm:$0xff] %vm522_vm0, %v5321_v45 }
 0xcd2   : > { %5330 = vst.msk [vmem:[%s521_s29 + $0x38] sm:$0xff] %vm522_vm0, %v5322_v39 }
 0xcd3 PF: > { %s26_s21 = sadd.s32 1, %s5883_s21  }
 0xcd4   : > { %p23_p4 = scmp.ge.s32.totalorder %s26_s21, 4  }
 0xcd6   :  { %25 = sbr.rel (!%p23_p4) target bundleno = 3 (0x3), region = 149 }

</bundles_post_ra>
